<compile_context>
chip_gen: v7x
topology: tpu7x:2x2x1
jax: 0.10.0
libtpu: 0.0.40
codegen_flags: <defaults>
</compile_context>

<pallas_src>
import functools

import jax
import jax.numpy as jnp
from jax.experimental import pallas as pl
from jax.experimental.pallas import tpu as pltpu

BN_EPS = 1e-5
EXPANSION = 4


def _round_up(x, m):
    return (x + m - 1) // m * m


# ----------------------------------------------------------------------------
# Kernel 1: fused matmul + per-channel scale/bias (+ optional residual, ReLU).
# Used for the 1x1 convs (conv1, conv3, downsample).  K and N are kept as full
# (un-tiled) block dims; the grid tiles M only, so there is no reduction axis
# and no accumulator scratch is needed.
# ----------------------------------------------------------------------------
def _mm_kernel(a_ref, w_ref, s_ref, b_ref, o_ref, *, relu):
    acc = jnp.dot(a_ref[...], w_ref[...], preferred_element_type=jnp.float32)
    y = acc * s_ref[...] + b_ref[...]
    if relu:
        y = jnp.maximum(y, 0.0)
    o_ref[...] = y.astype(o_ref.dtype)


def _mm_res_kernel(a_ref, w_ref, s_ref, b_ref, r_ref, o_ref, *, relu):
    acc = jnp.dot(a_ref[...], w_ref[...], preferred_element_type=jnp.float32)
    y = acc * s_ref[...] + b_ref[...] + r_ref[...].astype(jnp.float32)
    if relu:
        y = jnp.maximum(y, 0.0)
    o_ref[...] = y.astype(o_ref.dtype)


def matmul_scale_bias(a, w, scale, bias, residual=None, relu=True,
                      out_dtype=jnp.bfloat16):
    """maybe_relu(a @ w * scale + bias [+ residual]).

    a: (M, K) bf16, w: (K, N) bf16 (precomputed layout),
    scale/bias: (1, N) f32, residual: (M, N) or None.
    """
    M, K = a.shape
    Kw, N = w.shape
    assert K == Kw

    # M tile: multiple of 16 (bf16 sublane pack), capped at 256, and chosen so
    # the (parallel) grid has >= 2 blocks when M allows (keeps both v7x TCs busy).
    tm = min(256, _round_up((M + 1) // 2, 16)) if M > 16 else _round_up(M, 16)
    Mp = _round_up(M, tm)

    a = a.astype(jnp.bfloat16)
    if Mp != M:
        a = jnp.pad(a, ((0, Mp - M), (0, 0)))

    in_specs = [
        pl.BlockSpec((tm, K), lambda i: (i, 0)),
        pl.BlockSpec((K, N), lambda i: (0, 0)),
        pl.BlockSpec((1, N), lambda i: (0, 0)),
        pl.BlockSpec((1, N), lambda i: (0, 0)),
    ]
    args = [a, w, scale, bias]

    if residual is not None:
        r = residual
        if Mp != M:
            r = jnp.pad(r, ((0, Mp - M), (0, 0)))
        in_specs.append(pl.BlockSpec((tm, N), lambda i: (i, 0)))
        args.append(r)
        kern = functools.partial(_mm_res_kernel, relu=relu)
    else:
        kern = functools.partial(_mm_kernel, relu=relu)

    out = pl.pallas_call(
        kern,
        out_shape=jax.ShapeDtypeStruct((Mp, N), out_dtype),
        grid_spec=pltpu.PrefetchScalarGridSpec(
            num_scalar_prefetch=0,
            grid=(Mp // tm,),
            in_specs=in_specs,
            out_specs=pl.BlockSpec((tm, N), lambda i: (i, 0)),
        ),
        compiler_params=pltpu.CompilerParams(
            dimension_semantics=("parallel",)),
    )(*args)
    return out[:M] if Mp != M else out


# ----------------------------------------------------------------------------
# Kernel 2: 3x3 conv + BN + ReLU without im2col.  The padded NHWC image tile is
# windowed into VMEM and the 9 taps are accumulated in-kernel (9 small MXU
# matmuls into an f32 accumulator), so the activation is read once from HBM
# instead of 9x.
# ----------------------------------------------------------------------------
def _conv3x3_kernel(x_ref, w_ref, s_ref, b_ref, o_ref):
    _, OH, OW, Cout = o_ref.shape
    C = x_ref.shape[-1]
    acc = jnp.zeros((OH * OW, Cout), jnp.float32)
    for di in range(3):
        for dj in range(3):
            tap = x_ref[0, pl.ds(di, OH), pl.ds(dj, OW), :]        # (OH, OW, C)
            acc += jnp.dot(tap.reshape(OH * OW, C), w_ref[di * 3 + dj],
                           preferred_element_type=jnp.float32)
    y = acc * s_ref[...] + b_ref[...]
    y = jnp.maximum(y, 0.0)
    o_ref[0] = y.reshape(OH, OW, Cout).astype(o_ref.dtype)


def conv3x3_bn_relu(x, w, scale, bias):
    """x: (N,H,W,C) bf16, w: (9, C, Cout) bf16 (tap-major), scale/bias (1,Cout) f32.
    Stride-1, padding-1 3x3 conv fused with BN + ReLU."""
    N, H, W, C = x.shape
    Cout = w.shape[-1]
    xp = jnp.pad(x, ((0, 0), (1, 1), (1, 1), (0, 0)))
    Hp, Wp = H + 2, W + 2
    # TODO(synk): for large H*W this should additionally tile over output rows;
    # one image per grid step is enough for the shapes exercised here.
    return pl.pallas_call(
        _conv3x3_kernel,
        out_shape=jax.ShapeDtypeStruct((N, H, W, Cout), jnp.bfloat16),
        grid_spec=pltpu.PrefetchScalarGridSpec(
            num_scalar_prefetch=0,
            grid=(N,),
            in_specs=[
                pl.BlockSpec((1, Hp, Wp, C), lambda n: (n, 0, 0, 0)),
                pl.BlockSpec((9, C, Cout), lambda n: (0, 0, 0)),
                pl.BlockSpec((1, Cout), lambda n: (0, 0)),
                pl.BlockSpec((1, Cout), lambda n: (0, 0)),
            ],
            out_specs=pl.BlockSpec((1, H, W, Cout), lambda n: (n, 0, 0, 0)),
        ),
        compiler_params=pltpu.CompilerParams(
            dimension_semantics=("parallel",)),
    )(xp, w, scale, bias)


# ----------------------------------------------------------------------------
# Parameters: conv weights in the exact layout the kernels consume (bf16,
# transposed/reshaped once here, not per forward) and BatchNorm fused into
# per-channel (scale, bias) in f32.
# ----------------------------------------------------------------------------
def _fused_bn(cout):
    gamma = jnp.ones((cout,), jnp.float32)
    beta = jnp.zeros((cout,), jnp.float32)
    mean = jnp.zeros((cout,), jnp.float32)
    var = jnp.ones((cout,), jnp.float32)
    scale = gamma * jax.lax.rsqrt(var + BN_EPS)
    bias = beta - mean * scale
    return scale.reshape(1, cout), bias.reshape(1, cout)


def init_params(key, inplanes, planes, with_downsample=True):
    cout = planes * EXPANSION
    k1, k2, k3, k4 = jax.random.split(key, 4)

    def conv_w(k, co, ci, kh, kw):
        fan_in = ci * kh * kw
        return jax.random.normal(k, (co, ci, kh, kw), jnp.float32) * (
            (2.0 / fan_in) ** 0.5)

    w1 = conv_w(k1, planes, inplanes, 1, 1)          # torch layout (Co,Ci,kh,kw)
    w2 = conv_w(k2, planes, planes, 3, 3)
    w3 = conv_w(k3, cout, planes, 1, 1)

    p = {}
    p["w1"] = jnp.transpose(w1, (2, 3, 1, 0)).reshape(inplanes, planes) \
                 .astype(jnp.bfloat16)
    p["s1"], p["b1"] = _fused_bn(planes)
    p["w2"] = jnp.transpose(w2, (2, 3, 1, 0)).reshape(9, planes, planes) \
                 .astype(jnp.bfloat16)
    p["s2"], p["b2"] = _fused_bn(planes)
    p["w3"] = jnp.transpose(w3, (2, 3, 1, 0)).reshape(planes, cout) \
                 .astype(jnp.bfloat16)
    p["s3"], p["b3"] = _fused_bn(cout)

    if with_downsample:
        wd = conv_w(k4, cout, inplanes, 1, 1)
        p["wd"] = jnp.transpose(wd, (2, 3, 1, 0)).reshape(inplanes, cout) \
                     .astype(jnp.bfloat16)
        p["sd"], p["bd"] = _fused_bn(cout)
    return p


# ----------------------------------------------------------------------------
# Forward (jitted): matches torch Bottleneck.forward in eval mode.
# ----------------------------------------------------------------------------
@functools.partial(jax.jit, static_argnames=("stride",))
def bottleneck_forward(params, x_nchw, stride=1):
    x = jnp.transpose(x_nchw, (0, 2, 3, 1)).astype(jnp.bfloat16)   # NHWC bf16
    N, H, W, Cin = x.shape
    planes = params["w1"].shape[1]
    cout = params["w3"].shape[1]

    # conv1 (1x1) + bn1 + relu
    h = matmul_scale_bias(x.reshape(N * H * W, Cin),
                          params["w1"], params["s1"], params["b1"], relu=True)
    h = h.reshape(N, H, W, planes)

    # conv2 (3x3, pad=1, stride=s) + bn2 + relu
    # TODO(synk): stride>1 is computed at stride 1 and subsampled (exact result,
    # ~stride^2 extra MXU work); an in-kernel strided-tap variant would avoid it.
    h = conv3x3_bn_relu(h, params["w2"], params["s2"], params["b2"])
    if stride > 1:
        h = h[:, ::stride, ::stride, :]
    OH, OW = h.shape[1], h.shape[2]
    M2 = N * OH * OW

    # residual path (downsample: 1x1 stride-s conv + BN, no ReLU)
    if "wd" in params:
        xs = x[:, ::stride, ::stride, :] if stride > 1 else x
        res = matmul_scale_bias(xs.reshape(M2, Cin),
                                params["wd"], params["sd"], params["bd"],
                                relu=False)
    else:
        res = x.reshape(M2, Cin)   # identity (requires stride==1, Cin==cout)

    # conv3 (1x1) + bn3 + residual add + final relu, fused in one kernel
    out = matmul_scale_bias(h.reshape(M2, planes),
                            params["w3"], params["s3"], params["b3"],
                            residual=res, relu=True, out_dtype=jnp.float32)
    out = out.reshape(N, OH, OW, cout)
    return jnp.transpose(out, (0, 3, 1, 2))            # back to NCHW, f32


if __name__ == "__main__":
    inplanes, planes, stride = 64, 16, 2
    key = jax.random.PRNGKey(0)
    kp, kx = jax.random.split(key)
    params = init_params(kp, inplanes, planes, with_downsample=True)
    x = jax.random.normal(kx, (2, inplanes, 16, 16), jnp.float32)

    out = bottleneck_forward(params, x, stride=stride)
    out = jax.block_until_ready(out)

    assert out.shape == (2, planes * EXPANSION, 8, 8), out.shape
    assert bool(jnp.all(jnp.isfinite(out)))
    assert bool(jnp.all(out >= 0.0))   # final ReLU
    print("KERNEL_OK")
</pallas_src>

<mosaic_0001>
module attributes {stable_mosaic.version = 11 : i64} {
  func.func @_mm_kernel(%arg0: i32, %arg1: memref<256x64xbf16, #tpu.memory_space<vmem>>, %arg2: memref<64x16xbf16, #tpu.memory_space<vmem>>, %arg3: memref<1x16xf32, #tpu.memory_space<vmem>>, %arg4: memref<1x16xf32, #tpu.memory_space<vmem>>, %arg5: memref<256x16xbf16, #tpu.memory_space<vmem>>) attributes {dimension_semantics = [#tpu.dimension_semantics<parallel>], iteration_bounds = array<i64: 2>, scalar_prefetch = 0 : i64, scratch_operands = 0 : i64, tpu.core_type = #tpu.core_type<tc>, window_params = [{transform_indices = @transform_0, window_bounds = array<i64: 256, 64>}, {pipeline_mode = #tpu.pipeline_mode<synchronous>, transform_indices = @transform_1, window_bounds = array<i64: 64, 16>}, {pipeline_mode = #tpu.pipeline_mode<synchronous>, transform_indices = @transform_2, window_bounds = array<i64: 1, 16>}, {pipeline_mode = #tpu.pipeline_mode<synchronous>, transform_indices = @transform_3, window_bounds = array<i64: 1, 16>}, {transform_indices = @transform_4, window_bounds = array<i64: 256, 16>}]} {
    %c0 = arith.constant 0 : index
    %c0_0 = arith.constant 0 : index
    %0 = vector.load %arg1[%c0, %c0_0] : memref<256x64xbf16, #tpu.memory_space<vmem>>, vector<256x64xbf16>
    %c0_1 = arith.constant 0 : index
    %c0_2 = arith.constant 0 : index
    %1 = vector.load %arg2[%c0_1, %c0_2] : memref<64x16xbf16, #tpu.memory_space<vmem>>, vector<64x16xbf16>
    %cst = arith.constant dense<0.000000e+00> : vector<256x16xf32>
    %2 = tpu.matmul %0, %1, %cst {dimension_numbers = #tpu.dot_dimension_numbers<[1], [0], [0], [1], [0, 0, 1, 1], [], []>} : vector<256x64xbf16>, vector<64x16xbf16>, vector<256x16xf32> -> vector<256x16xf32>
    %c0_3 = arith.constant 0 : index
    %c0_4 = arith.constant 0 : index
    %3 = vector.load %arg3[%c0_3, %c0_4] : memref<1x16xf32, #tpu.memory_space<vmem>>, vector<1x16xf32>
    %4 = vector.broadcast %3 : vector<1x16xf32> to vector<256x16xf32>
    %5 = arith.mulf %2, %4 : vector<256x16xf32>
    %c0_5 = arith.constant 0 : index
    %c0_6 = arith.constant 0 : index
    %6 = vector.load %arg4[%c0_5, %c0_6] : memref<1x16xf32, #tpu.memory_space<vmem>>, vector<1x16xf32>
    %7 = vector.broadcast %6 : vector<1x16xf32> to vector<256x16xf32>
    %8 = arith.addf %5, %7 : vector<256x16xf32>
    %cst_7 = arith.constant 0.000000e+00 : f32
    %9 = vector.broadcast %cst_7 : f32 to vector<256x16xf32>
    %10 = arith.maximumf %8, %9 : vector<256x16xf32>
    %11 = arith.truncf %10 : vector<256x16xf32> to vector<256x16xbf16>
    %c0_8 = arith.constant 0 : index
    %c0_9 = arith.constant 0 : index
    %12 = vector.load %arg5[%c0_8, %c0_9] : memref<256x16xbf16, #tpu.memory_space<vmem>>, vector<256x16xbf16>
    tpu.vector_store %arg5[%c0_8, %c0_9], %11 {strides = array<i32>} : memref<256x16xbf16, #tpu.memory_space<vmem>>, vector<256x16xbf16>,
    return
  }
  func.func @transform_0(%arg0: i32) -> (i32, i32) {
    %c0_i32 = arith.constant 0 : i32
    %c0_i32_0 = arith.constant 0 : i32
    return %arg0, %c0_i32 : i32, i32
  }
  func.func @transform_1(%arg0: i32) -> (i32, i32) {
    %c0_i32 = arith.constant 0 : i32
    %c0_i32_0 = arith.constant 0 : i32
    %c0_i32_1 = arith.constant 0 : i32
    return %c0_i32, %c0_i32_0 : i32, i32
  }
  func.func @transform_2(%arg0: i32) -> (i32, i32) {
    %c0_i32 = arith.constant 0 : i32
    %c0_i32_0 = arith.constant 0 : i32
    %c0_i32_1 = arith.constant 0 : i32
    return %c0_i32, %c0_i32_0 : i32, i32
  }
  func.func @transform_3(%arg0: i32) -> (i32, i32) {
    %c0_i32 = arith.constant 0 : i32
    %c0_i32_0 = arith.constant 0 : i32
    %c0_i32_1 = arith.constant 0 : i32
    return %c0_i32, %c0_i32_0 : i32, i32
  }
  func.func @transform_4(%arg0: i32) -> (i32, i32) {
    %c0_i32 = arith.constant 0 : i32
    %c0_i32_0 = arith.constant 0 : i32
    return %arg0, %c0_i32 : i32, i32
  }
}

module attributes {stable_mosaic.version = 11 : i64} {
  func.func @_conv3x3_kernel(%arg0: i32, %arg1: memref<1x18x18x16xbf16, #tpu.memory_space<vmem>>, %arg2: memref<9x16x16xbf16, #tpu.memory_space<vmem>>, %arg3: memref<1x16xf32, #tpu.memory_space<vmem>>, %arg4: memref<1x16xf32, #tpu.memory_space<vmem>>, %arg5: memref<1x16x16x16xbf16, #tpu.memory_space<vmem>>) attributes {dimension_semantics = [#tpu.dimension_semantics<parallel>], iteration_bounds = array<i64: 2>, scalar_prefetch = 0 : i64, scratch_operands = 0 : i64, tpu.core_type = #tpu.core_type<tc>, window_params = [{transform_indices = @transform_0, window_bounds = array<i64: 1, 18, 18, 16>}, {pipeline_mode = #tpu.pipeline_mode<synchronous>, transform_indices = @transform_1, window_bounds = array<i64: 9, 16, 16>}, {pipeline_mode = #tpu.pipeline_mode<synchronous>, transform_indices = @transform_2, window_bounds = array<i64: 1, 16>}, {pipeline_mode = #tpu.pipeline_mode<synchronous>, transform_indices = @transform_3, window_bounds = array<i64: 1, 16>}, {transform_indices = @transform_4, window_bounds = array<i64: 1, 16, 16, 16>}]} {
    %cst = arith.constant 0.000000e+00 : f32
    %0 = vector.broadcast %cst : f32 to vector<256x16xf32>
    %c0 = arith.constant 0 : index
    %c0_0 = arith.constant 0 : index
    %c0_1 = arith.constant 0 : index
    %c0_2 = arith.constant 0 : index
    %1 = vector.load %arg1[%c0, %c0_0, %c0_1, %c0_2] : memref<1x18x18x16xbf16, #tpu.memory_space<vmem>>, vector<1x16x16x16xbf16>
    %2 = vector.shape_cast %1 : vector<1x16x16x16xbf16> to vector<16x16x16xbf16>
    %3 = vector.shape_cast %2 : vector<16x16x16xbf16> to vector<256x16xbf16>
    %c0_3 = arith.constant 0 : index
    %c0_4 = arith.constant 0 : index
    %c0_5 = arith.constant 0 : index
    %4 = vector.load %arg2[%c0_3, %c0_4, %c0_5] : memref<9x16x16xbf16, #tpu.memory_space<vmem>>, vector<1x16x16xbf16>
    %5 = vector.shape_cast %4 : vector<1x16x16xbf16> to vector<16x16xbf16>
    %cst_6 = arith.constant dense<0.000000e+00> : vector<256x16xf32>
    %6 = tpu.matmul %3, %5, %cst_6 {dimension_numbers = #tpu.dot_dimension_numbers<[1], [0], [0], [1], [0, 0, 1, 1], [], []>} : vector<256x16xbf16>, vector<16x16xbf16>, vector<256x16xf32> -> vector<256x16xf32>
    %7 = arith.addf %0, %6 : vector<256x16xf32>
    %c0_7 = arith.constant 0 : index
    %c0_8 = arith.constant 0 : index
    %c1 = arith.constant 1 : index
    %c0_9 = arith.constant 0 : index
    %8 = vector.load %arg1[%c0_7, %c0_8, %c1, %c0_9] : memref<1x18x18x16xbf16, #tpu.memory_space<vmem>>, vector<1x16x16x16xbf16>
    %9 = vector.shape_cast %8 : vector<1x16x16x16xbf16> to vector<16x16x16xbf16>
    %10 = vector.shape_cast %9 : vector<16x16x16xbf16> to vector<256x16xbf16>
    %c1_10 = arith.constant 1 : index
    %c0_11 = arith.constant 0 : index
    %c0_12 = arith.constant 0 : index
    %11 = vector.load %arg2[%c1_10, %c0_11, %c0_12] : memref<9x16x16xbf16, #tpu.memory_space<vmem>>, vector<1x16x16xbf16>
    %12 = vector.shape_cast %11 : vector<1x16x16xbf16> to vector<16x16xbf16>
    %cst_13 = arith.constant dense<0.000000e+00> : vector<256x16xf32>
    %13 = tpu.matmul %10, %12, %cst_13 {dimension_numbers = #tpu.dot_dimension_numbers<[1], [0], [0], [1], [0, 0, 1, 1], [], []>} : vector<256x16xbf16>, vector<16x16xbf16>, vector<256x16xf32> -> vector<256x16xf32>
    %14 = arith.addf %7, %13 : vector<256x16xf32>
    %c0_14 = arith.constant 0 : index
    %c0_15 = arith.constant 0 : index
    %c2 = arith.constant 2 : index
    %c0_16 = arith.constant 0 : index
    %15 = vector.load %arg1[%c0_14, %c0_15, %c2, %c0_16] : memref<1x18x18x16xbf16, #tpu.memory_space<vmem>>, vector<1x16x16x16xbf16>
    %16 = vector.shape_cast %15 : vector<1x16x16x16xbf16> to vector<16x16x16xbf16>
    %17 = vector.shape_cast %16 : vector<16x16x16xbf16> to vector<256x16xbf16>
    %c2_17 = arith.constant 2 : index
    %c0_18 = arith.constant 0 : index
    %c0_19 = arith.constant 0 : index
    %18 = vector.load %arg2[%c2_17, %c0_18, %c0_19] : memref<9x16x16xbf16, #tpu.memory_space<vmem>>, vector<1x16x16xbf16>
    %19 = vector.shape_cast %18 : vector<1x16x16xbf16> to vector<16x16xbf16>
    %cst_20 = arith.constant dense<0.000000e+00> : vector<256x16xf32>
    %20 = tpu.matmul %17, %19, %cst_20 {dimension_numbers = #tpu.dot_dimension_numbers<[1], [0], [0], [1], [0, 0, 1, 1], [], []>} : vector<256x16xbf16>, vector<16x16xbf16>, vector<256x16xf32> -> vector<256x16xf32>
    %21 = arith.addf %14, %20 : vector<256x16xf32>
    %c0_21 = arith.constant 0 : index
    %c1_22 = arith.constant 1 : index
    %c0_23 = arith.constant 0 : index
    %c0_24 = arith.constant 0 : index
    %22 = vector.load %arg1[%c0_21, %c1_22, %c0_23, %c0_24] : memref<1x18x18x16xbf16, #tpu.memory_space<vmem>>, vector<1x16x16x16xbf16>
    %23 = vector.shape_cast %22 : vector<1x16x16x16xbf16> to vector<16x16x16xbf16>
    %24 = vector.shape_cast %23 : vector<16x16x16xbf16> to vector<256x16xbf16>
    %c3 = arith.constant 3 : index
    %c0_25 = arith.constant 0 : index
    %c0_26 = arith.constant 0 : index
    %25 = vector.load %arg2[%c3, %c0_25, %c0_26] : memref<9x16x16xbf16, #tpu.memory_space<vmem>>, vector<1x16x16xbf16>
    %26 = vector.shape_cast %25 : vector<1x16x16xbf16> to vector<16x16xbf16>
    %cst_27 = arith.constant dense<0.000000e+00> : vector<256x16xf32>
    %27 = tpu.matmul %24, %26, %cst_27 {dimension_numbers = #tpu.dot_dimension_numbers<[1], [0], [0], [1], [0, 0, 1, 1], [], []>} : vector<256x16xbf16>, vector<16x16xbf16>, vector<256x16xf32> -> vector<256x16xf32>
    %28 = arith.addf %21, %27 : vector<256x16xf32>
    %c0_28 = arith.constant 0 : index
    %c1_29 = arith.constant 1 : index
    %c1_30 = arith.constant 1 : index
    %c0_31 = arith.constant 0 : index
    %29 = vector.load %arg1[%c0_28, %c1_29, %c1_30, %c0_31] : memref<1x18x18x16xbf16, #tpu.memory_space<vmem>>, vector<1x16x16x16xbf16>
    %30 = vector.shape_cast %29 : vector<1x16x16x16xbf16> to vector<16x16x16xbf16>
    %31 = vector.shape_cast %30 : vector<16x16x16xbf16> to vector<256x16xbf16>
    %c4 = arith.constant 4 : index
    %c0_32 = arith.constant 0 : index
    %c0_33 = arith.constant 0 : index
    %32 = vector.load %arg2[%c4, %c0_32, %c0_33] : memref<9x16x16xbf16, #tpu.memory_space<vmem>>, vector<1x16x16xbf16>
    %33 = vector.shape_cast %32 : vector<1x16x16xbf16> to vector<16x16xbf16>
    %cst_34 = arith.constant dense<0.000000e+00> : vector<256x16xf32>
    %34 = tpu.matmul %31, %33, %cst_34 {dimension_numbers = #tpu.dot_dimension_numbers<[1], [0], [0], [1], [0, 0, 1, 1], [], []>} : vector<256x16xbf16>, vector<16x16xbf16>, vector<256x16xf32> -> vector<256x16xf32>
    %35 = arith.addf %28, %34 : vector<256x16xf32>
    %c0_35 = arith.constant 0 : index
    %c1_36 = arith.constant 1 : index
    %c2_37 = arith.constant 2 : index
    %c0_38 = arith.constant 0 : index
    %36 = vector.load %arg1[%c0_35, %c1_36, %c2_37, %c0_38] : memref<1x18x18x16xbf16, #tpu.memory_space<vmem>>, vector<1x16x16x16xbf16>
    %37 = vector.shape_cast %36 : vector<1x16x16x16xbf16> to vector<16x16x16xbf16>
    %38 = vector.shape_cast %37 : vector<16x16x16xbf16> to vector<256x16xbf16>
    %c5 = arith.constant 5 : index
    %c0_39 = arith.constant 0 : index
    %c0_40 = arith.constant 0 : index
    %39 = vector.load %arg2[%c5, %c0_39, %c0_40] : memref<9x16x16xbf16, #tpu.memory_space<vmem>>, vector<1x16x16xbf16>
    %40 = vector.shape_cast %39 : vector<1x16x16xbf16> to vector<16x16xbf16>
    %cst_41 = arith.constant dense<0.000000e+00> : vector<256x16xf32>
    %41 = tpu.matmul %38, %40, %cst_41 {dimension_numbers = #tpu.dot_dimension_numbers<[1], [0], [0], [1], [0, 0, 1, 1], [], []>} : vector<256x16xbf16>, vector<16x16xbf16>, vector<256x16xf32> -> vector<256x16xf32>
    %42 = arith.addf %35, %41 : vector<256x16xf32>
    %c0_42 = arith.constant 0 : index
    %c2_43 = arith.constant 2 : index
    %c0_44 = arith.constant 0 : index
    %c0_45 = arith.constant 0 : index
    %43 = vector.load %arg1[%c0_42, %c2_43, %c0_44, %c0_45] : memref<1x18x18x16xbf16, #tpu.memory_space<vmem>>, vector<1x16x16x16xbf16>
    %44 = vector.shape_cast %43 : vector<1x16x16x16xbf16> to vector<16x16x16xbf16>
    %45 = vector.shape_cast %44 : vector<16x16x16xbf16> to vector<256x16xbf16>
    %c6 = arith.constant 6 : index
    %c0_46 = arith.constant 0 : index
    %c0_47 = arith.constant 0 : index
    %46 = vector.load %arg2[%c6, %c0_46, %c0_47] : memref<9x16x16xbf16, #tpu.memory_space<vmem>>, vector<1x16x16xbf16>
    %47 = vector.shape_cast %46 : vector<1x16x16xbf16> to vector<16x16xbf16>
    %cst_48 = arith.constant dense<0.000000e+00> : vector<256x16xf32>
    %48 = tpu.matmul %45, %47, %cst_48 {dimension_numbers = #tpu.dot_dimension_numbers<[1], [0], [0], [1], [0, 0, 1, 1], [], []>} : vector<256x16xbf16>, vector<16x16xbf16>, vector<256x16xf32> -> vector<256x16xf32>
    %49 = arith.addf %42, %48 : vector<256x16xf32>
    %c0_49 = arith.constant 0 : index
    %c2_50 = arith.constant 2 : index
    %c1_51 = arith.constant 1 : index
    %c0_52 = arith.constant 0 : index
    %50 = vector.load %arg1[%c0_49, %c2_50, %c1_51, %c0_52] : memref<1x18x18x16xbf16, #tpu.memory_space<vmem>>, vector<1x16x16x16xbf16>
    %51 = vector.shape_cast %50 : vector<1x16x16x16xbf16> to vector<16x16x16xbf16>
    %52 = vector.shape_cast %51 : vector<16x16x16xbf16> to vector<256x16xbf16>
    %c7 = arith.constant 7 : index
    %c0_53 = arith.constant 0 : index
    %c0_54 = arith.constant 0 : index
    %53 = vector.load %arg2[%c7, %c0_53, %c0_54] : memref<9x16x16xbf16, #tpu.memory_space<vmem>>, vector<1x16x16xbf16>
    %54 = vector.shape_cast %53 : vector<1x16x16xbf16> to vector<16x16xbf16>
    %cst_55 = arith.constant dense<0.000000e+00> : vector<256x16xf32>
    %55 = tpu.matmul %52, %54, %cst_55 {dimension_numbers = #tpu.dot_dimension_numbers<[1], [0], [0], [1], [0, 0, 1, 1], [], []>} : vector<256x16xbf16>, vector<16x16xbf16>, vector<256x16xf32> -> vector<256x16xf32>
    %56 = arith.addf %49, %55 : vector<256x16xf32>
    %c0_56 = arith.constant 0 : index
    %c2_57 = arith.constant 2 : index
    %c2_58 = arith.constant 2 : index
    %c0_59 = arith.constant 0 : index
    %57 = vector.load %arg1[%c0_56, %c2_57, %c2_58, %c0_59] : memref<1x18x18x16xbf16, #tpu.memory_space<vmem>>, vector<1x16x16x16xbf16>
    %58 = vector.shape_cast %57 : vector<1x16x16x16xbf16> to vector<16x16x16xbf16>
    %59 = vector.shape_cast %58 : vector<16x16x16xbf16> to vector<256x16xbf16>
    %c8 = arith.constant 8 : index
    %c0_60 = arith.constant 0 : index
    %c0_61 = arith.constant 0 : index
    %60 = vector.load %arg2[%c8, %c0_60, %c0_61] : memref<9x16x16xbf16, #tpu.memory_space<vmem>>, vector<1x16x16xbf16>
    %61 = vector.shape_cast %60 : vector<1x16x16xbf16> to vector<16x16xbf16>
    %cst_62 = arith.constant dense<0.000000e+00> : vector<256x16xf32>
    %62 = tpu.matmul %59, %61, %cst_62 {dimension_numbers = #tpu.dot_dimension_numbers<[1], [0], [0], [1], [0, 0, 1, 1], [], []>} : vector<256x16xbf16>, vector<16x16xbf16>, vector<256x16xf32> -> vector<256x16xf32>
    %63 = arith.addf %56, %62 : vector<256x16xf32>
    %c0_63 = arith.constant 0 : index
    %c0_64 = arith.constant 0 : index
    %64 = vector.load %arg3[%c0_63, %c0_64] : memref<1x16xf32, #tpu.memory_space<vmem>>, vector<1x16xf32>
    %65 = vector.broadcast %64 : vector<1x16xf32> to vector<256x16xf32>
    %66 = arith.mulf %63, %65 : vector<256x16xf32>
    %c0_65 = arith.constant 0 : index
    %c0_66 = arith.constant 0 : index
    %67 = vector.load %arg4[%c0_65, %c0_66] : memref<1x16xf32, #tpu.memory_space<vmem>>, vector<1x16xf32>
    %68 = vector.broadcast %67 : vector<1x16xf32> to vector<256x16xf32>
    %69 = arith.addf %66, %68 : vector<256x16xf32>
    %cst_67 = arith.constant 0.000000e+00 : f32
    %70 = vector.broadcast %cst_67 : f32 to vector<256x16xf32>
    %71 = arith.maximumf %69, %70 : vector<256x16xf32>
    %72 = vector.shape_cast %71 : vector<256x16xf32> to vector<16x16x16xf32>
    %73 = arith.truncf %72 : vector<16x16x16xf32> to vector<16x16x16xbf16>
    %c0_68 = arith.constant 0 : index
    %c0_69 = arith.constant 0 : index
    %c0_70 = arith.constant 0 : index
    %c0_71 = arith.constant 0 : index
    %74 = vector.load %arg5[%c0_68, %c0_69, %c0_70, %c0_71] : memref<1x16x16x16xbf16, #tpu.memory_space<vmem>>, vector<1x16x16x16xbf16>
    %75 = vector.shape_cast %74 : vector<1x16x16x16xbf16> to vector<16x16x16xbf16>
    %76 = vector.shape_cast %73 : vector<16x16x16xbf16> to vector<1x16x16x16xbf16>
    tpu.vector_store %arg5[%c0_68, %c0_69, %c0_70, %c0_71], %76 {strides = array<i32>} : memref<1x16x16x16xbf16, #tpu.memory_space<vmem>>, vector<1x16x16x16xbf16>,
    return
  }
  func.func @transform_0(%arg0: i32) -> (i32, i32, i32, i32) {
    %c0_i32 = arith.constant 0 : i32
    %c0_i32_0 = arith.constant 0 : i32
    %c0_i32_1 = arith.constant 0 : i32
    %c0_i32_2 = arith.constant 0 : i32
    return %arg0, %c0_i32, %c0_i32_0, %c0_i32_1 : i32, i32, i32, i32
  }
  func.func @transform_1(%arg0: i32) -> (i32, i32, i32) {
    %c0_i32 = arith.constant 0 : i32
    %c0_i32_0 = arith.constant 0 : i32
    %c0_i32_1 = arith.constant 0 : i32
    %c0_i32_2 = arith.constant 0 : i32
    return %c0_i32, %c0_i32_0, %c0_i32_1 : i32, i32, i32
  }
  func.func @transform_2(%arg0: i32) -> (i32, i32) {
    %c0_i32 = arith.constant 0 : i32
    %c0_i32_0 = arith.constant 0 : i32
    %c0_i32_1 = arith.constant 0 : i32
    return %c0_i32, %c0_i32_0 : i32, i32
  }
  func.func @transform_3(%arg0: i32) -> (i32, i32) {
    %c0_i32 = arith.constant 0 : i32
    %c0_i32_0 = arith.constant 0 : i32
    %c0_i32_1 = arith.constant 0 : i32
    return %c0_i32, %c0_i32_0 : i32, i32
  }
  func.func @transform_4(%arg0: i32) -> (i32, i32, i32, i32) {
    %c0_i32 = arith.constant 0 : i32
    %c0_i32_0 = arith.constant 0 : i32
    %c0_i32_1 = arith.constant 0 : i32
    %c0_i32_2 = arith.constant 0 : i32
    return %arg0, %c0_i32, %c0_i32_0, %c0_i32_1 : i32, i32, i32, i32
  }
}

module attributes {stable_mosaic.version = 11 : i64} {
  func.func @_mm_res_kernel(%arg0: i32, %arg1: memref<64x16xbf16, #tpu.memory_space<vmem>>, %arg2: memref<16x64xbf16, #tpu.memory_space<vmem>>, %arg3: memref<1x64xf32, #tpu.memory_space<vmem>>, %arg4: memref<1x64xf32, #tpu.memory_space<vmem>>, %arg5: memref<64x64xbf16, #tpu.memory_space<vmem>>, %arg6: memref<64x64xf32, #tpu.memory_space<vmem>>) attributes {dimension_semantics = [#tpu.dimension_semantics<parallel>], iteration_bounds = array<i64: 2>, scalar_prefetch = 0 : i64, scratch_operands = 0 : i64, tpu.core_type = #tpu.core_type<tc>, window_params = [{transform_indices = @transform_0, window_bounds = array<i64: 64, 16>}, {pipeline_mode = #tpu.pipeline_mode<synchronous>, transform_indices = @transform_1, window_bounds = array<i64: 16, 64>}, {pipeline_mode = #tpu.pipeline_mode<synchronous>, transform_indices = @transform_2, window_bounds = array<i64: 1, 64>}, {pipeline_mode = #tpu.pipeline_mode<synchronous>, transform_indices = @transform_3, window_bounds = array<i64: 1, 64>}, {transform_indices = @transform_4, window_bounds = array<i64: 64, 64>}, {transform_indices = @transform_5, window_bounds = array<i64: 64, 64>}]} {
    %c0 = arith.constant 0 : index
    %c0_0 = arith.constant 0 : index
    %0 = vector.load %arg1[%c0, %c0_0] : memref<64x16xbf16, #tpu.memory_space<vmem>>, vector<64x16xbf16>
    %c0_1 = arith.constant 0 : index
    %c0_2 = arith.constant 0 : index
    %1 = vector.load %arg2[%c0_1, %c0_2] : memref<16x64xbf16, #tpu.memory_space<vmem>>, vector<16x64xbf16>
    %cst = arith.constant dense<0.000000e+00> : vector<64x64xf32>
    %2 = tpu.matmul %0, %1, %cst {dimension_numbers = #tpu.dot_dimension_numbers<[1], [0], [0], [1], [0, 0, 1, 1], [], []>} : vector<64x16xbf16>, vector<16x64xbf16>, vector<64x64xf32> -> vector<64x64xf32>
    %c0_3 = arith.constant 0 : index
    %c0_4 = arith.constant 0 : index
    %3 = vector.load %arg3[%c0_3, %c0_4] : memref<1x64xf32, #tpu.memory_space<vmem>>, vector<1x64xf32>
    %4 = vector.broadcast %3 : vector<1x64xf32> to vector<64x64xf32>
    %5 = arith.mulf %2, %4 : vector<64x64xf32>
    %c0_5 = arith.constant 0 : index
    %c0_6 = arith.constant 0 : index
    %6 = vector.load %arg4[%c0_5, %c0_6] : memref<1x64xf32, #tpu.memory_space<vmem>>, vector<1x64xf32>
    %7 = vector.broadcast %6 : vector<1x64xf32> to vector<64x64xf32>
    %8 = arith.addf %5, %7 : vector<64x64xf32>
    %c0_7 = arith.constant 0 : index
    %c0_8 = arith.constant 0 : index
    %9 = vector.load %arg5[%c0_7, %c0_8] : memref<64x64xbf16, #tpu.memory_space<vmem>>, vector<64x64xbf16>
    %10 = arith.extf %9 : vector<64x64xbf16> to vector<64x64xf32>
    %11 = arith.addf %8, %10 : vector<64x64xf32>
    %cst_9 = arith.constant 0.000000e+00 : f32
    %12 = vector.broadcast %cst_9 : f32 to vector<64x64xf32>
    %13 = arith.maximumf %11, %12 : vector<64x64xf32>
    %c0_10 = arith.constant 0 : index
    %c0_11 = arith.constant 0 : index
    %14 = vector.load %arg6[%c0_10, %c0_11] : memref<64x64xf32, #tpu.memory_space<vmem>>, vector<64x64xf32>
    tpu.vector_store %arg6[%c0_10, %c0_11], %13 {strides = array<i32>} : memref<64x64xf32, #tpu.memory_space<vmem>>, vector<64x64xf32>,
    return
  }
  func.func @transform_0(%arg0: i32) -> (i32, i32) {
    %c0_i32 = arith.constant 0 : i32
    %c0_i32_0 = arith.constant 0 : i32
    return %arg0, %c0_i32 : i32, i32
  }
  func.func @transform_1(%arg0: i32) -> (i32, i32) {
    %c0_i32 = arith.constant 0 : i32
    %c0_i32_0 = arith.constant 0 : i32
    %c0_i32_1 = arith.constant 0 : i32
    return %c0_i32, %c0_i32_0 : i32, i32
  }
  func.func @transform_2(%arg0: i32) -> (i32, i32) {
    %c0_i32 = arith.constant 0 : i32
    %c0_i32_0 = arith.constant 0 : i32
    %c0_i32_1 = arith.constant 0 : i32
    return %c0_i32, %c0_i32_0 : i32, i32
  }
  func.func @transform_3(%arg0: i32) -> (i32, i32) {
    %c0_i32 = arith.constant 0 : i32
    %c0_i32_0 = arith.constant 0 : i32
    %c0_i32_1 = arith.constant 0 : i32
    return %c0_i32, %c0_i32_0 : i32, i32
  }
  func.func @transform_4(%arg0: i32) -> (i32, i32) {
    %c0_i32 = arith.constant 0 : i32
    %c0_i32_0 = arith.constant 0 : i32
    return %arg0, %c0_i32 : i32, i32
  }
  func.func @transform_5(%arg0: i32) -> (i32, i32) {
    %c0_i32 = arith.constant 0 : i32
    %c0_i32_0 = arith.constant 0 : i32
    return %arg0, %c0_i32 : i32, i32
  }
}

module attributes {stable_mosaic.version = 11 : i64} {
  func.func @_mm_kernel(%arg0: i32, %arg1: memref<64x64xbf16, #tpu.memory_space<vmem>>, %arg2: memref<64x64xbf16, #tpu.memory_space<vmem>>, %arg3: memref<1x64xf32, #tpu.memory_space<vmem>>, %arg4: memref<1x64xf32, #tpu.memory_space<vmem>>, %arg5: memref<64x64xbf16, #tpu.memory_space<vmem>>) attributes {dimension_semantics = [#tpu.dimension_semantics<parallel>], iteration_bounds = array<i64: 2>, scalar_prefetch = 0 : i64, scratch_operands = 0 : i64, tpu.core_type = #tpu.core_type<tc>, window_params = [{transform_indices = @transform_0, window_bounds = array<i64: 64, 64>}, {pipeline_mode = #tpu.pipeline_mode<synchronous>, transform_indices = @transform_1, window_bounds = array<i64: 64, 64>}, {pipeline_mode = #tpu.pipeline_mode<synchronous>, transform_indices = @transform_2, window_bounds = array<i64: 1, 64>}, {pipeline_mode = #tpu.pipeline_mode<synchronous>, transform_indices = @transform_3, window_bounds = array<i64: 1, 64>}, {transform_indices = @transform_4, window_bounds = array<i64: 64, 64>}]} {
    %c0 = arith.constant 0 : index
    %c0_0 = arith.constant 0 : index
    %0 = vector.load %arg1[%c0, %c0_0] : memref<64x64xbf16, #tpu.memory_space<vmem>>, vector<64x64xbf16>
    %c0_1 = arith.constant 0 : index
    %c0_2 = arith.constant 0 : index
    %1 = vector.load %arg2[%c0_1, %c0_2] : memref<64x64xbf16, #tpu.memory_space<vmem>>, vector<64x64xbf16>
    %cst = arith.constant dense<0.000000e+00> : vector<64x64xf32>
    %2 = tpu.matmul %0, %1, %cst {dimension_numbers = #tpu.dot_dimension_numbers<[1], [0], [0], [1], [0, 0, 1, 1], [], []>} : vector<64x64xbf16>, vector<64x64xbf16>, vector<64x64xf32> -> vector<64x64xf32>
    %c0_3 = arith.constant 0 : index
    %c0_4 = arith.constant 0 : index
    %3 = vector.load %arg3[%c0_3, %c0_4] : memref<1x64xf32, #tpu.memory_space<vmem>>, vector<1x64xf32>
    %4 = vector.broadcast %3 : vector<1x64xf32> to vector<64x64xf32>
    %5 = arith.mulf %2, %4 : vector<64x64xf32>
    %c0_5 = arith.constant 0 : index
    %c0_6 = arith.constant 0 : index
    %6 = vector.load %arg4[%c0_5, %c0_6] : memref<1x64xf32, #tpu.memory_space<vmem>>, vector<1x64xf32>
    %7 = vector.broadcast %6 : vector<1x64xf32> to vector<64x64xf32>
    %8 = arith.addf %5, %7 : vector<64x64xf32>
    %9 = arith.truncf %8 : vector<64x64xf32> to vector<64x64xbf16>
    %c0_7 = arith.constant 0 : index
    %c0_8 = arith.constant 0 : index
    %10 = vector.load %arg5[%c0_7, %c0_8] : memref<64x64xbf16, #tpu.memory_space<vmem>>, vector<64x64xbf16>
    tpu.vector_store %arg5[%c0_7, %c0_8], %9 {strides = array<i32>} : memref<64x64xbf16, #tpu.memory_space<vmem>>, vector<64x64xbf16>,
    return
  }
  func.func @transform_0(%arg0: i32) -> (i32, i32) {
    %c0_i32 = arith.constant 0 : i32
    %c0_i32_0 = arith.constant 0 : i32
    return %arg0, %c0_i32 : i32, i32
  }
  func.func @transform_1(%arg0: i32) -> (i32, i32) {
    %c0_i32 = arith.constant 0 : i32
    %c0_i32_0 = arith.constant 0 : i32
    %c0_i32_1 = arith.constant 0 : i32
    return %c0_i32, %c0_i32_0 : i32, i32
  }
  func.func @transform_2(%arg0: i32) -> (i32, i32) {
    %c0_i32 = arith.constant 0 : i32
    %c0_i32_0 = arith.constant 0 : i32
    %c0_i32_1 = arith.constant 0 : i32
    return %c0_i32, %c0_i32_0 : i32, i32
  }
  func.func @transform_3(%arg0: i32) -> (i32, i32) {
    %c0_i32 = arith.constant 0 : i32
    %c0_i32_0 = arith.constant 0 : i32
    %c0_i32_1 = arith.constant 0 : i32
    return %c0_i32, %c0_i32_0 : i32, i32
  }
  func.func @transform_4(%arg0: i32) -> (i32, i32) {
    %c0_i32 = arith.constant 0 : i32
    %c0_i32_0 = arith.constant 0 : i32
    return %arg0, %c0_i32 : i32, i32
  }
}

</mosaic_0001>

<bundles_post_ra>
// kernel: bottleneck_forward.4
= control target key start
LH: loop header
LB: loop body
LE: loop exit
PB: predicated region body
PF: predicated region fallthrough
CT: control target
= control target key end

     0   :  { %s1125_s15 = smov 0   ;;  %s1335_s0 = inlined_call_operand.vmem [shape: bf16[512,64], index: 0, kind: input, shape index: {}]   ;;  %s1336_s1 = inlined_call_operand.vmem [shape: bf16[64,16], index: 1, kind: input, shape index: {}]   ;;  %s1337_s2 = inlined_call_operand.vmem [shape: f32[1,16], index: 2, kind: input, shape index: {}]   ;;  %s1338_s3 = inlined_call_operand.vmem [shape: f32[1,16], index: 3, kind: input, shape index: {}]   ;;  %s1339_s4 = inlined_call_operand.vmem [shape: bf16[512,16], index: 4, kind: output, shape index: {}]  }
   0x1 LB: > { %s883_s16 = sadd.s32 4294967295, %s1098_s15   ;;  %p887_p0 = scmp.ge.s32.totalorder %s1098_s15, 1  ;;  %s1098_s15 = sphi %s1125_s15, %s14_s15  }
   0x2   : > { %p163_p1 = scmp.lt.s32.totalorder %s1098_s15, 3 }
   0x4   : > { %p164_p2 = pnand %p887_p0, %p163_p1 }
   0x5   : > { %v1072_v0 = vld [vmem:[%s1336_s1] sm:$0xff] (!%p164_p2)   ;;  %s888_s19 = sshll.u32 (!%p164_p2), %s883_s16, 5  ;;  %v1073_v1 = vld [vmem:[%s1336_s1 + $0x8] sm:$0xff] (!%p164_p2)   ;;  %v1074_v2 = vld [vmem:[%s1336_s1 + $0x10] sm:$0xff] (!%p164_p2)   ;;  %vm346_vm0 = vcmask (!%p164_p2), 523264   ;;  %vm794_vm1 = vcmask (!%p164_p2), 125952  }
   0x6   : > { %167 = sbr.rel (%p164_p2) target bundleno = 273 (0x111), region = 36  ;;  %p190_p3 = scmp.lt.s32.totalorder (!%p164_p2), %s888_s19, 63  ;;  %1016 = vmatprep.subr.bf16.mxu0 (!%p164_p2), %v1072_v0  ;;  %1056 = vmatprep.subr.bf16.mxu1 (!%p164_p2), %v1072_v0  ;;  %v1075_v3 = vld [vmem:[%s1336_s1 + $0x18] sm:$0xff] (!%p164_p2)   ;;  %v1190_v20 = vld [vmem:[%s1337_s2] ss:$0 sm:$0xff] (!%p164_p2) }
   0x7   : > { %1017 = vmatpush3.bf16.msra.mxu0 (!%p164_p2), %v1072_v0  ;;  %1060 = vmatpush3.bf16.msra.mxu1 (!%p164_p2), %v1072_v0  ;;  %v1195_v22 = vld [vmem:[%s1338_s3] ss:$0 sm:$0xff] (!%p164_p2) }
   0x8   : > { %1018 = vmatprep.subr.bf16.mxu0 (!%p164_p2), %v1073_v1  ;;  %1057 = vmatprep.subr.bf16.mxu1 (!%p164_p2), %v1073_v1 }
   0xb   : > { %1019 = vmatpush3.bf16.msra.mxu0 (!%p164_p2), %v1073_v1  ;;  %1061 = vmatpush3.bf16.msra.mxu1 (!%p164_p2), %v1073_v1 }
   0xc   : > { %1020 = vmatprep.subr.bf16.mxu0 (!%p164_p2), %v1074_v2  ;;  %1058 = vmatprep.subr.bf16.mxu1 (!%p164_p2), %v1074_v2 }
   0xd   : > { %s1341_s19 = smov (!%p190_p3, %s888_s19), 63 }
   0xe   : > { %s889_s24 = sshll.u32 %s1341_s19, 2 }
   0xf   : > { %s1153_s29 = scalar_lea.vmem %s1335_s0, %s889_s24  ;;  %1021 = vmatpush3.bf16.msra.mxu0 %v1074_v2  ;;  %1062 = vmatpush3.bf16.msra.mxu1 %v1074_v2  ;;  %s1216_s10 = scalar_lea.vmem %s1339_s4, %s889_s24 }
  0x10   : > { %v1076_v4 = vld [vmem:[%s1153_s29] sm:$0xff]   ;;  %1022 = vmatprep.subr.bf16.mxu0 %v1075_v3  ;;  %1059 = vmatprep.subr.bf16.mxu1 %v1075_v3  ;;  %v1078_v6 = vld [vmem:[%s1153_s29 + $0x8] sm:$0xff]   ;;  %v1080_v8 = vld [vmem:[%s1153_s29 + $0x10] sm:$0xff]  }
  0x11   : > { %v1077_v5 = vld [vmem:[%s1153_s29 + $0x40] sm:$0xff]   ;;  %1024 = vmatprep.mubr.msk.bf16.mxu0 %vm346_vm0, %v1076_v4  ;;  %v1079_v7 = vld [vmem:[%s1153_s29 + $0x48] sm:$0xff]   ;;  %v1081_v9 = vld [vmem:[%s1153_s29 + $0x50] sm:$0xff]  }
  0x12   : > { %1040 = vmatprep.mubr.msk.bf16.mxu1 %vm346_vm0, %v1077_v5  ;;  %v1082_v10 = vld [vmem:[%s1153_s29 + $0x18] sm:$0xff]   ;;  %v1084_v12 = vld [vmem:[%s1153_s29 + $0x20] sm:$0xff]   ;;  %v1086_v14 = vld [vmem:[%s1153_s29 + $0x28] sm:$0xff]  }
  0x13   : > { %1023 = vmatpush3.bf16.msra.mxu0 %v1075_v3  ;;  %1063 = vmatpush3.bf16.msra.mxu1 %v1075_v3  ;;  %v1083_v11 = vld [vmem:[%s1153_s29 + $0x58] sm:$0xff]   ;;  %v1085_v13 = vld [vmem:[%s1153_s29 + $0x60] sm:$0xff]   ;;  %v1087_v15 = vld [vmem:[%s1153_s29 + $0x68] sm:$0xff]  }
  0x14   : > { %v1088_v16 = vld [vmem:[%s1153_s29 + $0x30] sm:$0xff]   ;;  %v1090_v18 = vld [vmem:[%s1153_s29 + $0x38] sm:$0xff]  }
  0x15   : > { %v1089_v17 = vld [vmem:[%s1153_s29 + $0x70] sm:$0xff]   ;;  %v1091_v19 = vld [vmem:[%s1153_s29 + $0x78] sm:$0xff]  }
  0x16   : > { %1025 = vmatmul.mubr.msk.bf16.vlgmr.msra.gmra.mrb[0].mxu0 %vm346_vm0, %v1078_v6  ;;  %1041 = vmatmul.mubr.msk.bf16.vlgmr.msra.gmra.mrb[0].mxu1 %vm346_vm0, %v1079_v7 }
  0x17   : > { %1028 = vmatprep.mubr.msk.bf16.mxu0 %vm346_vm0, %v1080_v8  ;;  %1044 = vmatprep.mubr.msk.bf16.mxu1 %vm346_vm0, %v1081_v9 }
  0x1e   : > { %1029 = vmatmul.mubr.msk.bf16.gmra.mrb[4].mxu0 %vm346_vm0, %v1082_v10  ;;  %1045 = vmatmul.mubr.msk.bf16.gmra.mrb[4].mxu1 %vm346_vm0, %v1083_v11 }
  0x1f   : > { %1032 = vmatprep.mubr.msk.bf16.mxu0 %vm346_vm0, %v1084_v12  ;;  %1048 = vmatprep.mubr.msk.bf16.mxu1 %vm346_vm0, %v1085_v13 }
  0x26   : > { %1033 = vmatmul.mubr.msk.bf16.gmra.mrb[8].mxu0 %vm346_vm0, %v1086_v14  ;;  %1049 = vmatmul.mubr.msk.bf16.gmra.mrb[8].mxu1 %vm346_vm0, %v1087_v15 }
  0x27   : > { %1036 = vmatprep.mubr.msk.bf16.mxu0 %vm346_vm0, %v1088_v16  ;;  %1052 = vmatprep.mubr.msk.bf16.mxu1 %vm346_vm0, %v1089_v17 }
  0x2e   : > { %1037 = vmatmul.mubr.msk.bf16.gmra.mrb[12].mxu0 %vm346_vm0, %v1090_v18  ;;  %1053 = vmatmul.mubr.msk.bf16.gmra.mrb[12].mxu1 %vm346_vm0, %v1091_v19 }
  0xe9   : > { %v1026_v21 = vpop.f32.mrb[0].mxu0  ;;  %v1042_v23 = vpop.f32.mrb[0].mxu1 }
  0xea   : > { %v565_v24 = vmul.f32 %v1026_v21, %v1190_v20  ;;  %v581_v25 = vmul.f32 %v1042_v23, %v1190_v20  ;;  %v429_v26 = vpop.f32.mrb[1].mxu0  ;;  %v493_v27 = vpop.f32.mrb[1].mxu1 }
  0xeb   : > { %v563_v28 = vmul.f32 %v1190_v20, %v429_v26  ;;  %v579_v29 = vmul.f32 %v1190_v20, %v493_v27  ;;  %v1027_v30 = vpop.f32.mrb[2].mxu0  ;;  %v1043_v31 = vpop.f32.mrb[2].mxu1 }
  0xec   : > { %v604_v32 = vadd.f32 %v1195_v22, %v565_v24  ;;  %v620_v33 = vadd.f32 %v1195_v22, %v581_v25  ;;  %v566_v34 = vmul.f32 %v1027_v30, %v1190_v20  ;;  %v582_v35 = vmul.f32 %v1043_v31, %v1190_v20  ;;  %v432_v36 = vpop.f32.mrb[3].mxu0  ;;  %v496_v37 = vpop.f32.mrb[3].mxu1 }
  0xed   : > { %v602_v38 = vadd.f32 %v1195_v22, %v563_v28  ;;  %v618_v39 = vadd.f32 %v1195_v22, %v579_v29  ;;  %v564_v40 = vmul.f32 %v1190_v20, %v432_v36  ;;  %v580_v41 = vmul.f32 %v1190_v20, %v496_v37 }
  0xee   : > { %v636_v42 = vmax.f32 %v604_v32, 0.0  ;;  %v652_v43 = vmax.f32 %v620_v33, 0.0  ;;  %v605_v44 = vadd.f32 %v1195_v22, %v566_v34  ;;  %v621_v45 = vadd.f32 %v1195_v22, %v582_v35 }
  0xef   : > { %v634_v46 = vmax.f32 %v602_v38, 0.0  ;;  %v650_v47 = vmax.f32 %v618_v39, 0.0  ;;  %v603_v48 = vadd.f32 %v1195_v22, %v564_v40  ;;  %v619_v49 = vadd.f32 %v1195_v22, %v580_v41 }
  0xf0   : > { %v966_v50 = vpack.c.bf16 %v636_v42, %v636_v42  ;;  %v982_v51 = vpack.c.bf16 %v652_v43, %v652_v43  ;;  %v637_v52 = vmax.f32 %v605_v44, 0.0  ;;  %v653_v53 = vmax.f32 %v621_v45, 0.0 }
  0xf1   : > { %v964_v54 = vpack.c.bf16 %v634_v46, %v634_v46  ;;  %v980_v55 = vpack.c.bf16 %v650_v47, %v650_v47  ;;  %v635_v56 = vmax.f32 %v603_v48, 0.0  ;;  %v651_v57 = vmax.f32 %v619_v49, 0.0  ;;  %v1030_v58 = vpop.f32.mrb[4].mxu0  ;;  %v1046_v59 = vpop.f32.mrb[4].mxu1 }
  0xf2   : > { %797 = vst.msk [vmem:[%s1216_s10 + $0x8] sm:$0xf] %vm794_vm1, %v966_v50  ;;  %813 = vst.msk [vmem:[%s1216_s10 + $0x48] sm:$0xf] %vm794_vm1, %v982_v51  ;;  %v967_v60 = vpack.c.bf16 %v637_v52, %v637_v52  ;;  %v983_v61 = vpack.c.bf16 %v653_v53, %v653_v53  ;;  %v569_v62 = vmul.f32 %v1030_v58, %v1190_v20  ;;  %v445_v0 = vpop.f32.mrb[5].mxu0  ;;  %v509_v1 = vpop.f32.mrb[5].mxu1 }
  0xf3   : > { %v585_v63 = vmul.f32 %v1046_v59, %v1190_v20  ;;  %795 = vst.msk [vmem:[%s1216_s10] sm:$0xf] %vm794_vm1, %v964_v54  ;;  %811 = vst.msk [vmem:[%s1216_s10 + $0x40] sm:$0xf] %vm794_vm1, %v980_v55  ;;  %v965_v2 = vpack.c.bf16 %v635_v56, %v635_v56  ;;  %v981_v3 = vpack.c.bf16 %v651_v57, %v651_v57  ;;  %v1031_v6 = vpop.f32.mrb[6].mxu0  ;;  %v1047_v7 = vpop.f32.mrb[6].mxu1 }
  0xf4   : > { %v567_v4 = vmul.f32 %v1190_v20, %v445_v0  ;;  %v583_v5 = vmul.f32 %v1190_v20, %v509_v1  ;;  %798 = vst.msk [vmem:[%s1216_s10 + $0xc] sm:$0xf] %vm794_vm1, %v967_v60  ;;  %814 = vst.msk [vmem:[%s1216_s10 + $0x4c] sm:$0xf] %vm794_vm1, %v983_v61  ;;  %v608_v8 = vadd.f32 %v1195_v22, %v569_v62  ;;  %v448_v12 = vpop.f32.mrb[7].mxu0  ;;  %v512_v13 = vpop.f32.mrb[7].mxu1 }
  0xf5   : > { %v624_v9 = vadd.f32 %v1195_v22, %v585_v63  ;;  %v570_v10 = vmul.f32 %v1031_v6, %v1190_v20  ;;  %v586_v11 = vmul.f32 %v1047_v7, %v1190_v20  ;;  %796 = vst.msk [vmem:[%s1216_s10 + $0x4] sm:$0xf] %vm794_vm1, %v965_v2  ;;  %812 = vst.msk [vmem:[%s1216_s10 + $0x44] sm:$0xf] %vm794_vm1, %v981_v3 }
  0xf6   : > { %v606_v14 = vadd.f32 %v1195_v22, %v567_v4  ;;  %v622_v15 = vadd.f32 %v1195_v22, %v583_v5  ;;  %v568_v16 = vmul.f32 %v1190_v20, %v448_v12  ;;  %v584_v17 = vmul.f32 %v1190_v20, %v512_v13 }
  0xf7   : > { %v640_v18 = vmax.f32 %v608_v8, 0.0  ;;  %v656_v19 = vmax.f32 %v624_v9, 0.0  ;;  %v609_v21 = vadd.f32 %v1195_v22, %v570_v10  ;;  %v625_v23 = vadd.f32 %v1195_v22, %v586_v11 }
  0xf8   : > { %v638_v24 = vmax.f32 %v606_v14, 0.0  ;;  %v654_v25 = vmax.f32 %v622_v15, 0.0  ;;  %v607_v26 = vadd.f32 %v1195_v22, %v568_v16  ;;  %v623_v27 = vadd.f32 %v1195_v22, %v584_v17 }
  0xf9   : > { %v970_v28 = vpack.c.bf16 %v640_v18, %v640_v18  ;;  %v986_v29 = vpack.c.bf16 %v656_v19, %v656_v19  ;;  %v641_v30 = vmax.f32 %v609_v21, 0.0  ;;  %v657_v31 = vmax.f32 %v625_v23, 0.0  ;;  %v1034_v36 = vpop.f32.mrb[8].mxu0  ;;  %v1050_v37 = vpop.f32.mrb[8].mxu1 }
  0xfa   : > { %v968_v32 = vpack.c.bf16 %v638_v24, %v638_v24  ;;  %v984_v33 = vpack.c.bf16 %v654_v25, %v654_v25  ;;  %v639_v34 = vmax.f32 %v607_v26, 0.0  ;;  %v655_v35 = vmax.f32 %v623_v27, 0.0  ;;  %v461_v42 = vpop.f32.mrb[9].mxu0  ;;  %v525_v43 = vpop.f32.mrb[9].mxu1 }
  0xfb   : > { %801 = vst.msk [vmem:[%s1216_s10 + $0x18] sm:$0xf] %vm794_vm1, %v970_v28  ;;  %817 = vst.msk [vmem:[%s1216_s10 + $0x58] sm:$0xf] %vm794_vm1, %v986_v29  ;;  %v971_v38 = vpack.c.bf16 %v641_v30, %v641_v30  ;;  %v987_v39 = vpack.c.bf16 %v657_v31, %v657_v31  ;;  %v573_v40 = vmul.f32 %v1034_v36, %v1190_v20  ;;  %v1035_v48 = vpop.f32.mrb[10].mxu0  ;;  %v1051_v49 = vpop.f32.mrb[10].mxu1 }
  0xfc   : > { %v589_v41 = vmul.f32 %v1050_v37, %v1190_v20  ;;  %799 = vst.msk [vmem:[%s1216_s10 + $0x10] sm:$0xf] %vm794_vm1, %v968_v32  ;;  %815 = vst.msk [vmem:[%s1216_s10 + $0x50] sm:$0xf] %vm794_vm1, %v984_v33  ;;  %v969_v44 = vpack.c.bf16 %v639_v34, %v639_v34  ;;  %v985_v45 = vpack.c.bf16 %v655_v35, %v655_v35  ;;  %v464_v54 = vpop.f32.mrb[11].mxu0  ;;  %v528_v55 = vpop.f32.mrb[11].mxu1 }
  0xfd   : > { %v571_v46 = vmul.f32 %v1190_v20, %v461_v42  ;;  %v587_v47 = vmul.f32 %v1190_v20, %v525_v43  ;;  %802 = vst.msk [vmem:[%s1216_s10 + $0x1c] sm:$0xf] %vm794_vm1, %v971_v38  ;;  %818 = vst.msk [vmem:[%s1216_s10 + $0x5c] sm:$0xf] %vm794_vm1, %v987_v39  ;;  %v612_v50 = vadd.f32 %v1195_v22, %v573_v40 }
  0xfe   : > { %v628_v51 = vadd.f32 %v1195_v22, %v589_v41  ;;  %v574_v52 = vmul.f32 %v1035_v48, %v1190_v20  ;;  %v590_v53 = vmul.f32 %v1051_v49, %v1190_v20  ;;  %800 = vst.msk [vmem:[%s1216_s10 + $0x14] sm:$0xf] %vm794_vm1, %v969_v44  ;;  %816 = vst.msk [vmem:[%s1216_s10 + $0x54] sm:$0xf] %vm794_vm1, %v985_v45 }
  0xff   : > { %v610_v56 = vadd.f32 %v1195_v22, %v571_v46  ;;  %v626_v57 = vadd.f32 %v1195_v22, %v587_v47  ;;  %v572_v58 = vmul.f32 %v1190_v20, %v464_v54  ;;  %v588_v59 = vmul.f32 %v1190_v20, %v528_v55 }
 0x100   : > { %v644_v60 = vmax.f32 %v612_v50, 0.0  ;;  %v660_v61 = vmax.f32 %v628_v51, 0.0  ;;  %v613_v62 = vadd.f32 %v1195_v22, %v574_v52  ;;  %v629_v63 = vadd.f32 %v1195_v22, %v590_v53 }
 0x101   : > { %v642_v0 = vmax.f32 %v610_v56, 0.0  ;;  %v658_v1 = vmax.f32 %v626_v57, 0.0  ;;  %v611_v2 = vadd.f32 %v1195_v22, %v572_v58  ;;  %v627_v3 = vadd.f32 %v1195_v22, %v588_v59  ;;  %v1038_v12 = vpop.f32.mrb[12].mxu0  ;;  %v1054_v13 = vpop.f32.mrb[12].mxu1 }
 0x102   : > { %v974_v4 = vpack.c.bf16 %v644_v60, %v644_v60  ;;  %v990_v5 = vpack.c.bf16 %v660_v61, %v660_v61  ;;  %v645_v6 = vmax.f32 %v613_v62, 0.0  ;;  %v661_v7 = vmax.f32 %v629_v63, 0.0  ;;  %v477_v18 = vpop.f32.mrb[13].mxu0  ;;  %v541_v19 = vpop.f32.mrb[13].mxu1 }
 0x103   : > { %v972_v8 = vpack.c.bf16 %v642_v0, %v642_v0  ;;  %v988_v9 = vpack.c.bf16 %v658_v1, %v658_v1  ;;  %v643_v10 = vmax.f32 %v611_v2, 0.0  ;;  %v659_v11 = vmax.f32 %v627_v3, 0.0  ;;  %v1039_v26 = vpop.f32.mrb[14].mxu0  ;;  %v1055_v27 = vpop.f32.mrb[14].mxu1 }
 0x104   : > { %805 = vst.msk [vmem:[%s1216_s10 + $0x28] sm:$0xf] %vm794_vm1, %v974_v4  ;;  %821 = vst.msk [vmem:[%s1216_s10 + $0x68] sm:$0xf] %vm794_vm1, %v990_v5  ;;  %v975_v14 = vpack.c.bf16 %v645_v6, %v645_v6  ;;  %v991_v15 = vpack.c.bf16 %v661_v7, %v661_v7  ;;  %v577_v16 = vmul.f32 %v1038_v12, %v1190_v20  ;;  %v480_v32 = vpop.f32.mrb[15].mxu0  ;;  %v544_v33 = vpop.f32.mrb[15].mxu1 }
 0x105   : > { %v593_v17 = vmul.f32 %v1054_v13, %v1190_v20  ;;  %803 = vst.msk [vmem:[%s1216_s10 + $0x20] sm:$0xf] %vm794_vm1, %v972_v8  ;;  %819 = vst.msk [vmem:[%s1216_s10 + $0x60] sm:$0xf] %vm794_vm1, %v988_v9  ;;  %v973_v21 = vpack.c.bf16 %v643_v10, %v643_v10  ;;  %v989_v23 = vpack.c.bf16 %v659_v11, %v659_v11 }
 0x106   : > { %v575_v24 = vmul.f32 %v1190_v20, %v477_v18  ;;  %v591_v25 = vmul.f32 %v1190_v20, %v541_v19  ;;  %806 = vst.msk [vmem:[%s1216_s10 + $0x2c] sm:$0xf] %vm794_vm1, %v975_v14  ;;  %822 = vst.msk [vmem:[%s1216_s10 + $0x6c] sm:$0xf] %vm794_vm1, %v991_v15  ;;  %v616_v28 = vadd.f32 %v1195_v22, %v577_v16 }
 0x107   : > { %v632_v29 = vadd.f32 %v1195_v22, %v593_v17  ;;  %v578_v30 = vmul.f32 %v1039_v26, %v1190_v20  ;;  %v594_v31 = vmul.f32 %v1055_v27, %v1190_v20  ;;  %804 = vst.msk [vmem:[%s1216_s10 + $0x24] sm:$0xf] %vm794_vm1, %v973_v21  ;;  %820 = vst.msk [vmem:[%s1216_s10 + $0x64] sm:$0xf] %vm794_vm1, %v989_v23 }
 0x108   : > { %v614_v34 = vadd.f32 %v1195_v22, %v575_v24  ;;  %v630_v35 = vadd.f32 %v1195_v22, %v591_v25  ;;  %v576_v36 = vmul.f32 %v1190_v20, %v480_v32  ;;  %v592_v37 = vmul.f32 %v1190_v20, %v544_v33 }
 0x109   : > { %v648_v38 = vmax.f32 %v616_v28, 0.0  ;;  %v664_v39 = vmax.f32 %v632_v29, 0.0  ;;  %v617_v40 = vadd.f32 %v1195_v22, %v578_v30  ;;  %v633_v41 = vadd.f32 %v1195_v22, %v594_v31 }
 0x10a   : > { %v646_v42 = vmax.f32 %v614_v34, 0.0  ;;  %v662_v43 = vmax.f32 %v630_v35, 0.0  ;;  %v615_v44 = vadd.f32 %v1195_v22, %v576_v36  ;;  %v631_v45 = vadd.f32 %v1195_v22, %v592_v37 }
 0x10b   : > { %v978_v46 = vpack.c.bf16 %v648_v38, %v648_v38  ;;  %v994_v47 = vpack.c.bf16 %v664_v39, %v664_v39  ;;  %v649_v20 = vmax.f32 %v617_v40, 0.0  ;;  %v665_v48 = vmax.f32 %v633_v41, 0.0 }
 0x10c   : > { %v976_v49 = vpack.c.bf16 %v646_v42, %v646_v42  ;;  %v992_v50 = vpack.c.bf16 %v662_v43, %v662_v43  ;;  %v647_v51 = vmax.f32 %v615_v44, 0.0  ;;  %v663_v52 = vmax.f32 %v631_v45, 0.0 }
 0x10d   : > { %809 = vst.msk [vmem:[%s1216_s10 + $0x38] sm:$0xf] %vm794_vm1, %v978_v46  ;;  %825 = vst.msk [vmem:[%s1216_s10 + $0x78] sm:$0xf] %vm794_vm1, %v994_v47  ;;  %v979_v53 = vpack.c.bf16 %v649_v20, %v649_v20  ;;  %v995_v54 = vpack.c.bf16 %v665_v48, %v665_v48 }
 0x10e   : > { %807 = vst.msk [vmem:[%s1216_s10 + $0x30] sm:$0xf] %vm794_vm1, %v976_v49  ;;  %823 = vst.msk [vmem:[%s1216_s10 + $0x70] sm:$0xf] %vm794_vm1, %v992_v50  ;;  %v977_v22 = vpack.c.bf16 %v647_v51, %v647_v51  ;;  %v993_v55 = vpack.c.bf16 %v663_v52, %v663_v52 }
 0x10f   : > { %810 = vst.msk [vmem:[%s1216_s10 + $0x3c] sm:$0xf] %vm794_vm1, %v979_v53  ;;  %826 = vst.msk [vmem:[%s1216_s10 + $0x7c] sm:$0xf] %vm794_vm1, %v995_v54 }
 0x110   : > { %808 = vst.msk [vmem:[%s1216_s10 + $0x34] sm:$0xf] %vm794_vm1, %v977_v22  ;;  %824 = vst.msk [vmem:[%s1216_s10 + $0x74] sm:$0xf] %vm794_vm1, %v993_v55 }
 0x111 PF: > { %s14_s15 = sadd.s32 1, %s1098_s15  }
 0x112   : > { %p11_p4 = scmp.ge.s32.totalorder %s14_s15, 4  }
 0x114   :  { %13 = sbr.rel (!%p11_p4) target bundleno = 1 (0x1), region = 66 }

// kernel: bottleneck_forward.7
= control target key start
LH: loop header
LB: loop body
LE: loop exit
PB: predicated region body
PF: predicated region fallthrough
CT: control target
= control target key end

     0   :  { %10 = vsyncpa [#allocation3], 0  ;;  %s853_s0 = inlined_call_operand.vmem [shape: bf16[128,16], index: 0, kind: input, shape index: {}]   ;;  %s854_s1 = inlined_call_operand.vmem [shape: bf16[16,64], index: 1, kind: input, shape index: {}]   ;;  %s855_s2 = inlined_call_operand.vmem [shape: f32[1,64], index: 2, kind: input, shape index: {}]   ;;  %s856_s3 = inlined_call_operand.vmem [shape: f32[1,64], index: 3, kind: input, shape index: {}]   ;;  %s857_s4 = inlined_call_operand.vmem [shape: bf16[128,64], index: 4, kind: input, shape index: {}]   ;;  %s858_s5 = inlined_call_operand.hbm [shape: f32[128,64], index: 5, kind: output, shape index: {}]  }
   0x1   :  { %12 = vsyncpa [#allocation3 + $0x1], 0  ;;  %s727_s18 = smov 0   ;;  %s729_s19 = smov 0  }
   0x2   :  { %s731_s20 = smov 0   ;;  %s733_s21 = smov 0  }
   0x3 LB: > { %s748_s22 = sadd.s32 4294967295, %s692_s21   ;;  %s522_s23 = sadd.s32 4294967294, %s692_s21   ;;  %s692_s21 = sphi %s733_s21, %s864_s21   ;;  %s688_s20 = sphi %s731_s20, %s863_s20   ;;  %s684_s19 = sphi %s729_s19, %s862_s19   ;;  %s680_s18 = sphi %s727_s18, %s861_s18  }
   0x4   : > { %s752_s24 = sadd.s32 1, %s692_s21   ;;  %s140_s25 = sadd.s32 1, %s688_s20 }
   0x5   : > { %s137_s26 = ssub.s32 %s692_s21, %s752_s24  ;;  %p150_p0 = scmp.ne.s32.totalorder %s688_s20, %s684_s19 }
   0x6   : > { %p138_p1 = scmp.eq.s32.totalorder %s137_s26, 0  ;;  %p151_p2 = scmp.eq.s32.totalorder %s748_s22, 1 }
   0x7   : > { %p156_p3 = scmp.ne.s32.totalorder %s684_s19, %s680_s18  ;;  %p157_p4 = scmp.eq.s32.totalorder %s522_s23, 1 }
   0x8   : > { %s763_s27 = scalar_select %p138_p1, %s688_s20, %s140_s25  }
   0x9   : > { %p765_p5 = por %p151_p2, %p150_p0  ;;  %p769_p6 = por %p157_p4, %p156_p3 }
   0xa   : > { %p525_p7 = scmp.ge.s32.totalorder %s692_s21, 1  ;;  %p202_p8 = scmp.lt.s32.totalorder %s692_s21, 3 }
   0xc   : > { %p203_p9 = pnand %p525_p7, %p202_p8 }
   0xd   : > { %v625_v0 = vld [vmem:[%s854_s1] sm:$0xff] (!%p203_p9)   ;;  %s527_s7 = sshll.u32 (!%p203_p9), %s748_s22, 3  ;;  %vm285_vm0 = vcmask (!%p203_p9), 130048   ;;  %s232_s17 = sand.u32 (!%p203_p9), 1, %s684_s19   ;;  %vm425_vm1 = vcmask (!%p203_p9), 523264  }
   0xe   : > { %206 = sbr.rel (%p203_p9) target bundleno = 264 (0x108), region = 40  ;;  %p236_p10 = scmp.lt.s32.totalorder (!%p203_p9), %s527_s7, 15  ;;  %572 = vmatprep.subr.bf16.mxu0 (!%p203_p9), %v625_v0  ;;  %582 = vmatprep.subr.bf16.mxu1 (!%p203_p9), %v625_v0  ;;  %v540_v8 = vld [vmem:[%s855_s2] ss:$0 sm:$0xff] (!%p203_p9) }
   0xf   : > { %573 = vmatpush3.bf16.msra.mxu0 (!%p203_p9), %v625_v0  ;;  %583 = vmatpush3.bf16.msra.mxu1 (!%p203_p9), %v625_v0  ;;  %v541_v11 = vld [vmem:[%s856_s3] ss:$0 sm:$0xff] (!%p203_p9)  ;;  %s526_s26 = sshll.u32 (!%p203_p9), %s232_s17, 6  ;;  %s547_s30 = sshll.u32 (!%p203_p9), %s748_s22, 10 }
  0x10   : > { %s234_s6 = scalar_lea.vmem (!%p203_p9), [#allocation2], %s526_s26  ;;  %s801_s9 = scalar_lea.hbm (!%p203_p9), %s858_s5, %s547_s30 }
  0x11   : > { %s812_s10 = scalar_lea.sflag (!%p203_p9), [#allocation3], %s232_s17  ;;  %s694_s12 = smov (!%p203_p9), [#allocation2]  }
  0x12   : > { %s634_s13 = sshll.u32 (!%p203_p9), %s694_s12, 4  ;;  %s635_s13 = int_to_ptr.vmem [resolvable:$false] %s634_s13 }
  0x15   : > { %s866_s7 = smov (!%p236_p10, %s527_s7), 15 }
  0x16   : > { %s528_s8 = sshll.u32 %s866_s7, 2  ;;  %s448_s7 = sshll.u32 %s234_s6, 4  ;;  %s803_s7 = int_to_ptr.vmem [resolvable:$true] %s448_s7 }
  0x17   : > { %s239_s11 = scalar_lea.vmem %s853_s0, %s528_s8  ;;  %s245_s14 = scalar_lea.vmem %s857_s4, %s528_s8 }
  0x18   : > { %v626_v1 = vld [vmem:[%s239_s11] sm:$0xff]   ;;  %v627_v2 = vld [vmem:[%s239_s11 + $0x10] sm:$0xff]   ;;  %v628_v3 = vld [vmem:[%s239_s11 + $0x8] sm:$0xff]   ;;  %p637_p0 = scmp.lt.s32.totalorder %s803_s7, %s635_s13 }
  0x19   : > { %574 = vmatprep.mubr.msk.bf16.mxu0 %vm285_vm0, %v626_v1  ;;  %578 = vmatprep.mubr.msk.bf16.mxu1 %vm285_vm0, %v627_v2  ;;  %v629_v4 = vld [vmem:[%s239_s11 + $0x18] sm:$0xff]   ;;  %v564_v5 = vld [vmem:[%s245_s14 + $0x8] sm:$0xff]   ;;  %v549_v7 = vld [vmem:[%s245_s14] sm:$0xff]   ;;  %s630_s11 = scalar_lea.vmem %s803_s7, 1024 }
  0x1a   : > { %575 = vmatmul.mubr.msk.bf16.vlgmr.msra.gmra.mrb[0].mxu0 %vm285_vm0, %v628_v3  ;;  %579 = vmatmul.mubr.msk.bf16.vlgmr.msra.gmra.mrb[0].mxu1 %vm285_vm0, %v629_v4  ;;  %v566_v6 = vld [vmem:[%s245_s14 + $0x18] sm:$0xff]   ;;  %v565_v9 = vld [vmem:[%s245_s14 + $0x10] sm:$0xff]   ;;  %v554_v12 = vunpack.c.l.bf16 %v564_v5  ;;  %v550_v14 = vunpack.c.l.bf16 %v549_v7  ;;  %v555_v19 = vunpack.c.h.bf16 %v564_v5  ;;  %v551_v25 = vunpack.c.h.bf16 %v549_v7  ;;  %p631_p11 = scmp.ne.s32.totalorder %s803_s7, %s630_s11  ;;  %s636_s14 = scalar_lea.vmem %s635_s13, 2048 }
  0x1b   : > { %v562_v13 = vunpack.c.l.bf16 %v566_v6  ;;  %v558_v18 = vunpack.c.l.bf16 %v565_v9  ;;  %v563_v20 = vunpack.c.h.bf16 %v566_v6  ;;  %v559_v31 = vunpack.c.h.bf16 %v565_v9  ;;  %p638_p1 = scmp.lt.s32.totalorder %s636_s14, %s630_s11 }
  0x1c   : > { %p632_p12 = pnand %p631_p11, %p765_p5 }
  0x1d   : > { %p639_p2 = por %p638_p1, %p637_p0 }
  0x1e   : > { %p633_p13 = pneg %p632_p12 }
  0x20   : > { %p640_p3 = pnand %p639_p2, %p633_p13 }
  0xed   : > { %v576_v10 = vpop.f32.mrb[0].mxu0  ;;  %v580_v16 = vpop.f32.mrb[0].mxu1 }
  0xee   : > { %v372_v15 = vmul.f32 %v576_v10, %v540_v8  ;;  %v332_v17 = vpop.f32.mrb[1].mxu0  ;;  %v376_v21 = vmul.f32 %v580_v16, %v540_v8  ;;  %v348_v23 = vpop.f32.mrb[1].mxu1 }
  0xef   : > { %v370_v22 = vmul.f32 %v540_v8, %v332_v17  ;;  %v577_v24 = vpop.f32.mrb[2].mxu0  ;;  %v374_v27 = vmul.f32 %v540_v8, %v348_v23  ;;  %v581_v29 = vpop.f32.mrb[2].mxu1 }
  0xf0   : > { %v387_v26 = vadd.f32 %v541_v11, %v372_v15  ;;  %v373_v28 = vmul.f32 %v577_v24, %v540_v8  ;;  %v335_v30 = vpop.f32.mrb[3].mxu0  ;;  %v391_v32 = vadd.f32 %v541_v11, %v376_v21  ;;  %v377_v34 = vmul.f32 %v581_v29, %v540_v8  ;;  %v351_v36 = vpop.f32.mrb[3].mxu1 }
  0xf1   : > { %v385_v33 = vadd.f32 %v541_v11, %v370_v22  ;;  %v371_v35 = vmul.f32 %v540_v8, %v335_v30  ;;  %v389_v38 = vadd.f32 %v541_v11, %v374_v27  ;;  %v375_v40 = vmul.f32 %v540_v8, %v351_v36 }
  0xf2   : > { %v411_v37 = vadd.f32 %v554_v12, %v387_v26  ;;  %v388_v39 = vadd.f32 %v541_v11, %v373_v28  ;;  %v415_v41 = vadd.f32 %v562_v13, %v391_v32  ;;  %v392_v43 = vadd.f32 %v541_v11, %v377_v34 }
  0xf3   : > { %v409_v42 = vadd.f32 %v550_v14, %v385_v33  ;;  %v386_v44 = vadd.f32 %v541_v11, %v371_v35  ;;  %v413_v46 = vadd.f32 %v558_v18, %v389_v38  ;;  %v390_v48 = vadd.f32 %v541_v11, %v375_v40 }
  0xf4   : > { %v419_v45 = vmax.f32 %v411_v37, 0.0  ;;  %v412_v47 = vadd.f32 %v555_v19, %v388_v39  ;;  %v423_v49 = vmax.f32 %v415_v41, 0.0  ;;  %v416_v51 = vadd.f32 %v563_v20, %v392_v43 }
  0xf5   : > { %v417_v50 = vmax.f32 %v409_v42, 0.0  ;;  %v410_v52 = vadd.f32 %v551_v25, %v386_v44  ;;  %v421_v53 = vmax.f32 %v413_v46, 0.0  ;;  %v414_v55 = vadd.f32 %v559_v31, %v390_v48 }
  0xf6   : > { %428 = vst.msk [vmem:[%s234_s6 + $0x10] sm:$0xff] %vm425_vm1, %v419_v45  ;;  %v420_v54 = vmax.f32 %v412_v47, 0.0  ;;  %432 = vst.msk [vmem:[%s234_s6 + $0x30] sm:$0xff] %vm425_vm1, %v423_v49  ;;  %v424_v56 = vmax.f32 %v416_v51, 0.0 }
  0xf7   : > { %426 = vst.msk [vmem:[%s234_s6] sm:$0xff] %vm425_vm1, %v417_v50  ;;  %v418_v57 = vmax.f32 %v410_v52, 0.0  ;;  %430 = vst.msk [vmem:[%s234_s6 + $0x20] sm:$0xff] %vm425_vm1, %v421_v53  ;;  %v422_v58 = vmax.f32 %v414_v55, 0.0 }
  0xf8   : > { %429 = vst.msk [vmem:[%s234_s6 + $0x18] sm:$0xff] %vm425_vm1, %v420_v54  ;;  %433 = vst.msk [vmem:[%s234_s6 + $0x38] sm:$0xff] %vm425_vm1, %v424_v56 }
  0xf9   : > { %427 = vst.msk [vmem:[%s234_s6 + $0x8] sm:$0xff] %vm425_vm1, %v418_v57  ;;  %431 = vst.msk [vmem:[%s234_s6 + $0x28] sm:$0xff] %vm425_vm1, %v422_v58 }
  0xfa   : > { %643 = shalt.err (!%p640_p3)
}
  0xfb   : > { %s644_s15 = scalar_lea.hbm %s801_s9, 1024  ;;  %s648_s23 = scalar_lea.hbm %s858_s5, 2048 }
  0xfc   : > { %p645_p4 = scmp.ne.s32.totalorder %s801_s9, %s644_s15  ;;  %p649_p9 = scmp.lt.u32.totalorder %s801_s9, %s858_s5 }
  0xfd   : > { %p650_p10 = scmp.lt.u32.totalorder %s648_s23, %s644_s15  ;;  %p652_p12 = scmp.lt.u32.totalorder %s644_s15, %s801_s9 }
  0xfe   : > { %p646_p7 = pnand %p645_p4, %p765_p5 }
  0xff   : > { %p651_p11 = por %p650_p10, %p649_p9 }
 0x100   : > { %p647_p8 = pneg %p646_p7 }
 0x101   : > { %p653_p13 = por %p652_p12, %p651_p11 }
 0x103   : > { %p654_p0 = pnand %p653_p13, %p647_p8 }
 0x105   : > { %657 = shalt.err (!%p654_p0)
}
 0x106   : > { %s695_s30 = smov 128   ;;  %s696_s6 = smov 8  }
 0x107   : > { %584 = dma.vmem_to_hbm [thread:$0]  (%p765_p5), %s803_s7, 1024, %s801_s9, %s812_s10, %s695_s30, %s695_s30, %s696_s6  }
 0x108 PF: > { %p590_p1 = scmp.ge.s32.totalorder %s692_s21, 2  ;;  %s463_s22 = sand.u32 1, %s680_s18  }
 0x109   : > { %s464_s8 = scalar_lea.sflag [#allocation3], %s463_s22 }
 0x10a   : > { %p587_p2 = pnand %p590_p1, %p769_p6 }
 0x10c   : > { %675 = dma.done.wait (!%p587_p2), %s464_s8, 1024  }
 0x10d   : > { %677 = vsyncadd (!%p587_p2), %s464_s8, 4294966272  ;;  %p15_p3 = scmp.ge.s32.totalorder %s752_s24, 4   ;;  %s861_s18 = smov %s684_s19 }
 0x10e   : > { %s862_s19 = smov %s688_s20  ;;  %s863_s20 = smov %s763_s27 }
 0x10f   : > { %s864_s21 = smov %s752_s24  ;;  %17 = sbr.rel (!%p15_p3) target bundleno = 3 (0x3), region = 78 }
 0x116   :  { %469 = vsyncpa [#allocation3], 1 }
 0x117   :  { %471 = vsyncpa [#allocation3 + $0x1], 1 }

// kernel: bottleneck_forward.6
= control target key start
LH: loop header
LB: loop body
LE: loop exit
PB: predicated region body
PF: predicated region fallthrough
CT: control target
= control target key end

     0   :  { %s589_s15 = smov 0   ;;  %s643_s0 = inlined_call_operand.vmem [shape: bf16[128,64], index: 0, kind: input, shape index: {}]   ;;  %s644_s1 = inlined_call_operand.vmem [shape: bf16[64,64], index: 1, kind: input, shape index: {}]   ;;  %s645_s2 = inlined_call_operand.vmem [shape: f32[1,64], index: 2, kind: input, shape index: {}]   ;;  %s646_s3 = inlined_call_operand.vmem [shape: f32[1,64], index: 3, kind: input, shape index: {}]   ;;  %s647_s4 = inlined_call_operand.vmem [shape: bf16[128,64], index: 4, kind: output, shape index: {}]  }
   0x1 LB: > { %s467_s16 = sadd.s32 4294967295, %s562_s15   ;;  %p471_p0 = scmp.ge.s32.totalorder %s562_s15, 1  ;;  %s562_s15 = sphi %s589_s15, %s14_s15  }
   0x2   : > { %p163_p1 = scmp.lt.s32.totalorder %s562_s15, 3 }
   0x4   : > { %p164_p2 = pnand %p471_p0, %p163_p1 }
   0x5   : > { %v548_v0 = vld [vmem:[%s644_s1] sm:$0xff] (!%p164_p2)   ;;  %s472_s19 = sshll.u32 (!%p164_p2), %s467_s16, 3  ;;  %v549_v1 = vld [vmem:[%s644_s1 + $0x8] sm:$0xff] (!%p164_p2)   ;;  %v550_v2 = vld [vmem:[%s644_s1 + $0x10] sm:$0xff] (!%p164_p2)   ;;  %vm262_vm0 = vcmask (!%p164_p2), 523264   ;;  %vm402_vm1 = vcmask (!%p164_p2), 519168  }
   0x6   : > { %167 = sbr.rel (%p164_p2) target bundleno = 244 (0xf4), region = 36  ;;  %p190_p3 = scmp.lt.s32.totalorder (!%p164_p2), %s472_s19, 15  ;;  %516 = vmatprep.subr.bf16.mxu0 (!%p164_p2), %v548_v0  ;;  %532 = vmatprep.subr.bf16.mxu1 (!%p164_p2), %v548_v0  ;;  %v551_v3 = vld [vmem:[%s644_s1 + $0x18] sm:$0xff] (!%p164_p2)   ;;  %v488_v8 = vld [vmem:[%s645_s2] ss:$0 sm:$0xff] (!%p164_p2) }
   0x7   : > { %517 = vmatpush3.bf16.msra.mxu0 (!%p164_p2), %v548_v0  ;;  %536 = vmatpush3.bf16.msra.mxu1 (!%p164_p2), %v548_v0  ;;  %v489_v10 = vld [vmem:[%s646_s3] ss:$0 sm:$0xff] (!%p164_p2) }
   0x8   : > { %518 = vmatprep.subr.bf16.mxu0 (!%p164_p2), %v549_v1  ;;  %533 = vmatprep.subr.bf16.mxu1 (!%p164_p2), %v549_v1 }
   0xb   : > { %519 = vmatpush3.bf16.msra.mxu0 (!%p164_p2), %v549_v1  ;;  %537 = vmatpush3.bf16.msra.mxu1 (!%p164_p2), %v549_v1 }
   0xc   : > { %520 = vmatprep.subr.bf16.mxu0 (!%p164_p2), %v550_v2  ;;  %534 = vmatprep.subr.bf16.mxu1 (!%p164_p2), %v550_v2 }
   0xd   : > { %s649_s19 = smov (!%p190_p3, %s472_s19), 15 }
   0xe   : > { %s473_s24 = sshll.u32 %s649_s19, 2 }
   0xf   : > { %s193_s29 = scalar_lea.vmem %s643_s0, %s473_s24  ;;  %521 = vmatpush3.bf16.msra.mxu0 %v550_v2  ;;  %538 = vmatpush3.bf16.msra.mxu1 %v550_v2  ;;  %s199_s10 = scalar_lea.vmem %s647_s4, %s473_s24 }
  0x10   : > { %v552_v4 = vld [vmem:[%s193_s29] sm:$0xff]   ;;  %v553_v5 = vld [vmem:[%s193_s29 + $0x10] sm:$0xff]   ;;  %522 = vmatprep.subr.bf16.mxu0 %v551_v3  ;;  %535 = vmatprep.subr.bf16.mxu1 %v551_v3  ;;  %v554_v6 = vld [vmem:[%s193_s29 + $0x8] sm:$0xff]  }
  0x11   : > { %524 = vmatprep.mubr.msk.bf16.mxu0 %vm262_vm0, %v552_v4  ;;  %528 = vmatprep.mubr.msk.bf16.mxu1 %vm262_vm0, %v553_v5  ;;  %v555_v7 = vld [vmem:[%s193_s29 + $0x18] sm:$0xff]  }
  0x13   : > { %523 = vmatpush3.bf16.msra.mxu0 %v551_v3  ;;  %539 = vmatpush3.bf16.msra.mxu1 %v551_v3 }
  0x16   : > { %525 = vmatmul.mubr.msk.bf16.vlgmr.msra.gmra.mrb[0].mxu0 %vm262_vm0, %v554_v6  ;;  %529 = vmatmul.mubr.msk.bf16.vlgmr.msra.gmra.mrb[0].mxu1 %vm262_vm0, %v555_v7 }
  0xe9   : > { %v526_v9 = vpop.f32.mrb[0].mxu0  ;;  %v530_v11 = vpop.f32.mrb[0].mxu1 }
  0xea   : > { %v349_v12 = vmul.f32 %v526_v9, %v488_v8  ;;  %v353_v13 = vmul.f32 %v530_v11, %v488_v8  ;;  %v309_v14 = vpop.f32.mrb[1].mxu0  ;;  %v325_v15 = vpop.f32.mrb[1].mxu1 }
  0xeb   : > { %v347_v16 = vmul.f32 %v488_v8, %v309_v14  ;;  %v351_v17 = vmul.f32 %v488_v8, %v325_v15  ;;  %v527_v18 = vpop.f32.mrb[2].mxu0  ;;  %v531_v19 = vpop.f32.mrb[2].mxu1 }
  0xec   : > { %v364_v20 = vadd.f32 %v489_v10, %v349_v12  ;;  %v368_v21 = vadd.f32 %v489_v10, %v353_v13  ;;  %v350_v22 = vmul.f32 %v527_v18, %v488_v8  ;;  %v354_v23 = vmul.f32 %v531_v19, %v488_v8  ;;  %v312_v24 = vpop.f32.mrb[3].mxu0  ;;  %v328_v25 = vpop.f32.mrb[3].mxu1 }
  0xed   : > { %v362_v26 = vadd.f32 %v489_v10, %v347_v16  ;;  %v366_v27 = vadd.f32 %v489_v10, %v351_v17  ;;  %v348_v28 = vmul.f32 %v488_v8, %v312_v24  ;;  %v352_v29 = vmul.f32 %v488_v8, %v328_v25 }
  0xee   : > { %v502_v30 = vpack.c.bf16 %v364_v20, %v364_v20  ;;  %v506_v31 = vpack.c.bf16 %v368_v21, %v368_v21  ;;  %v365_v32 = vadd.f32 %v489_v10, %v350_v22  ;;  %v369_v33 = vadd.f32 %v489_v10, %v354_v23 }
  0xef   : > { %v500_v34 = vpack.c.bf16 %v362_v26, %v362_v26  ;;  %v504_v35 = vpack.c.bf16 %v366_v27, %v366_v27  ;;  %v363_v36 = vadd.f32 %v489_v10, %v348_v28  ;;  %v367_v37 = vadd.f32 %v489_v10, %v352_v29 }
  0xf0   : > { %405 = vst.msk [vmem:[%s199_s10 + $0x8] sm:$0xf] %vm402_vm1, %v502_v30  ;;  %409 = vst.msk [vmem:[%s199_s10 + $0x18] sm:$0xf] %vm402_vm1, %v506_v31  ;;  %v503_v38 = vpack.c.bf16 %v365_v32, %v365_v32  ;;  %v507_v39 = vpack.c.bf16 %v369_v33, %v369_v33 }
  0xf1   : > { %403 = vst.msk [vmem:[%s199_s10] sm:$0xf] %vm402_vm1, %v500_v34  ;;  %407 = vst.msk [vmem:[%s199_s10 + $0x10] sm:$0xf] %vm402_vm1, %v504_v35  ;;  %v501_v40 = vpack.c.bf16 %v363_v36, %v363_v36  ;;  %v505_v41 = vpack.c.bf16 %v367_v37, %v367_v37 }
  0xf2   : > { %406 = vst.msk [vmem:[%s199_s10 + $0xc] sm:$0xf] %vm402_vm1, %v503_v38  ;;  %410 = vst.msk [vmem:[%s199_s10 + $0x1c] sm:$0xf] %vm402_vm1, %v507_v39 }
  0xf3   : > { %404 = vst.msk [vmem:[%s199_s10 + $0x4] sm:$0xf] %vm402_vm1, %v501_v40  ;;  %408 = vst.msk [vmem:[%s199_s10 + $0x14] sm:$0xf] %vm402_vm1, %v505_v41 }
  0xf4 PF: > { %s14_s15 = sadd.s32 1, %s562_s15  }
  0xf5   : > { %p11_p4 = scmp.ge.s32.totalorder %s14_s15, 4  }
  0xf7   :  { %13 = sbr.rel (!%p11_p4) target bundleno = 1 (0x1), region = 66 }

// kernel: bottleneck_forward.5
= control target key start
LH: loop header
LB: loop body
LE: loop exit
PB: predicated region body
PF: predicated region fallthrough
CT: control target
= control target key end

     0   :  { %s6624_s15 = smov 0   ;;  %s8482_s0 = inlined_call_operand.vmem [shape: bf16[2,18,18,16], index: 0, kind: input, shape index: {}]   ;;  %s8483_s1 = inlined_call_operand.vmem [shape: bf16[9,16,16], index: 1, kind: input, shape index: {}]   ;;  %s8484_s2 = inlined_call_operand.vmem [shape: f32[1,16], index: 2, kind: input, shape index: {}]   ;;  %s8485_s3 = inlined_call_operand.vmem [shape: f32[1,16], index: 3, kind: input, shape index: {}]   ;;  %s8486_s4 = inlined_call_operand.vmem [shape: bf16[2,16,16,16], index: 4, kind: output, shape index: {}]  }
   0x1 LB: > { %s5119_s16 = sadd.s32 4294967295, %s6597_s15   ;;  %p5123_p0 = scmp.ge.s32.totalorder %s6597_s15, 1  ;;  %s6597_s15 = sphi %s6624_s15, %s14_s15  }
   0x2   : > { %p162_p1 = scmp.lt.s32.totalorder %s6597_s15, 3 }
   0x4   : > { %p163_p2 = pnand %p5123_p0, %p162_p1 }
   0x6   : > { %166 = sbr.rel (%p163_p2) target bundleno = 591 (0x24f), region = 36 }
   0xd   : > { %v6475_v0 = vld [vmem:[%s8483_s1 + $0x8] sm:$0xff]   ;;  %p188_p3 = scmp.lt.s32.totalorder %s5119_s16, 1  ;;  %v6476_v1 = vld [vmem:[%s8483_s1 + $0x20] sm:$0xff]   ;;  %vm249_vm0 = vsmask.f32 3328  ;;  %vm693_vm3 = vcmask 130048  }
   0xe   : > { %5902 = vmatprep.subr.bf16.mxu1 %v6475_v0  ;;  %v6643_v2 = vld [vmem:[%s8483_s1] sm:$0xff]   ;;  %6038 = vmatprep.subr.bf16.mxu0 %v6476_v1  ;;  %v6650_v3 = vld [vmem:[%s8483_s1 + $0x28] sm:$0xff]   ;;  %vm250_vm1 = vsmask.f32 7440  ;;  %vm1246_vm4 = vcmask 1042432   ;;  %vm1247_vm5 = vcmask 1046532  }
   0xf   : > { %s8552_s16 = smov (!%p188_p3, %s5119_s16), 1  ;;  %5903 = vmatpush3.bf16.msra.mxu1 %v6475_v0  ;;  %6039 = vmatpush3.bf16.msra.mxu0 %v6476_v1  ;;  %vm6674_vm2 = vmor %vm249_vm0, %vm250_vm1  ;;  %vm5031_vm7 = vcmask 125952  }
  0x10   : > { %s6466_s23 = smul.u32 216, %s8552_s16  ;;  %5936 = vmatprep.subr.bf16.mxu1 %v6643_v2  ;;  %6072 = vmatprep.subr.bf16.mxu0 %v6650_v3  ;;  %vm6896_vm6 = vmor %vm1246_vm4, %vm1247_vm5 }
  0x12   : > { %s6655_s28 = scalar_lea.vmem %s8482_s0, %s6466_s23  ;;  %s5716_s23 = sshll.u32 %s8552_s16, 7 }
  0x13   : > { %v199_v4 = vld [vmem:[%s6655_s28] sm:$0xf]  ;;  %v200_v5 = vld [vmem:[%s6655_s28 + $0x4] sm:$0xf]  ;;  %v233_v6 = vld [vmem:[%s6655_s28 + $0x8] sm:$0x1]  ;;  %s8349_s26 = scalar_lea.vmem %s8486_s4, %s5716_s23 }
  0x14   : > { %v253_v7 = vshrl.u32 %v199_v4, 16  ;;  %v256_v8 = vshll.u32 %v199_v4, 16  ;;  %v262_v9 = vshll.u32 %v200_v5, 16  ;;  %v266_v10 = vshrl.u32 %v200_v5, 16  ;;  %v5313_v11 = vld [vmem:[%s6655_s28 + $0xc] sm:$0xf] }
  0x15   : > { %v272_v12 = vshll.u32 %v233_v6, 16  ;;  %v6663_v13 = vld [vmem:[%s6655_s28 + $0x10] sm:$0xf]  ;;  %v6666_v14 = vld [vmem:[%s6655_s28 + $0x14] sm:$0x1]  ;;  %v2071_v20 = vshrl.u32 %v5313_v11, 16 }
  0x16   : > { %v255_v15 = vrot.slane %v253_v7, 4  ;;  %v258_v16 = vrot.slane %v256_v8, 5  ;;  %v264_v17 = vrot.slane %v262_v9, 5  ;;  %v268_v18 = vrot.slane %v266_v10, 4  ;;  %v201_v27 = vld [vmem:[%s6655_s28 + $0xc] sm:$0xf] }
  0x17   : > { %v274_v19 = vrot.slane %v272_v12, 5  ;;  %v2074_v21 = vshll.u32 %v5313_v11, 16  ;;  %v2080_v22 = vshll.u32 %v6663_v13, 16  ;;  %v2084_v25 = vshrl.u32 %v6663_v13, 16  ;;  %v202_v32 = vld [vmem:[%s6655_s28 + $0x10] sm:$0xf] }
  0x18   : > { %v259_v23 = vor.u32 %v258_v16, %v255_v15  ;;  %v269_v24 = vor.u32 %v268_v18, %v264_v17  ;;  %v2090_v26 = vshll.u32 %v6666_v14, 16  ;;  %v2073_v29 = vrot.slane %v2071_v20, 4  ;;  %v234_v38 = vld [vmem:[%s6655_s28 + $0x14] sm:$0x1]  ;;  %v5316_v49 = vld [vmem:[%s6655_s28 + $0x18] sm:$0xf] }
  0x19   : > { %v2076_v30 = vrot.slane %v2074_v21, 5  ;;  %v2082_v31 = vrot.slane %v2080_v22, 5  ;;  %v2086_v35 = vrot.slane %v2084_v25, 4  ;;  %v277_v39 = vshrl.u32 %v201_v27, 16  ;;  %v6686_v54 = vld [vmem:[%s6655_s28 + $0x1c] sm:$0xf] }
  0x1a   : > { %v260_v33 = vrot.slane %v259_v23, 4  ;;  %v270_v34 = vrot.slane %v269_v24, 4  ;;  %v2092_v37 = vrot.slane %v2090_v26, 5  ;;  %v280_v40 = vshll.u32 %v201_v27, 16  ;;  %v6694_v59 = vld [vmem:[%s6655_s28 + $0x20] sm:$0x1] }
  0x1b   : > { %v2077_v36 = vor.u32 %v2076_v30, %v2073_v29  ;;  %v2087_v43 = vor.u32 %v2086_v35, %v2082_v31  ;;  %v286_v44 = vshll.u32 %v202_v32, 16  ;;  %v279_v47 = vrot.slane %v277_v39, 4  ;;  %v203_v10 = vld [vmem:[%s6655_s28 + $0x18] sm:$0xf]  ;;  %v235_v24 = vld [vmem:[%s6655_s28 + $0x20] sm:$0x1] }
  0x1c   : > { %v265_v41 = vsel %vm6674_vm2, %v260_v33, %v264_v17  ;;  %v275_v42 = vsel %vm6674_vm2, %v270_v34, %v274_v19  ;;  %v282_v48 = vrot.slane %v280_v40, 5  ;;  %v290_v52 = vshrl.u32 %v202_v32, 16  ;;  %v204_v17 = vld [vmem:[%s6655_s28 + $0x1c] sm:$0xf]  ;;  %v5319_v32 = vld [vmem:[%s6655_s28 + $0x24] sm:$0xf] }
  0x1d   : > { %v5129_v45 = vcombine.low %v265_v41, %v275_v42  ;;  %v2078_v46 = vrot.slane %v2077_v36, 4  ;;  %v2088_v50 = vrot.slane %v2087_v43, 4  ;;  %v288_v51 = vrot.slane %v286_v44, 5 }
  0x1e   : > { %v296_v53 = vshll.u32 %v234_v38, 16  ;;  %v2818_v56 = vrot.slane %v6663_v13, 5  ;;  %v2821_v57 = vrot.slane %v6666_v14, 5  ;;  %v283_v58 = vor.u32 %v282_v48, %v279_v47  ;;  %v6481_v38 = vld [vmem:[%s8483_s1 + $0x10] sm:$0xff]   ;;  %v6929_v14 = vld [vmem:[%s6655_s28 + $0x7c] sm:$0xf] }
  0x1f   : > { %5904 = vmatprep.mubr.msk.bf16.mxu1 %vm693_vm3, %v5129_v45  ;;  %v2083_v55 = vsel %vm6674_vm2, %v2078_v46, %v2082_v31  ;;  %v2093_v60 = vsel %vm6674_vm2, %v2088_v50, %v2092_v37  ;;  %v292_v61 = vrot.slane %v290_v52, 4  ;;  %v2095_v63 = vshrl.u32 %v5316_v49, 16  ;;  %v6717_v37 = vld [vmem:[%s6655_s28 + $0x28] sm:$0xf]  ;;  %v6726_v45 = vld [vmem:[%s6655_s28 + $0x2c] sm:$0x1] }
  0x20   : > { %v298_v62 = vrot.slane %v296_v53, 5  ;;  %v5363_v0 = vcombine.low %v2083_v55, %v2093_v60  ;;  %v284_v1 = vrot.slane %v283_v58, 4  ;;  %v2098_v4 = vshll.u32 %v5316_v49, 16  ;;  %v205_v52 = vld [vmem:[%s6655_s28 + $0x24] sm:$0xf] }
  0x21   : > { %v2104_v5 = vshll.u32 %v6686_v54, 16  ;;  %v293_v6 = vor.u32 %v292_v61, %v288_v51  ;;  %v2097_v7 = vrot.slane %v2095_v63, 4  ;;  %v2108_v8 = vshrl.u32 %v6686_v54, 16  ;;  %v206_v61 = vld [vmem:[%s6655_s28 + $0x28] sm:$0xf] }
  0x22   : > { %v2114_v9 = vshll.u32 %v6694_v59, 16  ;;  %6040 = vmatprep.mubr.msk.bf16.mxu0 %vm693_vm3, %v5363_v0  ;;  %v289_v11 = vsel %vm6674_vm2, %v284_v1, %v288_v51  ;;  %v2100_v12 = vrot.slane %v2098_v4, 5  ;;  %v2825_v16 = vrot.slane %v6686_v54, 5 }
  0x23   : > { %v2106_v15 = vrot.slane %v2104_v5, 5  ;;  %v294_v18 = vrot.slane %v293_v6, 4  ;;  %v2110_v19 = vrot.slane %v2108_v8, 4  ;;  %v2828_v21 = vrot.slane %v6694_v59, 5  ;;  %v236_v6 = vld [vmem:[%s6655_s28 + $0x2c] sm:$0x1] }
  0x24   : > { %v2116_v20 = vrot.slane %v2114_v9, 5  ;;  %v2101_v22 = vor.u32 %v2100_v12, %v2097_v7  ;;  %v6710_v23 = vrot.slane %v2825_v16, 4  ;;  %v301_v25 = vshrl.u32 %v203_v10, 16 }
  0x25   : > { %v304_v26 = vshll.u32 %v203_v10, 16  ;;  %v299_v27 = vsel %vm6674_vm2, %v294_v18, %v298_v62  ;;  %v2111_v29 = vor.u32 %v2110_v19, %v2106_v15  ;;  %v310_v30 = vshll.u32 %v204_v17, 16  ;;  %v6737_v62 = vld [vmem:[%s8483_s1 + $0x30] sm:$0xff]  }
  0x26   : > { %v314_v31 = vshrl.u32 %v204_v17, 16  ;;  %v5130_v33 = vcombine.low %v289_v11, %v299_v27  ;;  %v2102_v34 = vrot.slane %v2101_v22, 4  ;;  %v303_v35 = vrot.slane %v301_v25, 4  ;;  %v6750_v22 = vld [vmem:[%s6655_s28 + $0x34] sm:$0xf] }
  0x27   : > { %v306_v36 = vrot.slane %v304_v26, 5  ;;  %v2112_v39 = vrot.slane %v2111_v29, 4  ;;  %v312_v40 = vrot.slane %v310_v30, 5  ;;  %v320_v42 = vshll.u32 %v235_v24, 16  ;;  %v6757_v30 = vld [vmem:[%s6655_s28 + $0x38] sm:$0x1] }
  0x28   : > { %v316_v41 = vrot.slane %v314_v31, 4  ;;  %5905 = vmatmul.mubr.msk.bf16.vlgmr.msra.gmra.mrb[0].mxu1 %vm693_vm3, %v5130_v33  ;;  %v2107_v43 = vsel %vm6674_vm2, %v2102_v34, %v2106_v15  ;;  %v2119_v46 = vshrl.u32 %v5319_v32, 16  ;;  %v2122_v47 = vshll.u32 %v5319_v32, 16  ;;  %v5322_v15 = vld [vmem:[%s6655_s28 + $0x30] sm:$0xf] }
  0x29   : > { %v307_v44 = vor.u32 %v306_v36, %v303_v35  ;;  %5937 = vmatpush3.bf16.msra.mxu1 %v6643_v2  ;;  %v2117_v48 = vsel %vm6674_vm2, %v2112_v39, %v2116_v20  ;;  %v322_v50 = vrot.slane %v320_v42, 5  ;;  %v2128_v51 = vshll.u32 %v6717_v37, 16  ;;  %v207_v42 = vld [vmem:[%s6655_s28 + $0x30] sm:$0xf] }
  0x2a   : > { %v317_v49 = vor.u32 %v316_v41, %v312_v40  ;;  %v5364_v53 = vcombine.low %v2107_v43, %v2117_v48  ;;  %v2121_v58 = vrot.slane %v2119_v46, 4  ;;  %v2124_v60 = vrot.slane %v2122_v47, 5  ;;  %5970 = vmatprep.subr.bf16.mxu1 %v6481_v38  ;;  %v208_v48 = vld [vmem:[%s6655_s28 + $0x34] sm:$0xf] }
  0x2b   : > { %v308_v55 = vrot.slane %v307_v44, 4  ;;  %v2130_v63 = vrot.slane %v2128_v51, 5  ;;  %v2132_v0 = vshrl.u32 %v6717_v37, 16  ;;  %v2138_v1 = vshll.u32 %v6726_v45, 16 }
  0x2c   : > { %v318_v2 = vrot.slane %v317_v49, 4  ;;  %6041 = vmatmul.mubr.msk.bf16.vlgmr.msra.gmra.mrb[0].mxu0 %vm693_vm3, %v5364_v53  ;;  %v2125_v5 = vor.u32 %v2124_v60, %v2121_v58  ;;  %v325_v7 = vshrl.u32 %v205_v52, 16  ;;  %v328_v8 = vshll.u32 %v205_v52, 16  ;;  %v237_v53 = vld [vmem:[%s6655_s28 + $0x38] sm:$0x1] }
  0x2d   : > { %v313_v4 = vsel %vm6674_vm2, %v308_v55, %v312_v40  ;;  %6073 = vmatpush3.bf16.msra.mxu0 %v6650_v3  ;;  %v2134_v10 = vrot.slane %v2132_v0, 4  ;;  %v2140_v11 = vrot.slane %v2138_v1, 5  ;;  %v334_v12 = vshll.u32 %v206_v61, 16 }
  0x2e   : > { %v323_v9 = vsel %vm6674_vm2, %v318_v2, %v322_v50  ;;  %v2126_v18 = vrot.slane %v2125_v5, 4  ;;  %v327_v19 = vrot.slane %v325_v7, 4  ;;  %v330_v20 = vrot.slane %v328_v8, 5  ;;  %6106 = vmatprep.subr.bf16.mxu0 %v6737_v62 }
  0x2f   : > { %v5131_v17 = vcombine.low %v313_v4, %v323_v9  ;;  %v2135_v24 = vor.u32 %v2134_v10, %v2130_v63  ;;  %v336_v25 = vrot.slane %v334_v12, 5  ;;  %v338_v26 = vshrl.u32 %v206_v61, 16  ;;  %v5325_v4 = vld [vmem:[%s6655_s28 + $0x3c] sm:$0xf]  ;;  %v6774_v9 = vld [vmem:[%s6655_s28 + $0x40] sm:$0xf] }
  0x30   : > { %v344_v3 = vshll.u32 %v236_v6, 16  ;;  %v2131_v27 = vsel %vm6674_vm2, %v2126_v18, %v2130_v63  ;;  %v331_v29 = vor.u32 %v330_v20, %v327_v19  ;;  %v2143_v31 = vshrl.u32 %v5322_v15, 16  ;;  %v6779_v20 = vld [vmem:[%s6655_s28 + $0x44] sm:$0x1] }
  0x31   : > { %5908 = vmatprep.mubr.msk.bf16.mxu1 %vm693_vm3, %v5131_v17  ;;  %v2146_v32 = vshll.u32 %v5322_v15, 16  ;;  %v2136_v33 = vrot.slane %v2135_v24, 4  ;;  %v340_v34 = vrot.slane %v338_v26, 4  ;;  %v2152_v36 = vshll.u32 %v6750_v22, 16 }
  0x32   : > { %v346_v35 = vrot.slane %v344_v3, 5  ;;  %v332_v38 = vrot.slane %v331_v29, 4  ;;  %v2145_v39 = vrot.slane %v2143_v31, 4  ;;  %v2156_v41 = vshrl.u32 %v6750_v22, 16  ;;  %v209_v29 = vld [vmem:[%s6655_s28 + $0x3c] sm:$0xf] }
  0x33   : > { %v2148_v40 = vrot.slane %v2146_v32, 5  ;;  %v2141_v43 = vsel %vm6674_vm2, %v2136_v33, %v2140_v11  ;;  %v341_v44 = vor.u32 %v340_v34, %v336_v25  ;;  %v2154_v46 = vrot.slane %v2152_v36, 5 }
  0x34   : > { %v2162_v47 = vshll.u32 %v6757_v30, 16  ;;  %v5365_v49 = vcombine.low %v2131_v27, %v2141_v43  ;;  %v337_v50 = vsel %vm6674_vm2, %v332_v38, %v336_v25  ;;  %v2158_v52 = vrot.slane %v2156_v41, 4 }
  0x35   : > { %v2149_v51 = vor.u32 %v2148_v40, %v2145_v39  ;;  %v342_v55 = vrot.slane %v341_v44, 4  ;;  %v349_v60 = vshrl.u32 %v207_v42, 16  ;;  %v352_v61 = vshll.u32 %v207_v42, 16 }
  0x36   : > { %v2164_v58 = vrot.slane %v2162_v47, 5  ;;  %6044 = vmatprep.mubr.msk.bf16.mxu0 %vm693_vm3, %v5365_v49  ;;  %v2159_v63 = vor.u32 %v2158_v52, %v2154_v46  ;;  %v358_v0 = vshll.u32 %v208_v48, 16  ;;  %v362_v1 = vshrl.u32 %v208_v48, 16  ;;  %v238_v49 = vld [vmem:[%s6655_s28 + $0x44] sm:$0x1] }
  0x37   : > { %v2150_v2 = vrot.slane %v2149_v51, 4  ;;  %v347_v5 = vsel %vm6674_vm2, %v342_v55, %v346_v35  ;;  %v351_v6 = vrot.slane %v349_v60, 4  ;;  %v354_v7 = vrot.slane %v352_v61, 5  ;;  %v210_v35 = vld [vmem:[%s6655_s28 + $0x40] sm:$0xf] }
  0x38   : > { %v368_v8 = vshll.u32 %v237_v53, 16  ;;  %v5132_v10 = vcombine.low %v337_v50, %v347_v5  ;;  %v2160_v12 = vrot.slane %v2159_v63, 4  ;;  %v360_v15 = vrot.slane %v358_v0, 5  ;;  %v5328_v51 = vld [vmem:[%s6655_s28 + $0x48] sm:$0xf] }
  0x39   : > { %v2155_v11 = vsel %vm6674_vm2, %v2150_v2, %v2154_v46  ;;  %v355_v17 = vor.u32 %v354_v7, %v351_v6  ;;  %v364_v18 = vrot.slane %v362_v1, 4  ;;  %v2167_v24 = vshrl.u32 %v5325_v4, 16  ;;  %v6797_v60 = vld [vmem:[%s6655_s28 + $0x4c] sm:$0xf] }
  0x3a   : > { %v370_v19 = vrot.slane %v368_v8, 5  ;;  %5909 = vmatmul.mubr.msk.bf16.gmra.mrb[4].mxu1 %vm693_vm3, %v5132_v10  ;;  %v2165_v25 = vsel %vm6674_vm2, %v2160_v12, %v2164_v58  ;;  %v2170_v26 = vshll.u32 %v5325_v4, 16  ;;  %v2176_v3 = vshll.u32 %v6774_v9, 16  ;;  %v6805_v10 = vld [vmem:[%s6655_s28 + $0x50] sm:$0x1] }
  0x3b   : > { %v2180_v27 = vshrl.u32 %v6774_v9, 16  ;;  %v5366_v31 = vcombine.low %v2155_v11, %v2165_v25  ;;  %v356_v32 = vrot.slane %v355_v17, 4  ;;  %v365_v33 = vor.u32 %v364_v18, %v360_v15  ;;  %v6812_v25 = vld [vmem:[%s6655_s28 + $0x4c] sm:$0xf] }
  0x3c   : > { %v2169_v34 = vrot.slane %v2167_v24, 4  ;;  %v2172_v36 = vrot.slane %v2170_v26, 5  ;;  %v2178_v38 = vrot.slane %v2176_v3, 5  ;;  %v2186_v40 = vshll.u32 %v6779_v20, 16 }
  0x3d   : > { %v2182_v39 = vrot.slane %v2180_v27, 4  ;;  %6045 = vmatmul.mubr.msk.bf16.gmra.mrb[4].mxu0 %vm693_vm3, %v5366_v31  ;;  %v361_v41 = vsel %vm6674_vm2, %v356_v32, %v360_v15  ;;  %v366_v42 = vrot.slane %v365_v33, 4  ;;  %v373_v43 = vshrl.u32 %v209_v29, 16  ;;  %v6809_v15 = vld [vmem:[%s6655_s28 + $0x48] sm:$0xf] }
  0x3e   : > { %v376_v44 = vshll.u32 %v209_v29, 16  ;;  %v2173_v46 = vor.u32 %v2172_v36, %v2169_v34  ;;  %v2188_v48 = vrot.slane %v2186_v40, 5  ;;  %v382_v50 = vshll.u32 %v210_v35, 16  ;;  %v239_v34 = vld [vmem:[%s6655_s28 + $0x50] sm:$0x1] }
  0x3f   : > { %v2183_v47 = vor.u32 %v2182_v39, %v2178_v38  ;;  %v371_v52 = vsel %vm6674_vm2, %v366_v42, %v370_v19  ;;  %v375_v53 = vrot.slane %v373_v43, 4  ;;  %v386_v58 = vshrl.u32 %v210_v35, 16 }
  0x40   : > { %v378_v55 = vrot.slane %v376_v44, 5  ;;  %v5133_v61 = vcombine.low %v361_v41, %v371_v52  ;;  %v2174_v2 = vrot.slane %v2173_v46, 4  ;;  %v384_v0 = vrot.slane %v382_v50, 5  ;;  %v5331_v41 = vld [vmem:[%s6655_s28 + $0x54] sm:$0xf] }
  0x41   : > { %v2184_v63 = vrot.slane %v2183_v47, 4  ;;  %v388_v4 = vrot.slane %v386_v58, 4  ;;  %v392_v5 = vshll.u32 %v238_v49, 16  ;;  %v2191_v6 = vshrl.u32 %v5328_v51, 16 }
  0x42   : > { %v379_v1 = vor.u32 %v378_v55, %v375_v53  ;;  %5912 = vmatprep.mubr.msk.bf16.mxu1 %vm693_vm3, %v5133_v61  ;;  %v2179_v7 = vsel %vm6674_vm2, %v2174_v2, %v2178_v38  ;;  %v2194_v11 = vshll.u32 %v5328_v51, 16  ;;  %v2200_v12 = vshll.u32 %v6797_v60, 16  ;;  %v6828_v51 = vld [vmem:[%s6655_s28 + $0x58] sm:$0xf] }
  0x43   : > { %v2189_v8 = vsel %vm6674_vm2, %v2184_v63, %v2188_v48  ;;  %v389_v19 = vor.u32 %v388_v4, %v384_v0  ;;  %v394_v24 = vrot.slane %v392_v5, 5  ;;  %v2193_v26 = vrot.slane %v2191_v6, 4 }
  0x44   : > { %v5367_v17 = vcombine.low %v2179_v7, %v2189_v8  ;;  %v380_v18 = vrot.slane %v379_v1, 4  ;;  %v2196_v3 = vrot.slane %v2194_v11, 5  ;;  %v2202_v27 = vrot.slane %v2200_v12, 5  ;;  %v6838_v8 = vld [vmem:[%s6655_s28 + $0x54] sm:$0xf] }
  0x45   : > { %v2204_v29 = vshrl.u32 %v6797_v60, 16  ;;  %v390_v32 = vrot.slane %v389_v19, 4  ;;  %v2210_v33 = vshll.u32 %v6805_v10, 16  ;;  %v397_v35 = vshrl.u32 %v6809_v15, 16  ;;  %v6844_v19 = vld [vmem:[%s6655_s28 + $0x58] sm:$0xf] }
  0x46   : > { %6048 = vmatprep.mubr.msk.bf16.mxu0 %vm693_vm3, %v5367_v17  ;;  %v385_v31 = vsel %vm6674_vm2, %v380_v18, %v384_v0  ;;  %v2197_v36 = vor.u32 %v2196_v3, %v2193_v26  ;;  %v400_v39 = vshll.u32 %v6809_v15, 16  ;;  %v406_v40 = vshll.u32 %v6812_v25, 16  ;;  %v6834_v0 = vld [vmem:[%s6655_s28 + $0x5c] sm:$0x1] }
  0x47   : > { %v2206_v38 = vrot.slane %v2204_v29, 4  ;;  %v395_v42 = vsel %vm6674_vm2, %v390_v32, %v394_v24  ;;  %v2212_v43 = vrot.slane %v2210_v33, 5  ;;  %v399_v44 = vrot.slane %v397_v35, 4  ;;  %v240_v33 = vld [vmem:[%s6655_s28 + $0x5c] sm:$0x1] }
  0x48   : > { %v410_v46 = vshrl.u32 %v6812_v25, 16  ;;  %v5134_v47 = vcombine.low %v385_v31, %v395_v42  ;;  %v2198_v48 = vrot.slane %v2197_v36, 4  ;;  %v402_v50 = vrot.slane %v400_v39, 5 }
  0x49   : > { %v2207_v49 = vor.u32 %v2206_v38, %v2202_v27  ;;  %v408_v52 = vrot.slane %v406_v40, 5  ;;  %v416_v55 = vshll.u32 %v239_v34, 16  ;;  %v2215_v58 = vshrl.u32 %v5331_v41, 16  ;;  %v5334_v40 = vld [vmem:[%s6655_s28 + $0x60] sm:$0xf] }
  0x4a   : > { %v412_v53 = vrot.slane %v410_v46, 4  ;;  %5913 = vmatmul.mubr.msk.bf16.gmra.mrb[8].mxu1 %vm693_vm3, %v5134_v47  ;;  %v2203_v61 = vsel %vm6674_vm2, %v2198_v48, %v2202_v27  ;;  %v403_v63 = vor.u32 %v402_v50, %v399_v44  ;;  %v2218_v1 = vshll.u32 %v5331_v41, 16  ;;  %v6858_v46 = vld [vmem:[%s6655_s28 + $0x64] sm:$0xf] }
  0x4b   : > { %v2208_v2 = vrot.slane %v2207_v49, 4  ;;  %v418_v5 = vrot.slane %v416_v55, 5  ;;  %v2217_v6 = vrot.slane %v2215_v58, 4  ;;  %v2224_v7 = vshll.u32 %v6828_v51, 16  ;;  %v6865_v55 = vld [vmem:[%s6655_s28 + $0x68] sm:$0x1] }
  0x4c   : > { %v413_v4 = vor.u32 %v412_v53, %v408_v52  ;;  %v404_v12 = vrot.slane %v403_v63, 4  ;;  %v2220_v17 = vrot.slane %v2218_v1, 5  ;;  %v2228_v18 = vshrl.u32 %v6828_v51, 16 }
  0x4d   : > { %v2213_v11 = vsel %vm6674_vm2, %v2208_v2, %v2212_v43  ;;  %v2226_v3 = vrot.slane %v2224_v7, 5  ;;  %v2234_v27 = vshll.u32 %v6834_v0, 16  ;;  %v421_v34 = vshrl.u32 %v6838_v8, 16 }
  0x4e   : > { %v5368_v24 = vcombine.low %v2203_v61, %v2213_v11  ;;  %v414_v26 = vrot.slane %v413_v4, 4  ;;  %v409_v29 = vsel %vm6674_vm2, %v404_v12, %v408_v52  ;;  %v2221_v31 = vor.u32 %v2220_v17, %v2217_v6  ;;  %v6875_v17 = vld [vmem:[%s6655_s28 + $0x64] sm:$0xf] }
  0x4f   : > { %v2230_v32 = vrot.slane %v2228_v18, 4  ;;  %v2236_v36 = vrot.slane %v2234_v27, 5  ;;  %v424_v38 = vshll.u32 %v6838_v8, 16  ;;  %v430_v39 = vshll.u32 %v6844_v19, 16 }
  0x50   : > { %6049 = vmatmul.mubr.msk.bf16.gmra.mrb[8].mxu0 %vm693_vm3, %v5368_v24  ;;  %v419_v35 = vsel %vm6674_vm2, %v414_v26, %v418_v5  ;;  %v2222_v42 = vrot.slane %v2221_v31, 4  ;;  %v423_v44 = vrot.slane %v421_v34, 4  ;;  %v434_v49 = vshrl.u32 %v6844_v19, 16  ;;  %v6869_v5 = vld [vmem:[%s6655_s28 + $0x60] sm:$0xf] }
  0x51   : > { %v5135_v41 = vcombine.low %v409_v29, %v419_v35  ;;  %v2231_v43 = vor.u32 %v2230_v32, %v2226_v3  ;;  %v426_v47 = vrot.slane %v424_v38, 5  ;;  %v432_v48 = vrot.slane %v430_v39, 5  ;;  %v241_v35 = vld [vmem:[%s6655_s28 + $0x68] sm:$0x1] }
  0x52   : > { %v440_v50 = vshll.u32 %v240_v33, 16  ;;  %v2227_v52 = vsel %vm6674_vm2, %v2222_v42, %v2226_v3  ;;  %v2239_v58 = vshrl.u32 %v5334_v40, 16  ;;  %v2242_v61 = vshll.u32 %v5334_v40, 16 }
  0x53   : > { %5916 = vmatprep.mubr.msk.bf16.mxu1 %vm693_vm3, %v5135_v41  ;;  %v2232_v53 = vrot.slane %v2231_v43, 4  ;;  %v427_v2 = vor.u32 %v426_v47, %v423_v44  ;;  %v436_v63 = vrot.slane %v434_v49, 4  ;;  %v2248_v4 = vshll.u32 %v6858_v46, 16  ;;  %v5396_v43 = vld [vmem:[%s6655_s28 + $0xc] sm:$0xe] }
  0x54   : > { %v442_v1 = vrot.slane %v440_v50, 5  ;;  %v2241_v7 = vrot.slane %v2239_v58, 4  ;;  %v2244_v11 = vrot.slane %v2242_v61, 5  ;;  %v2252_v12 = vshrl.u32 %v6858_v46, 16 }
  0x55   : > { %v2237_v6 = vsel %vm6674_vm2, %v2232_v53, %v2236_v36  ;;  %v428_v24 = vrot.slane %v427_v2, 4  ;;  %v437_v26 = vor.u32 %v436_v63, %v432_v48  ;;  %v2250_v3 = vrot.slane %v2248_v4, 5 }
  0x56   : > { %v5369_v18 = vcombine.low %v2227_v52, %v2237_v6  ;;  %v2245_v27 = vor.u32 %v2244_v11, %v2241_v7  ;;  %v2254_v29 = vrot.slane %v2252_v12, 4  ;;  %v2258_v31 = vshll.u32 %v6865_v55, 16  ;;  %v6903_v7 = vld [vmem:[%s6655_s28 + $0x70] sm:$0xf] }
  0x57   : > { %v445_v32 = vshrl.u32 %v6869_v5, 16  ;;  %v433_v33 = vsel %vm6674_vm2, %v428_v24, %v432_v48  ;;  %v438_v34 = vrot.slane %v437_v26, 4  ;;  %v448_v36 = vshll.u32 %v6869_v5, 16  ;;  %v6890_v48 = vld [vmem:[%s6655_s28 + $0x6c] sm:$0xf] }
  0x58   : > { %6052 = vmatprep.mubr.msk.bf16.mxu0 %vm693_vm3, %v5369_v18  ;;  %v454_v38 = vshll.u32 %v6875_v17, 16  ;;  %v2246_v39 = vrot.slane %v2245_v27, 4  ;;  %v2255_v40 = vor.u32 %v2254_v29, %v2250_v3  ;;  %v2260_v41 = vrot.slane %v2258_v31, 5  ;;  %v242_v31 = vld [vmem:[%s6655_s28 + $0x74] sm:$0x1] }
  0x59   : > { %v447_v42 = vrot.slane %v445_v32, 4  ;;  %v443_v44 = vsel %vm6674_vm2, %v438_v34, %v442_v1  ;;  %v450_v47 = vrot.slane %v448_v36, 5  ;;  %v458_v50 = vshrl.u32 %v6875_v17, 16  ;;  %v5397_v32 = vld [vmem:[%s6655_s28 + $0x18] sm:$0xe] }
  0x5a   : > { %v456_v49 = vrot.slane %v454_v38, 5  ;;  %v5136_v52 = vcombine.low %v433_v33, %v443_v44  ;;  %v2251_v53 = vsel %vm6674_vm2, %v2246_v39, %v2250_v3  ;;  %v2256_v58 = vrot.slane %v2255_v40, 4  ;;  %v6922_v38 = vld [vmem:[%s6655_s28 + $0x78] sm:$0xf] }
  0x5b   : > { %v464_v61 = vshll.u32 %v241_v35, 16  ;;  %v451_v63 = vor.u32 %v450_v47, %v447_v42  ;;  %v460_v1 = vrot.slane %v458_v50, 4  ;;  %v5412_v4 = vrot.slane %v5396_v43, 9  ;;  %v5398_v47 = vld [vmem:[%s6655_s28 + $0x24] sm:$0xe] }
  0x5c   : > { %v2820_v6 = vrot.slane %v2818_v56, 4  ;;  %5917 = vmatmul.mubr.msk.bf16.gmra.mrb[12].mxu1 %vm693_vm3, %v5136_v52  ;;  %v2261_v11 = vsel %vm6674_vm2, %v2256_v58, %v2260_v41  ;;  %v469_v18 = vshrl.u32 %v6890_v48, 16  ;;  %v472_v24 = vshll.u32 %v6890_v48, 16  ;;  %v243_v41 = vld [vmem:[%s6655_s28 + $0x80] sm:$0x1] }
  0x5d   : > { %v466_v12 = vrot.slane %v464_v61, 5  ;;  %v5370_v26 = vcombine.low %v2251_v53, %v2261_v11  ;;  %v452_v3 = vrot.slane %v451_v63, 4  ;;  %v461_v27 = vor.u32 %v460_v1, %v456_v49 }
  0x5e   : > { %v2819_v29 = vsel %vm6896_vm6, %v5412_v4, %v2818_v56  ;;  %v2822_v33 = vsel %vm6896_vm6, %v2820_v6, %v2821_v57  ;;  %v471_v34 = vrot.slane %v469_v18, 4  ;;  %v474_v35 = vrot.slane %v472_v24, 5  ;;  %v6956_v24 = vld [vmem:[%s6655_s28 + $0x88] sm:$0xf] }
  0x5f   : > { %v478_v36 = vshll.u32 %v6903_v7, 16  ;;  %6053 = vmatmul.mubr.msk.bf16.gmra.mrb[12].mxu0 %vm693_vm3, %v5370_v26  ;;  %v457_v13 = vsel %vm6674_vm2, %v452_v3, %v456_v49  ;;  %v462_v56 = vrot.slane %v461_v27, 4  ;;  %v5430_v39 = vcombine.low %v2819_v29, %v2822_v33 }
  0x60   : > { %v482_v40 = vshrl.u32 %v6903_v7, 16  ;;  %v475_v57 = vor.u32 %v474_v35, %v471_v34  ;;  %v488_v43 = vshll.u32 %v242_v31, 16  ;;  %v5413_v44 = vrot.slane %v5397_v32, 9  ;;  %v244_v35 = vld [vmem:[%s6655_s28 + $0x8c] sm:$0x1] }
  0x61   : > { %v480_v42 = vrot.slane %v478_v36, 5  ;;  %v467_v50 = vsel %vm6674_vm2, %v462_v56, %v466_v12  ;;  %6074 = vmatprep.mubr.msk.bf16.mxu0 %vm693_vm3, %v5430_v39  ;;  %v2829_v49 = vsel %vm6896_vm6, %v6710_v23, %v2828_v21  ;;  %v493_v53 = vshrl.u32 %v6922_v38, 16  ;;  %v6948_v12 = vld [vmem:[%s6655_s28 + $0x84] sm:$0xf] }
  0x62   : > { %v484_v52 = vrot.slane %v482_v40, 4  ;;  %v5137_v58 = vcombine.low %v457_v13, %v467_v50  ;;  %v476_v61 = vrot.slane %v475_v57, 4  ;;  %v490_v63 = vrot.slane %v488_v43, 5  ;;  %v5399_v40 = vld [vmem:[%s6655_s28 + $0x30] sm:$0xe] }
  0x63   : > { %v2826_v1 = vsel %vm6896_vm6, %v5413_v44, %v2825_v16  ;;  %v495_v11 = vrot.slane %v493_v53, 4  ;;  %v496_v59 = vshll.u32 %v6922_v38, 16  ;;  %v502_v23 = vshll.u32 %v6929_v14, 16  ;;  %v6961_v16 = vld [vmem:[%s8483_s1 + $0x38] sm:$0xff]   ;;  %v6980_v50 = vld [vmem:[%s6655_s28 + $0x90] sm:$0xf] }
  0x64   : > { %v485_v4 = vor.u32 %v484_v52, %v480_v42  ;;  %v5431_v6 = vcombine.low %v2826_v1, %v2829_v49  ;;  %5920 = vmatprep.mubr.msk.bf16.mxu1 %vm693_vm3, %v5137_v58  ;;  %v481_v21 = vsel %vm6674_vm2, %v476_v61, %v480_v42  ;;  %v506_v54 = vshrl.u32 %v6929_v14, 16  ;;  %v6985_v58 = vld [vmem:[%s6655_s28 + $0x94] sm:$0xf] }
  0x65   : > { %v512_v18 = vshll.u32 %v243_v41, 16  ;;  %v498_v3 = vrot.slane %v496_v59, 5  ;;  %v5414_v27 = vrot.slane %v5398_v47, 9  ;;  %v2832_v29 = vrot.slane %v6717_v37, 5 }
  0x66   : > { %v486_v26 = vrot.slane %v485_v4, 4  ;;  %v504_v31 = vrot.slane %v502_v23, 5  ;;  %v508_v32 = vrot.slane %v506_v54, 4  ;;  %v2835_v34 = vrot.slane %v6726_v45, 5  ;;  %v245_v23 = vld [vmem:[%s6655_s28 + $0x98] sm:$0x1] }
  0x67   : > { %v514_v33 = vrot.slane %v512_v18, 5  ;;  %6075 = vmatmul.mubr.msk.bf16.vlgmr.msra.gmra.mrb[0].mxu0 %vm693_vm3, %v5431_v6  ;;  %v499_v13 = vor.u32 %v498_v3, %v495_v11  ;;  %v2833_v56 = vsel %vm6896_vm6, %v5414_v27, %v2832_v29  ;;  %v2834_v39 = vrot.slane %v2832_v29, 4  ;;  %v5400_v27 = vld [vmem:[%s6655_s28 + $0x3c] sm:$0xe] }
  0x68   : > { %v491_v36 = vsel %vm6674_vm2, %v486_v26, %v490_v63  ;;  %6107 = vmatpush3.bf16.msra.mxu0 %v6737_v62  ;;  %v509_v37 = vor.u32 %v508_v32, %v504_v31  ;;  %v517_v45 = vshrl.u32 %v6948_v12, 16  ;;  %v520_v57 = vshll.u32 %v6948_v12, 16 }
  0x69   : > { %v5138_v41 = vcombine.low %v481_v21, %v491_v36  ;;  %v500_v42 = vrot.slane %v499_v13, 4  ;;  %v2836_v43 = vsel %vm6896_vm6, %v2834_v39, %v2835_v34  ;;  %v526_v44 = vshll.u32 %v6956_v24, 16  ;;  %6140 = vmatprep.subr.bf16.mxu0 %v6961_v16 }
  0x6a   : > { %v530_v47 = vshrl.u32 %v6956_v24, 16  ;;  %v510_v62 = vrot.slane %v509_v37, 4  ;;  %v5432_v52 = vcombine.low %v2833_v56, %v2836_v43  ;;  %v519_v49 = vrot.slane %v517_v45, 4 }
  0x6b   : > { %5921 = vmatmul.mubr.msk.bf16.gmra.mrb[16].mxu1 %vm693_vm3, %v5138_v41  ;;  %v522_v53 = vrot.slane %v520_v57, 5  ;;  %v505_v61 = vsel %vm6674_vm2, %v500_v42, %v504_v31  ;;  %v528_v63 = vrot.slane %v526_v44, 5  ;;  %v536_v4 = vshll.u32 %v244_v35, 16  ;;  %v7013_v42 = vld [vmem:[%s6655_s28 + $0xa0] sm:$0xf] }
  0x6c   : > { %v532_v1 = vrot.slane %v530_v47, 4  ;;  %v515_v6 = vsel %vm6674_vm2, %v510_v62, %v514_v33  ;;  %6078 = vmatprep.mubr.msk.bf16.mxu0 %vm693_vm3, %v5432_v52  ;;  %v5415_v59 = vrot.slane %v5399_v40, 9  ;;  %v2839_v21 = vrot.slane %v6750_v22, 5  ;;  %v7008_v40 = vld [vmem:[%s6655_s28 + $0x9c] sm:$0xf] }
  0x6d   : > { %v523_v11 = vor.u32 %v522_v53, %v519_v49  ;;  %v5139_v54 = vcombine.low %v505_v61, %v515_v6  ;;  %v538_v26 = vrot.slane %v536_v4, 5  ;;  %v2842_v3 = vrot.slane %v6757_v30, 5  ;;  %v246_v52 = vld [vmem:[%s6655_s28 + $0xa4] sm:$0x1] }
  0x6e   : > { %v533_v18 = vor.u32 %v532_v1, %v528_v63  ;;  %v2840_v31 = vsel %vm6896_vm6, %v5415_v59, %v2839_v21  ;;  %v2841_v32 = vrot.slane %v2839_v21, 4  ;;  %v541_v33 = vshrl.u32 %v6980_v50, 16  ;;  %v5401_v59 = vld [vmem:[%s6655_s28 + $0x48] sm:$0xe] }
  0x6f   : > { %v524_v29 = vrot.slane %v523_v11, 4  ;;  %5924 = vmatprep.mubr.msk.bf16.mxu1 %vm693_vm3, %v5139_v54  ;;  %v544_v22 = vshll.u32 %v6980_v50, 16  ;;  %v550_v35 = vshll.u32 %v6985_v58, 16  ;;  %v554_v36 = vshrl.u32 %v6985_v58, 16 }
  0x70   : > { %v534_v34 = vrot.slane %v533_v18, 4  ;;  %v2843_v13 = vsel %vm6896_vm6, %v2841_v32, %v2842_v3  ;;  %v543_v56 = vrot.slane %v541_v33, 4  ;;  %v560_v39 = vshll.u32 %v245_v23, 16  ;;  %v7032_v33 = vld [vmem:[%s6655_s28 + $0xa8] sm:$0xf] }
  0x71   : > { %v529_v30 = vsel %vm6674_vm2, %v524_v29, %v528_v63  ;;  %v5433_v37 = vcombine.low %v2840_v31, %v2843_v13  ;;  %v546_v45 = vrot.slane %v544_v22, 5  ;;  %v552_v57 = vrot.slane %v550_v35, 5 }
  0x72   : > { %v539_v41 = vsel %vm6674_vm2, %v534_v34, %v538_v26  ;;  %v556_v44 = vrot.slane %v554_v36, 4  ;;  %v562_v47 = vrot.slane %v560_v39, 5  ;;  %v5416_v62 = vrot.slane %v5400_v27, 9 }
  0x73   : > { %v5140_v43 = vcombine.low %v529_v30, %v539_v41  ;;  %6079 = vmatmul.mubr.msk.bf16.gmra.mrb[4].mxu0 %vm693_vm3, %v5433_v37  ;;  %v547_v49 = vor.u32 %v546_v45, %v543_v56  ;;  %v2846_v53 = vrot.slane %v6774_v9, 5  ;;  %v2849_v61 = vrot.slane %v6779_v20, 5  ;;  %v7037_v30 = vld [vmem:[%s6655_s28 + $0xac] sm:$0xf]  ;;  %v247_v37 = vld [vmem:[%s6655_s28 + $0xb0] sm:$0x1] }
  0x74   : > { %v565_v63 = vshrl.u32 %v7008_v40, 16  ;;  %v557_v1 = vor.u32 %v556_v44, %v552_v57  ;;  %v568_v4 = vshll.u32 %v7008_v40, 16  ;;  %v574_v6 = vshll.u32 %v7013_v42, 16  ;;  %v5402_v45 = vld [vmem:[%s6655_s28 + $0x54] sm:$0xe] }
  0x75   : > { %5925 = vmatmul.mubr.msk.bf16.gmra.mrb[20].mxu1 %vm693_vm3, %v5140_v43  ;;  %v578_v11 = vshrl.u32 %v7013_v42, 16  ;;  %v548_v21 = vrot.slane %v547_v49, 4  ;;  %v2847_v23 = vsel %vm6896_vm6, %v5416_v62, %v2846_v53  ;;  %v2848_v9 = vrot.slane %v2846_v53, 4  ;;  %v7047_v62 = vld [vmem:[%s6655_s28 + $0xb4] sm:$0xf] }
  0x76   : > { %v567_v20 = vrot.slane %v565_v63, 4  ;;  %v558_v54 = vrot.slane %v557_v1, 4  ;;  %v570_v18 = vrot.slane %v568_v4, 5  ;;  %v576_v26 = vrot.slane %v574_v6, 5  ;;  %v7059_v4 = vld [vmem:[%s6655_s28 + $0xb8] sm:$0xf] }
  0x77   : > { %v580_v3 = vrot.slane %v578_v11, 4  ;;  %v553_v27 = vsel %vm6674_vm2, %v548_v21, %v552_v57  ;;  %v2850_v29 = vsel %vm6896_vm6, %v2848_v9, %v2849_v61  ;;  %v584_v31 = vshll.u32 %v246_v52, 16 }
  0x78   : > { %v5417_v32 = vrot.slane %v5401_v59, 9  ;;  %v563_v34 = vsel %vm6674_vm2, %v558_v54, %v562_v47  ;;  %v5434_v22 = vcombine.low %v2847_v23, %v2850_v29  ;;  %v571_v35 = vor.u32 %v570_v18, %v567_v20  ;;  %v248_v18 = vld [vmem:[%s6655_s28 + $0xbc] sm:$0x1] }
  0x79   : > { %v581_v36 = vor.u32 %v580_v3, %v576_v26  ;;  %v5141_v13 = vcombine.low %v553_v27, %v563_v34  ;;  %v586_v56 = vrot.slane %v584_v31, 5  ;;  %v2853_v39 = vrot.slane %v6797_v60, 5  ;;  %v5403_v31 = vld [vmem:[%s6655_s28 + $0x60] sm:$0xe] }
  0x7a   : > { %v2856_v41 = vrot.slane %v6805_v10, 5  ;;  %6082 = vmatprep.mubr.msk.bf16.mxu0 %vm693_vm3, %v5434_v22  ;;  %v572_v57 = vrot.slane %v571_v35, 4  ;;  %v589_v44 = vshrl.u32 %v7032_v33, 16  ;;  %v592_v47 = vshll.u32 %v7032_v33, 16 }
  0x7b   : > { %v582_v43 = vrot.slane %v581_v36, 4  ;;  %5928 = vmatprep.mubr.msk.bf16.mxu1 %vm693_vm3, %v5141_v13  ;;  %v2854_v60 = vsel %vm6896_vm6, %v5417_v32, %v2853_v39  ;;  %v2855_v52 = vrot.slane %v2853_v39, 4  ;;  %v598_v10 = vshll.u32 %v7037_v30, 16  ;;  %v5404_v36 = vld [vmem:[%s6655_s28 + $0x6c] sm:$0xe] }
  0x7c   : > { %v602_v49 = vshrl.u32 %v7037_v30, 16  ;;  %v577_v53 = vsel %vm6674_vm2, %v572_v57, %v576_v26  ;;  %v591_v63 = vrot.slane %v589_v44, 4  ;;  %v594_v1 = vrot.slane %v592_v47, 5 }
  0x7d   : > { %v587_v61 = vsel %vm6674_vm2, %v582_v43, %v586_v56  ;;  %v2857_v11 = vsel %vm6896_vm6, %v2855_v52, %v2856_v41  ;;  %v600_v59 = vrot.slane %v598_v10, 5  ;;  %v608_v20 = vshll.u32 %v247_v37, 16  ;;  %v5339_v52 = vld [vmem:[%s6655_s28 + $0x74] sm:$0x1] }
  0x7e   : > { %v5142_v6 = vcombine.low %v577_v53, %v587_v61  ;;  %v604_v21 = vrot.slane %v602_v49, 4  ;;  %v5435_v23 = vcombine.low %v2854_v60, %v2857_v11  ;;  %v595_v9 = vor.u32 %v594_v1, %v591_v63  ;;  %v5338_v60 = vld [vmem:[%s6655_s28 + $0x70] sm:$0xf] }
  0x7f   : > { %v5418_v54 = vrot.slane %v5402_v45, 9  ;;  %v2860_v3 = vrot.slane %v6828_v51, 5  ;;  %v2863_v27 = vrot.slane %v6834_v0, 5  ;;  %v613_v29 = vshrl.u32 %v7047_v62, 16 }
  0x80   : > { %5929 = vmatmul.mubr.msk.bf16.gmra.mrb[24].mxu1 %vm693_vm3, %v5142_v6  ;;  %v605_v26 = vor.u32 %v604_v21, %v600_v59  ;;  %6083 = vmatmul.mubr.msk.bf16.gmra.mrb[8].mxu0 %vm693_vm3, %v5435_v23  ;;  %v596_v32 = vrot.slane %v595_v9, 4  ;;  %v610_v34 = vrot.slane %v608_v20, 5  ;;  %v616_v22 = vshll.u32 %v7047_v62, 16 }
  0x81   : > { %v622_v35 = vshll.u32 %v7059_v4, 16  ;;  %v2861_v51 = vsel %vm6896_vm6, %v5418_v54, %v2860_v3  ;;  %v2862_v56 = vrot.slane %v2860_v3, 4  ;;  %v615_v0 = vrot.slane %v613_v29, 4  ;;  %v5405_v54 = vld [vmem:[%s6655_s28 + $0x78] sm:$0xe] }
  0x82   : > { %v606_v13 = vrot.slane %v605_v26, 4  ;;  %v601_v39 = vsel %vm6674_vm2, %v596_v32, %v600_v59  ;;  %v618_v41 = vrot.slane %v616_v22, 5  ;;  %v626_v45 = vshrl.u32 %v7059_v4, 16  ;;  %v6532_v29 = vld [vmem:[%s6655_s28] sm:$0xf] }
  0x83   : > { %v624_v37 = vrot.slane %v622_v35, 5  ;;  %v2864_v43 = vsel %vm6896_vm6, %v2862_v56, %v2863_v27  ;;  %v632_v44 = vshll.u32 %v248_v18, 16  ;;  %v5419_v47 = vrot.slane %v5403_v31, 9  ;;  %v7099_v31 = vld [vmem:[%s6655_s28 + $0x4] sm:$0xf] }
  0x84   : > { %v611_v57 = vsel %vm6674_vm2, %v606_v13, %v610_v34  ;;  %v5436_v49 = vcombine.low %v2861_v51, %v2864_v43  ;;  %v619_v53 = vor.u32 %v618_v41, %v615_v0  ;;  %v628_v61 = vrot.slane %v626_v45, 4  ;;  %v7103_v34 = vld [vmem:[%s6655_s28 + $0x7c] sm:$0xf]  ;;  %v7106_v22 = vld [vmem:[%s6655_s28 + $0x80] sm:$0x1] }
  0x85   : > { %v5143_v10 = vcombine.low %v601_v39, %v611_v57  ;;  %v634_v63 = vrot.slane %v632_v44, 5  ;;  %v2867_v1 = vrot.slane %v6858_v46, 5  ;;  %v2870_v6 = vrot.slane %v6865_v55, 5  ;;  %v5406_v35 = vld [vmem:[%s6655_s28 + $0x84] sm:$0xe] }
  0x86   : > { %v5420_v11 = vrot.slane %v5404_v36, 9  ;;  %6086 = vmatprep.mubr.msk.bf16.mxu0 %vm693_vm3, %v5436_v49  ;;  %v620_v59 = vrot.slane %v619_v53, 4  ;;  %v629_v21 = vor.u32 %v628_v61, %v624_v37  ;;  %v2874_v23 = vrot.slane %v5338_v60, 5  ;;  %v5344_v0 = vld [vmem:[%s6655_s28 + $0x88] sm:$0xf] }
  0x87   : > { %5932 = vmatprep.mubr.msk.bf16.mxu1 %vm693_vm3, %v5143_v10  ;;  %v2877_v9 = vrot.slane %v5339_v52, 5  ;;  %v2868_v20 = vsel %vm6896_vm6, %v5419_v47, %v2867_v1  ;;  %v2869_v46 = vrot.slane %v2867_v1, 4  ;;  %v5162_v32 = vcombine.low %v6532_v29, %v7099_v31  ;;  %v5345_v39 = vld [vmem:[%s6655_s28 + $0x8c] sm:$0x1]  ;;  %v5347_v45 = vld [vmem:[%s6655_s28 + $0x94] sm:$0xf] }
  0x88   : > { %v625_v55 = vsel %vm6674_vm2, %v620_v59, %v624_v37  ;;  %v630_v18 = vrot.slane %v629_v21, 4  ;;  %v2875_v26 = vsel %vm6896_vm6, %v5420_v11, %v2874_v23  ;;  %v2876_v3 = vrot.slane %v2874_v23, 4  ;;  %v5348_v52 = vld [vmem:[%s6655_s28 + $0x98] sm:$0x1]  ;;  %v5407_v10 = vld [vmem:[%s6655_s28 + $0x90] sm:$0xe] }
  0x89   : > { %v2871_v27 = vsel %vm6896_vm6, %v2869_v46, %v2870_v6  ;;  %v5421_v56 = vrot.slane %v5405_v54, 9  ;;  %v2881_v57 = vrot.slane %v7103_v34, 5  ;;  %v2884_v43 = vrot.slane %v7106_v22, 5  ;;  %v5351_v11 = vld [vmem:[%s6655_s28 + $0xa4] sm:$0x1] }
  0x8a   : > { %v635_v36 = vsel %vm6674_vm2, %v630_v18, %v634_v63  ;;  %v5437_v13 = vcombine.low %v2868_v20, %v2871_v27  ;;  %v2878_v51 = vsel %vm6896_vm6, %v2876_v3, %v2877_v9  ;;  %v5422_v44 = vrot.slane %v5406_v35, 9  ;;  %v5350_v63 = vld [vmem:[%s6655_s28 + $0xa0] sm:$0xf]  ;;  %v5408_v59 = vld [vmem:[%s6655_s28 + $0x9c] sm:$0xe] }
  0x8b   : > { %v5144_v41 = vcombine.low %v625_v55, %v635_v36  ;;  %v5438_v37 = vcombine.low %v2875_v26, %v2878_v51  ;;  %v2888_v47 = vrot.slane %v5344_v0, 5  ;;  %v2891_v60 = vrot.slane %v5345_v39, 5  ;;  %v6534_v21 = vld [vmem:[%s6655_s28 + $0xc] sm:$0xf]  ;;  %v7133_v23 = vld [vmem:[%s6655_s28 + $0x10] sm:$0xf] }
  0x8c   : > { %6087 = vmatmul.mubr.msk.bf16.gmra.mrb[12].mxu0 %vm693_vm3, %v5437_v13  ;;  %v2882_v49 = vsel %vm6896_vm6, %v5421_v56, %v2881_v57  ;;  %v2883_v53 = vrot.slane %v2881_v57, 4  ;;  %v2895_v61 = vrot.slane %v5347_v45, 5  ;;  %v5163_v9 = vcombine.low %v6534_v21, %v7133_v23  ;;  %v6536_v27 = vld [vmem:[%s6655_s28 + $0x18] sm:$0xf]  ;;  %v7142_v29 = vld [vmem:[%s6655_s28 + $0x1c] sm:$0xf] }
  0x8d   : > { %5933 = vmatmul.mubr.msk.bf16.gmra.mrb[28].mxu1 %vm693_vm3, %v5144_v41  ;;  %6090 = vmatprep.mubr.msk.bf16.mxu0 %vm693_vm3, %v5438_v37  ;;  %v2889_v1 = vsel %vm6896_vm6, %v5422_v44, %v2888_v47  ;;  %v2890_v6 = vrot.slane %v2888_v47, 4  ;;  %v5423_v46 = vrot.slane %v5407_v10, 9  ;;  %v2898_v54 = vrot.slane %v5348_v52, 5  ;;  %v5353_v51 = vld [vmem:[%s6655_s28 + $0xac] sm:$0xf]  ;;  %v7150_v39 = vld [vmem:[%s8483_s1 + $0x18] sm:$0xff]  }
  0x8e   : > { %5938 = vmatprep.mubr.msk.bf16.mxu1 %vm693_vm3, %v5162_v32  ;;  %v2885_v20 = vsel %vm6896_vm6, %v2883_v53, %v2884_v43  ;;  %v2897_v26 = vrot.slane %v2895_v61, 4  ;;  %v2902_v3 = vrot.slane %v5350_v63, 5  ;;  %v5164_v32 = vcombine.low %v6536_v27, %v7142_v29  ;;  %v5356_v0 = vld [vmem:[%s6655_s28 + $0xb8] sm:$0xf]  ;;  %v6538_v57 = vld [vmem:[%s8483_s1 + $0x10] sm:$0xff]  }
  0x8f   : > { %v5439_v55 = vcombine.low %v2882_v49, %v2885_v20  ;;  %v2892_v18 = vsel %vm6896_vm6, %v2890_v6, %v2891_v60  ;;  %v5424_v36 = vrot.slane %v5408_v59, 9  ;;  %v2905_v13 = vrot.slane %v5351_v11, 5  ;;  %v5354_v47 = vld [vmem:[%s6655_s28 + $0xb0] sm:$0x1]  ;;  %v5409_v60 = vld [vmem:[%s6655_s28 + $0xa8] sm:$0xe] }
  0x90   : > { %v5440_v35 = vcombine.low %v2889_v1, %v2892_v18  ;;  %v2904_v56 = vrot.slane %v2902_v3, 4  ;;  %v2896_v41 = vsel %vm6896_vm6, %v5423_v46, %v2895_v61  ;;  %v2899_v37 = vsel %vm6896_vm6, %v2897_v26, %v2898_v54  ;;  %v5357_v10 = vld [vmem:[%s6655_s28 + $0xbc] sm:$0x1]  ;;  %v5410_v49 = vld [vmem:[%s6655_s28 + $0xb4] sm:$0xe] }
  0x91   : > { %v2909_v45 = vrot.slane %v5353_v51, 5  ;;  %v2903_v43 = vsel %vm6896_vm6, %v5424_v36, %v2902_v3  ;;  %v2916_v52 = vrot.slane %v5356_v0, 5  ;;  %v6539_v53 = vld [vmem:[%s6655_s28 + $0x24] sm:$0xf]  ;;  %v7174_v61 = vld [vmem:[%s6655_s28 + $0x28] sm:$0xf]  ;;  %v5441_v1 = vcombine.low %v2896_v41, %v2899_v37 }
  0x92   : > { %v2906_v44 = vsel %vm6896_vm6, %v2904_v56, %v2905_v13  ;;  %v5165_v63 = vcombine.low %v6539_v53, %v7174_v61  ;;  %v5359_v6 = vld [vmem:[%s6655_s28 + $0xc4] sm:$0xf]  ;;  %v5425_v59 = vrot.slane %v5409_v60, 9  ;;  %v6541_v20 = vld [vmem:[%s6655_s28 + $0x30] sm:$0xf]  ;;  %v2919_v26 = vrot.slane %v5357_v10, 5 }
  0x93   : > { %v5442_v11 = vcombine.low %v2903_v43, %v2906_v44  ;;  %v2911_v21 = vrot.slane %v2909_v45, 4  ;;  %v7180_v46 = vld [vmem:[%s6655_s28 + $0x34] sm:$0xf]  ;;  %v2918_v18 = vrot.slane %v2916_v52, 4  ;;  %v5360_v13 = vld [vmem:[%s6655_s28 + $0xc8] sm:$0x1] }
  0x94   : > { %6091 = vmatmul.mubr.msk.bf16.gmra.mrb[16].mxu0 %vm693_vm3, %v5439_v55  ;;  %v5166_v54 = vcombine.low %v6541_v20, %v7180_v46  ;;  %v5426_v55 = vrot.slane %v5410_v49, 9  ;;  %v2910_v3 = vsel %vm6896_vm6, %v5425_v59, %v2909_v45  ;;  %v5411_v51 = vld [vmem:[%s6655_s28 + $0xc0] sm:$0xe]  ;;  %v6543_v56 = vld [vmem:[%s6655_s28 + $0x3c] sm:$0xf]  ;;  %v2926_v44 = vrot.slane %v5360_v13, 5 }
  0x95   : > { %5939 = vmatmul.mubr.msk.bf16.vlgmr.msra.gmra.mrb[0].mxu1 %vm693_vm3, %v5163_v9  ;;  %6094 = vmatprep.mubr.msk.bf16.mxu0 %vm693_vm3, %v5440_v35  ;;  %v2912_v9 = vrot.slane %v5354_v47, 5  ;;  %v2920_v36 = vsel %vm6896_vm6, %v2918_v18, %v2919_v26  ;;  %v7199_v0 = vld [vmem:[%s6655_s28 + $0x40] sm:$0xf]  ;;  %v5168_v47 = vcombine.low %v6809_v15, %v6812_v25  ;;  %v2296_v10 = vshll.u32 %v7103_v34, 16  ;;  %v6490_v53 = vld [vmem:[%s6655_s28 + $0x18] sm:$0xff]  }
  0x96   : > { %5971 = vmatpush3.bf16.msra.mxu1 %v6538_v57  ;;  %5942 = vmatprep.mubr.msk.bf16.mxu1 %vm693_vm3, %v5164_v32  ;;  %v2923_v32 = vrot.slane %v5359_v6, 5  ;;  %v2917_v35 = vsel %vm6896_vm6, %v5426_v55, %v2916_v52  ;;  %v5167_v41 = vcombine.low %v6543_v56, %v7199_v0  ;;  %v5427_v57 = vrot.slane %v5411_v51, 9 }
  0x97   : > { %6004 = vmatprep.subr.bf16.mxu1 %v7150_v39  ;;  %v2913_v27 = vsel %vm6896_vm6, %v2911_v21, %v2912_v9  ;;  %v5444_v45 = vcombine.low %v2917_v35, %v2920_v36  ;;  %v2300_v15 = vshrl.u32 %v7103_v34, 16  ;;  %v5169_v49 = vcombine.low %v6838_v8, %v6844_v19  ;;  %v1198_v8 = vld [vmem:[%s6655_s28] sm:$0xe]  ;;  %v1199_v19 = vld [vmem:[%s6655_s28 + $0xc] sm:$0xe] }
  0x98   : > { %v5443_v37 = vcombine.low %v2910_v3, %v2913_v27  ;;  %v2925_v43 = vrot.slane %v2923_v32, 4  ;;  %v2924_v60 = vsel %vm6896_vm6, %v5427_v57, %v2923_v32  ;;  %v1258_v21 = vrot.slane %v7133_v23, 5  ;;  %v1200_v34 = vld [vmem:[%s6655_s28 + $0x18] sm:$0xe]  ;;  %v6493_v27 = vld [vmem:[%s6655_s28 + $0x24] sm:$0xff]   ;;  %v6495_v32 = vld [vmem:[%s6655_s28 + $0x30] sm:$0xff]  }
  0x99   : > { %v2302_v6 = vrot.slane %v2300_v15, 4  ;;  %v2306_v9 = vshll.u32 %v7106_v22, 16  ;;  %v1251_v23 = vrot.slane %v7099_v31, 5  ;;  %v1265_v20 = vrot.slane %v7142_v29, 5  ;;  %v1202_v36 = vld [vmem:[%s6655_s28 + $0x30] sm:$0xe] }
  0x9a   : > { %v2927_v52 = vsel %vm6896_vm6, %v2925_v43, %v2926_v44  ;;  %v5171_v18 = vcombine.low %v6890_v48, %v6903_v7  ;;  %v1272_v26 = vrot.slane %v7174_v61, 5  ;;  %v1279_v3 = vrot.slane %v7180_v46, 5  ;;  %v6547_v48 = vld [vmem:[%s6655_s28 + $0x20] sm:$0x1]  ;;  %v6548_v57 = vld [vmem:[%s6655_s28 + $0x2c] sm:$0x1] }
  0x9b   : > { %v5445_v25 = vcombine.low %v2924_v60, %v2927_v52  ;;  %v5172_v22 = vcombine.low %v6922_v38, %v6929_v14  ;;  %v5173_v31 = vcombine.low %v6948_v12, %v6956_v24  ;;  %v5195_v29 = vrot.slane %v1198_v8, 9  ;;  %v7251_v46 = vld [vmem:[%s8483_s1 + $0x40] sm:$0xff]  }
  0x9c   : > { %6095 = vmatmul.mubr.msk.bf16.gmra.mrb[20].mxu0 %vm693_vm3, %v5441_v1  ;;  %v7219_v1 = vrot.slane %v2296_v10, 5  ;;  %v5196_v35 = vrot.slane %v1199_v19, 9  ;;  %v1260_v13 = vrot.slane %v1258_v21, 4  ;;  %v5197_v51 = vrot.slane %v1200_v34, 9  ;;  %v6549_v10 = vld [vmem:[%s6655_s28 + $0x38] sm:$0x1] }
  0x9d   : > { %5943 = vmatmul.mubr.msk.bf16.gmra.mrb[4].mxu1 %vm693_vm3, %v5165_v63  ;;  %6098 = vmatprep.mubr.msk.bf16.mxu0 %vm693_vm3, %v5442_v11  ;;  %v5170_v63 = vcombine.low %v6869_v5, %v6875_v17  ;;  %v6545_v11 = vld [vmem:[%s6655_s28 + $0x8] sm:$0x1]  ;;  %v6546_v5 = vld [vmem:[%s6655_s28 + $0x14] sm:$0x1]  ;;  %v1268_v7 = vrot.slane %v6547_v48, 5  ;;  %v5174_v38 = vcombine.low %v6980_v50, %v6985_v58  ;;  %v5175_v14 = vcombine.low %v7008_v40, %v7013_v42 }
  0x9e   : > { %5946 = vmatprep.mubr.msk.bf16.mxu1 %vm693_vm3, %v5166_v54  ;;  %8503 = vst [vmem:[#allocation2_spill] sm:$0xff] %v7219_v1  ;;  %v1254_v59 = vrot.slane %v6545_v11, 5  ;;  %v1261_v17 = vrot.slane %v6546_v5, 5  ;;  %v1201_v54 = vld [vmem:[%s6655_s28 + $0x24] sm:$0xe]  ;;  %v2303_v55 = vor.u32 %v2302_v6, %v7219_v1  ;;  %v1253_v56 = vrot.slane %v1251_v23, 4 }
  0x9f   : > { %v5198_v61 = vrot.slane %v1201_v54, 9  ;;  %v1275_v43 = vrot.slane %v6548_v57, 5  ;;  %v5199_v44 = vrot.slane %v1202_v36, 9  ;;  %v5176_v60 = vcombine.low %v7032_v33, %v7037_v30  ;;  %v1204_v6 = vld [vmem:[%s6655_s28 + $0x48] sm:$0xe]  ;;  %v6501_v58 = vld [vmem:[%s6655_s28 + $0x54] sm:$0xff]  }
  0xa0   : > { %v7264_v52 = vsel %vm6896_vm6, %v5195_v29, %v1251_v23  ;;  %v1282_v15 = vrot.slane %v6549_v10, 5  ;;  %v7285_v11 = vrot.slane %v2303_v55, 4  ;;  %v5530_v34 = vld [vmem:[%s6655_s28 + $0x18] sm:$0xf]  ;;  %v6499_v5 = vld [vmem:[%s6655_s28 + $0x48] sm:$0xff]  }
  0xa1   : > { %v7300_v19 = vsel %vm6896_vm6, %v5198_v61, %v1272_v26  ;;  %v6550_v23 = vld [vmem:[%s6655_s28 + $0x44] sm:$0x1]  ;;  %v1205_v55 = vld [vmem:[%s6655_s28 + $0x54] sm:$0xe]  ;;  %v3641_v48 = vshll.u32 %v5530_v34, 16 }
  0xa2   : > { %8505 = vst [vmem:[#allocation4_spill] sm:$0xff] %v7285_v11  ;;  %v5202_v10 = vrot.slane %v1205_v55, 9  ;;  %v5536_v55 = vld [vmem:[%s6655_s28 + $0x30] sm:$0xf]  ;;  %v5537_v50 = vld [vmem:[%s6655_s28 + $0x34] sm:$0xf] }
  0xa3   : > { %v3643_v24 = vrot.slane %v3641_v48, 5 }
  0xa4   : > { %6099 = vmatmul.mubr.msk.bf16.gmra.mrb[24].mxu0 %vm693_vm3, %v5443_v37  ;;  %v1203_v37 = vld [vmem:[%s6655_s28 + $0x3c] sm:$0xe] }
  0xa5   : > { %5947 = vmatmul.mubr.msk.bf16.gmra.mrb[8].mxu1 %vm693_vm3, %v5167_v41  ;;  %6102 = vmatprep.mubr.msk.bf16.mxu0 %vm693_vm3, %v5444_v45  ;;  %v1267_v41 = vrot.slane %v1265_v20, 4  ;;  %v1274_v45 = vrot.slane %v1272_v26, 4 }
  0xa6   : > { %5950 = vmatprep.mubr.msk.bf16.mxu1 %vm693_vm3, %v5168_v47  ;;  %v1281_v47 = vrot.slane %v1279_v3, 4 }
  0xa7   : > { %v7296_v8 = vsel %vm6896_vm6, %v1267_v41, %v1268_v7  ;;  %v7315_v26 = vsel %vm6896_vm6, %v1274_v45, %v1275_v43  ;;  %v6552_v45 = vld [vmem:[%s6655_s28 + $0x50] sm:$0x1]  ;;  %v3695_v41 = vshll.u32 %v5537_v50, 16 }
  0xa8   : > { %v1296_v57 = vrot.slane %v6552_v45, 5  ;;  %v8513_v11 = vcombine.low %v7300_v19, %v7315_v26 }
  0xac   : > { %6103 = vmatmul.mubr.msk.bf16.gmra.mrb[28].mxu0 %vm693_vm3, %v5445_v25  ;;  %v1286_v25 = vrot.slane %v7199_v0, 5  ;;  %v7282_v0 = vsel %vm6896_vm6, %v5197_v51, %v1265_v20  ;;  %v1289_v20 = vrot.slane %v6550_v23, 5  ;;  %v3638_v51 = vshrl.u32 %v5530_v34, 16  ;;  %v7359_v34 = vld [vmem:[%s6655_s28 + $0x5c] sm:$0x1] }
  0xad   : > { %5951 = vmatmul.mubr.msk.bf16.gmra.mrb[12].mxu1 %vm693_vm3, %v5169_v49  ;;  %6108 = vmatprep.mubr.msk.bf16.mxu0 %vm693_vm3, %v6490_v53  ;;  %v7268_v49 = vrot.slane %v2306_v9, 5  ;;  %v7274_v53 = vsel %vm6896_vm6, %v5196_v35, %v1258_v21  ;;  %v7292_v21 = vsel %vm6896_vm6, %v1253_v56, %v1254_v59  ;;  %v5200_v9 = vrot.slane %v1203_v37, 9  ;;  %v6551_v59 = vld [vmem:[%s6655_s28 + $0x4c] sm:$0xf] }
  0xae   : > { %5954 = vmatprep.mubr.msk.bf16.mxu1 %vm693_vm3, %v5170_v63  ;;  %v7278_v63 = vsel %vm6896_vm6, %v1260_v13, %v1261_v17  ;;  %v7306_v17 = vsel %vm6896_vm6, %v5199_v44, %v1279_v3  ;;  %v1293_v54 = vrot.slane %v6551_v59, 5  ;;  %v1288_v3 = vrot.slane %v1286_v25, 4  ;;  %v7330_v13 = vld [vmem:[%s6655_s28 + $0x60] sm:$0xe] }
  0xaf   : > { %8504 = vst [vmem:[#allocation3_spill] sm:$0xff] %v7268_v49  ;;  %v7340_v43 = vsel %vm6896_vm6, %v5200_v9, %v1286_v25  ;;  %v6553_v25 = vld [vmem:[%s6655_s28 + $0x58] sm:$0xf]  ;;  %v1303_v9 = vrot.slane %v7359_v34, 5  ;;  %v5203_v23 = vrot.slane %v7330_v13, 9  ;;  %v3640_v12 = vrot.slane %v3638_v51, 4 }
  0xb0   : > { %v1295_v37 = vrot.slane %v1293_v54, 4  ;;  %v7344_v44 = vsel %vm6896_vm6, %v1288_v3, %v1289_v20  ;;  %v6555_v20 = vld [vmem:[%s6655_s28 + $0x64] sm:$0xf]  ;;  %v6556_v34 = vld [vmem:[%s6655_s28 + $0x70] sm:$0xf]  ;;  %v3699_v56 = vshrl.u32 %v5537_v50, 16 }
  0xb1   : > { %v1307_v59 = vrot.slane %v6555_v20, 5  ;;  %v1314_v20 = vrot.slane %v6556_v34, 5  ;;  %v5535_v34 = vld [vmem:[%s6655_s28 + $0x2c] sm:$0x1] }
  0xb2   : > { %v7376_v3 = vsel %vm6896_vm6, %v1295_v37, %v1296_v57  ;;  %v3686_v37 = vshrl.u32 %v5536_v55, 16  ;;  %v3689_v57 = vshll.u32 %v5536_v55, 16 }
  0xb3   : > { %v1309_v36 = vrot.slane %v1307_v59, 4 }
  0xb4   : > { %6109 = vmatmul.mubr.msk.bf16.vlgmr.msra.gmra.mrb[0].mxu0 %vm693_vm3, %v6493_v27  ;;  %v7319_v27 = vsel %vm6896_vm6, %v1281_v47, %v1282_v15  ;;  %v5532_v15 = vld [vmem:[%s6655_s28 + $0x20] sm:$0x1]  ;;  %v3691_v50 = vrot.slane %v3689_v57, 5  ;;  %v6507_v57 = vld [vmem:[%s6655_s28 + $0x78] sm:$0xff]  }
  0xb5   : > { %5955 = vmatmul.mubr.msk.bf16.gmra.mrb[16].mxu1 %vm693_vm3, %v5171_v18  ;;  %6141 = vmatpush3.bf16.msra.mxu0 %v6961_v16  ;;  %v6497_v16 = vld [vmem:[%s6655_s28 + $0x3c] sm:$0xff]   ;;  %v3657_v48 = vshll.u32 %v5532_v15, 16 }
  0xb6   : > { %5958 = vmatprep.mubr.msk.bf16.mxu1 %vm693_vm3, %v5172_v22  ;;  %6112 = vmatprep.mubr.msk.bf16.mxu0 %vm693_vm3, %v6495_v32  ;;  %v5531_v18 = vld [vmem:[%s6655_s28 + $0x1c] sm:$0xf]  ;;  %v5201_v22 = vrot.slane %v1204_v6, 9  ;;  %v5533_v6 = vld [vmem:[%s6655_s28 + $0x24] sm:$0xf] }
  0xb7   : > { %6174 = vmatprep.subr.bf16.mxu0 %v7251_v46  ;;  %v3647_v7 = vshll.u32 %v5531_v18, 16  ;;  %v3651_v61 = vshrl.u32 %v5531_v18, 16  ;;  %v3665_v13 = vshll.u32 %v5533_v6, 16  ;;  %v3644_v18 = vor.u32 %v3643_v24, %v3640_v12 }
  0xb8   : > { %v7348_v47 = vsel %vm6896_vm6, %v5201_v22, %v1293_v54  ;;  %v5534_v54 = vld [vmem:[%s6655_s28 + $0x28] sm:$0xf]  ;;  %v3662_v22 = vshrl.u32 %v5533_v6, 16  ;;  %v1316_v24 = vrot.slane %v1314_v20, 4 }
  0xb9   : > { %v3667_v29 = vrot.slane %v3665_v13, 5  ;;  %v3688_v13 = vrot.slane %v3686_v37, 4  ;;  %v3645_v40 = vrot.slane %v3644_v18, 4 }
  0xba   : > { %v3664_v15 = vrot.slane %v3662_v22, 4  ;;  %v5538_v22 = vld [vmem:[%s6655_s28 + $0x38] sm:$0x1] }
  0xbb   : > { %v3705_v37 = vshll.u32 %v5538_v22, 16 }
  0xbc   : > { %6113 = vmatmul.mubr.msk.bf16.gmra.mrb[4].mxu0 %vm693_vm3, %v6497_v16  ;;  %v1300_v16 = vrot.slane %v6553_v25, 5  ;;  %v1207_v25 = vld [vmem:[%s6655_s28 + $0x6c] sm:$0xe] }
  0xbd   : > { %5959 = vmatmul.mubr.msk.bf16.gmra.mrb[20].mxu1 %vm693_vm3, %v5173_v31  ;;  %6116 = vmatprep.mubr.msk.bf16.mxu0 %vm693_vm3, %v6499_v5  ;;  %v7369_v31 = vrot.slane %v3647_v7, 5  ;;  %v3653_v5 = vrot.slane %v3651_v61, 4  ;;  %v3671_v7 = vshll.u32 %v5534_v54, 16  ;;  %v3675_v61 = vshrl.u32 %v5534_v54, 16 }
  0xbe   : > { %5962 = vmatprep.mubr.msk.bf16.mxu1 %vm693_vm3, %v5174_v38  ;;  %v6503_v38 = vld [vmem:[%s6655_s28 + $0x60] sm:$0xff]   ;;  %v7383_v51 = vsel %vm6896_vm6, %v5202_v10, %v1300_v16  ;;  %v1302_v45 = vrot.slane %v1300_v16, 4  ;;  %v6557_v10 = vld [vmem:[%s6655_s28 + $0x68] sm:$0x1]  ;;  %v7390_v16 = vrot.slane %v3657_v48, 5  ;;  %v5204_v54 = vrot.slane %v1207_v25, 9 }
  0xbf   : > { %v3654_v6 = vor.u32 %v3653_v5, %v7369_v31  ;;  %v1310_v35 = vrot.slane %v6557_v10, 5  ;;  %v7393_v32 = vrot.slane %v3671_v7, 5  ;;  %v3677_v12 = vrot.slane %v3675_v61, 4  ;;  %v6558_v5 = vld [vmem:[%s6655_s28 + $0x74] sm:$0x1]  ;;  %v6505_v25 = vld [vmem:[%s6655_s28 + $0x6c] sm:$0xff]  }
  0xc0   : > { %v1317_v55 = vrot.slane %v6558_v5, 5  ;;  %v7412_v48 = vsel %vm6896_vm6, %v5203_v23, %v1307_v59  ;;  %v3668_v7 = vor.u32 %v3667_v29, %v3664_v15  ;;  %v3681_v61 = vshll.u32 %v5535_v34, 16  ;;  %v6560_v10 = vld [vmem:[%s6655_s28 + $0x88] sm:$0xf] }
  0xc1   : > { %v3655_v42 = vrot.slane %v3654_v6, 4  ;;  %v7417_v33 = vsel %vm6896_vm6, %v1302_v45, %v1303_v9  ;;  %v7425_v23 = vsel %vm6896_vm6, %v1309_v36, %v1310_v35  ;;  %v7429_v29 = vsel %vm6896_vm6, %v5204_v54, %v1314_v20  ;;  %v1209_v45 = vld [vmem:[%s6655_s28 + $0x84] sm:$0xe]  ;;  %v5539_v20 = vld [vmem:[%s6655_s28 + $0x3c] sm:$0xf] }
  0xc2   : > { %v7433_v9 = vsel %vm6896_vm6, %v1316_v24, %v1317_v55  ;;  %v3692_v59 = vor.u32 %v3691_v50, %v3688_v13  ;;  %v3650_v6 = vsel %vm6674_vm2, %v3645_v40, %v7369_v31  ;;  %v1328_v15 = vrot.slane %v6560_v10, 5  ;;  %v6561_v24 = vld [vmem:[%s6655_s28 + $0x80] sm:$0x1] }
  0xc3   : > { %v3660_v35 = vsel %vm6674_vm2, %v3655_v42, %v7390_v16  ;;  %v3669_v54 = vrot.slane %v3668_v7, 4  ;;  %v3683_v34 = vrot.slane %v3681_v61, 5  ;;  %v1324_v5 = vrot.slane %v6561_v24, 5  ;;  %v7447_v55 = vld [vmem:[%s6655_s28 + $0x40] sm:$0xf] }
  0xc4   : > { %6117 = vmatmul.mubr.msk.bf16.gmra.mrb[8].mxu0 %vm693_vm3, %v6501_v58  ;;  %v3701_v58 = vrot.slane %v3699_v56, 4  ;;  %v1208_v56 = vld [vmem:[%s6655_s28 + $0x78] sm:$0xe]  ;;  %8506 = vst [vmem:[#allocation5_spill] sm:$0xff] %v7447_v55  ;;  %v3707_v13 = vrot.slane %v3705_v37, 5  ;;  %v5206_v16 = vrot.slane %v1209_v45, 9  ;;  %v8507_v50 = vcombine.low %v7047_v62, %v7059_v4 }
  0xc5   : > { %5963 = vmatmul.mubr.msk.bf16.gmra.mrb[24].mxu1 %vm693_vm3, %v5175_v14  ;;  %6120 = vmatprep.mubr.msk.bf16.mxu0 %vm693_vm3, %v6503_v38  ;;  %v7406_v14 = vrot.slane %v3695_v41, 5  ;;  %v6559_v41 = vld [vmem:[%s6655_s28 + $0x7c] sm:$0xf]  ;;  %v3693_v40 = vrot.slane %v3692_v59, 4  ;;  %v6562_v42 = vld [vmem:[%s6655_s28 + $0x8c] sm:$0x1]  ;;  %v3674_v45 = vsel %vm6674_vm2, %v3669_v54, %v7393_v32 }
  0xc6   : > { %5966 = vmatprep.mubr.msk.bf16.mxu1 %vm693_vm3, %v5176_v60  ;;  %v3678_v60 = vor.u32 %v3677_v12, %v7393_v32  ;;  %v1321_v18 = vrot.slane %v6559_v41, 5  ;;  %v5205_v12 = vrot.slane %v1208_v56, 9  ;;  %v3710_v7 = vshrl.u32 %v5539_v20, 16  ;;  %v6508_v41 = vld [vmem:[%s6655_s28 + $0x84] sm:$0xff]   ;;  %v6509_v59 = vld [vmem:[%s6655_s28 + $0x90] sm:$0xff]  }
  0xc7   : > { %v3702_v36 = vor.u32 %v3701_v58, %v7406_v14  ;;  %v1331_v58 = vrot.slane %v6562_v42, 5  ;;  %v3713_v61 = vshll.u32 %v5539_v20, 16  ;;  %v1330_v56 = vrot.slane %v1328_v15, 4  ;;  %v7487_v20 = vld [vmem:[%s6655_s28 + $0x4c] sm:$0xf] }
  0xc8   : > { %v3679_v31 = vrot.slane %v3678_v60, 4  ;;  %v1323_v22 = vrot.slane %v1321_v18, 4  ;;  %v3719_v62 = vshll.u32 %v7447_v55, 16  ;;  %v3723_v4 = vshrl.u32 %v7447_v55, 16  ;;  %v7565_v37 = vld [vmem:[%s6655_s28 + $0x5c] sm:$0x1] }
  0xc9   : > { %v3703_v60 = vrot.slane %v3702_v36, 4  ;;  %v7479_v10 = vsel %vm6896_vm6, %v5205_v12, %v1321_v18  ;;  %v3698_v24 = vsel %vm6674_vm2, %v3693_v40, %v7406_v14  ;;  %v7494_v32 = vsel %vm6896_vm6, %v5206_v16, %v1328_v15  ;;  %v7498_v18 = vld [vmem:[%s6655_s28 + $0x58] sm:$0xf]  ;;  %v7512_v40 = vld [vmem:[%s6655_s28 + $0x90] sm:$0xe] }
  0xca   : > { %v3684_v36 = vsel %vm6674_vm2, %v3679_v31, %v3683_v34  ;;  %v3712_v54 = vrot.slane %v3710_v7, 4  ;;  %v3715_v34 = vrot.slane %v3713_v61, 5  ;;  %v5545_v31 = vld [vmem:[%s6655_s28 + $0x54] sm:$0xf]  ;;  %v3725_v14 = vrot.slane %v3723_v4, 4 }
  0xcb   : > { %v3708_v12 = vsel %vm6674_vm2, %v3703_v60, %v3707_v13  ;;  %v3743_v42 = vshll.u32 %v7487_v20, 16  ;;  %v3747_v7 = vshrl.u32 %v7487_v20, 16  ;;  %v3758_v13 = vshrl.u32 %v5545_v31, 16  ;;  %v1211_v38 = vld [vmem:[%s6655_s28 + $0x9c] sm:$0xe] }
  0xcc   : > { %6121 = vmatmul.mubr.msk.bf16.gmra.mrb[12].mxu0 %vm693_vm3, %v6505_v25  ;;  %v8508_v25 = vcombine.low %v7264_v52, %v7292_v21  ;;  %v7467_v52 = vcombine.low %v3650_v6, %v3660_v35  ;;  %v7483_v6 = vsel %vm6896_vm6, %v1323_v22, %v1324_v5  ;;  %v5542_v35 = vld [vmem:[%s6655_s28 + $0x48] sm:$0xf]  ;;  %v7504_v5 = vsel %vm6896_vm6, %v1330_v56, %v1331_v58  ;;  %v7507_v22 = vld [vmem:[%s6655_s28 + $0x44] sm:$0x1] }
  0xcd   : > { %5967 = vmatmul.mubr.msk.bf16.gmra.mrb[28].mxu1 %vm693_vm3, %v8507_v50  ;;  %6124 = vmatprep.mubr.msk.bf16.mxu0 %vm693_vm3, %v6507_v57  ;;  %8509 = vst [vmem:[#allocation6_spill] sm:$0xff] %v7507_v22  ;;  %v7509_v50 = vrot.slane %v3719_v62, 5  ;;  %v3734_v15 = vshrl.u32 %v5542_v35, 16  ;;  %v3737_v16 = vshll.u32 %v5542_v35, 16  ;;  %v3761_v61 = vshll.u32 %v5545_v31, 16 }
  0xce   : > { %5972 = vmatprep.mubr.msk.bf16.mxu1 %vm693_vm3, %v8508_v25  ;;  %v3767_v58 = vshll.u32 %v7498_v18, 16  ;;  %v3771_v25 = vshrl.u32 %v7498_v18, 16  ;;  %v8510_v60 = vcombine.low %v7274_v53, %v7278_v63  ;;  %v7524_v56 = vcombine.low %v3674_v45, %v3684_v36  ;;  %v7541_v35 = vld [vmem:[%s6655_s28 + $0x50] sm:$0x1]  ;;  %v6565_v62 = vld [vmem:[%s6655_s28 + $0x98] sm:$0x1] }
  0xcf   : > { %v7528_v4 = vcombine.low %v3698_v24, %v3708_v12  ;;  %v8511_v53 = vcombine.low %v7282_v0, %v7296_v8  ;;  %v3726_v45 = vor.u32 %v3725_v14, %v7509_v50  ;;  %v5548_v24 = vld [vmem:[%s6655_s28 + $0x60] sm:$0xf]  ;;  %v3736_v31 = vrot.slane %v3734_v15, 4  ;;  %v7547_v8 = vld [vmem:[%s6655_s28 + $0x64] sm:$0xf]  ;;  %v6511_v14 = vld [vmem:[%s6655_s28 + $0xa8] sm:$0xff]  }
  0xd0   : > { %v7544_v12 = vrot.slane %v3743_v42, 5  ;;  %v3749_v0 = vrot.slane %v3747_v7, 4  ;;  %v3763_v15 = vrot.slane %v3761_v61, 5  ;;  %v6564_v7 = vld [vmem:[%s6655_s28 + $0x94] sm:$0xf]  ;;  %v1338_v21 = vrot.slane %v6565_v62, 5 }
  0xd1   : > { %v1335_v63 = vrot.slane %v6564_v7, 5  ;;  %v3753_v57 = vshll.u32 %v7541_v35, 16  ;;  %v3782_v36 = vshrl.u32 %v5548_v24, 16  ;;  %v3795_v61 = vshrl.u32 %v7547_v8, 16  ;;  %v6566_v7 = vld [vmem:[%s6655_s28 + $0xa0] sm:$0xf] }
  0xd2   : > { %v1342_v55 = vrot.slane %v6566_v7, 5  ;;  %v3727_v62 = vrot.slane %v3726_v45, 4  ;;  %v1349_v45 = vrot.slane %v7037_v30, 5  ;;  %v7592_v7 = vld [vmem:[%s6655_s28 + $0x68] sm:$0x1]  ;;  %v6512_v30 = vld [vmem:[%s6655_s28 + $0xb4] sm:$0xff]  }
  0xd3   : > { %v3784_v19 = vrot.slane %v3782_v36, 4  ;;  %8515 = vst [vmem:[#allocation8_spill] sm:$0xff] %v7592_v7  ;;  %v6513_v36 = vld [vmem:[%s6655_s28 + $0xc0] sm:$0xff]  }
  0xd4   : > { %6125 = vmatmul.mubr.msk.bf16.gmra.mrb[16].mxu0 %vm693_vm3, %v6508_v41  ;;  %v3729_v41 = vshll.u32 %v7507_v22, 16  ;;  %v3785_v22 = vshll.u32 %v5548_v24, 16  ;;  %v3777_v24 = vshll.u32 %v7565_v37, 16 }
  0xd5   : > { %5973 = vmatmul.mubr.msk.bf16.vlgmr.msra.gmra.mrb[0].mxu1 %vm693_vm3, %v8510_v60  ;;  %6128 = vmatprep.mubr.msk.bf16.mxu0 %vm693_vm3, %v6509_v59  ;;  %v3716_v59 = vor.u32 %v3715_v34, %v3712_v54  ;;  %v7552_v54 = vld [vmem:[%s8483_s1 + $0x20] sm:$0xff]   ;;  %v3760_v60 = vrot.slane %v3758_v13, 4  ;;  %v3791_v13 = vshll.u32 %v7547_v8, 16 }
  0xd6   : > { %6005 = vmatpush3.bf16.msra.mxu1 %v7150_v39  ;;  %5976 = vmatprep.mubr.msk.bf16.mxu1 %vm693_vm3, %v8511_v53  ;;  %v3739_v39 = vrot.slane %v3737_v16, 5  ;;  %8512 = vst [vmem:[#allocation7_spill] sm:$0xff] %v7552_v54  ;;  %v6510_v34 = vld [vmem:[%s6655_s28 + $0x9c] sm:$0xff]   ;;  %v7557_v53 = vrot.slane %v3767_v58, 5  ;;  %v3773_v16 = vrot.slane %v3771_v25, 4  ;;  %v7559_v42 = vrot.slane %v3729_v41, 5 }
  0xd7   : > { %6208 = vmatprep.subr.bf16.mxu1 %v7552_v54  ;;  %v7570_v58 = vrot.slane %v3716_v59, 4  ;;  %v3750_v41 = vor.u32 %v3749_v0, %v7544_v12  ;;  %v3764_v54 = vor.u32 %v3763_v15, %v3760_v60  ;;  %v1337_v59 = vrot.slane %v1335_v63, 4  ;;  %v1212_v0 = vld [vmem:[%s6655_s28 + $0xa8] sm:$0xe] }
  0xd8   : > { %v3740_v25 = vor.u32 %v3739_v39, %v3736_v31  ;;  %v3774_v1 = vor.u32 %v3773_v16, %v7557_v53  ;;  %v3755_v31 = vrot.slane %v3753_v57, 5  ;;  %v5208_v39 = vrot.slane %v1211_v38, 9  ;;  %v6567_v57 = vld [vmem:[%s6655_s28 + $0xa4] sm:$0x1] }
  0xd9   : > { %v3787_v26 = vrot.slane %v3785_v22, 5  ;;  %v7588_v60 = vrot.slane %v3791_v13, 5  ;;  %v3751_v15 = vrot.slane %v3750_v41, 4  ;;  %v1344_v16 = vrot.slane %v1342_v55, 4  ;;  %v6568_v41 = vld [vmem:[%s6655_s28 + $0xb0] sm:$0x1] }
  0xda   : > { %v1345_v38 = vrot.slane %v6567_v57, 5  ;;  %v5209_v49 = vrot.slane %v1212_v0, 9  ;;  %v3722_v22 = vsel %vm6674_vm2, %v7570_v58, %v7509_v50  ;;  %v8516_v13 = vrot.slane %v7512_v40, 9  ;;  %v1213_v50 = vld [vmem:[%s6655_s28 + $0xb4] sm:$0xe] }
  0xdb   : > { %v1352_v57 = vrot.slane %v6568_v41, 5  ;;  %v3801_v0 = vshll.u32 %v7592_v7, 16  ;;  %v5551_v58 = vld [vmem:[%s6655_s28 + $0x6c] sm:$0xf]  ;;  %v7616_v40 = vsel %vm6896_vm6, %v1337_v59, %v1338_v21  ;;  %v8518_v59 = vcombine.low %v7340_v43, %v7344_v44 }
  0xdc   : > { %6129 = vmatmul.mubr.msk.bf16.gmra.mrb[20].mxu0 %vm693_vm3, %v6510_v34  ;;  %v8514_v34 = vcombine.low %v7306_v17, %v7319_v27  ;;  %v3765_v17 = vrot.slane %v3764_v54, 4  ;;  %v3775_v27 = vrot.slane %v3774_v1, 4  ;;  %v3732_v1 = vsel %vm6674_vm2, %v3727_v62, %v7559_v42 }
  0xdd   : > { %5977 = vmatmul.mubr.msk.bf16.gmra.mrb[4].mxu1 %vm693_vm3, %v8513_v11  ;;  %6132 = vmatprep.mubr.msk.bf16.mxu0 %vm693_vm3, %v6511_v14  ;;  %v3797_v11 = vrot.slane %v3795_v61, 4  ;;  %v3741_v14 = vrot.slane %v3740_v25, 4  ;;  %v7604_v61 = vsel %vm6896_vm6, %v8516_v13, %v1335_v63  ;;  %v1351_v25 = vrot.slane %v1349_v45, 4 }
  0xde   : > { %5980 = vmatprep.mubr.msk.bf16.mxu1 %vm693_vm3, %v8514_v34  ;;  %v3779_v34 = vrot.slane %v3777_v24, 5  ;;  %v3788_v54 = vor.u32 %v3787_v26, %v3784_v19  ;;  %v7623_v42 = vsel %vm6896_vm6, %v5208_v39, %v1342_v55  ;;  %v7627_v62 = vsel %vm6896_vm6, %v1344_v16, %v1345_v38  ;;  %v6569_v39 = vld [vmem:[%s6655_s28 + $0xb8] sm:$0xf] }
  0xdf   : > { %v3798_v24 = vor.u32 %v3797_v11, %v7588_v60  ;;  %v3746_v63 = vsel %vm6674_vm2, %v3741_v14, %v7544_v12  ;;  %v3756_v19 = vsel %vm6674_vm2, %v3751_v15, %v3755_v31  ;;  %v3770_v21 = vsel %vm6674_vm2, %v3765_v17, %v7557_v53  ;;  %v7676_v17 = vld [vmem:[%s6655_s28 + $0x7c] sm:$0xf] }
  0xe0   : > { %v3780_v12 = vsel %vm6674_vm2, %v3775_v27, %v3779_v34  ;;  %v7639_v55 = vsel %vm6896_vm6, %v5209_v49, %v1349_v45  ;;  %v7648_v31 = vsel %vm6896_vm6, %v1351_v25, %v1352_v57  ;;  %v5210_v53 = vrot.slane %v1213_v50, 9  ;;  %v7652_v49 = vld [vmem:[%s6655_s28 + $0x70] sm:$0xf]  ;;  %8522 = vst [vmem:[#allocation12_spill] sm:$0xff] %v7676_v17  ;;  %v5557_v27 = vld [vmem:[%s6655_s28 + $0x84] sm:$0xf] }
  0xe1   : > { %8517 = vst [vmem:[#allocation9_spill] sm:$0xff] %v7639_v55  ;;  %8519 = vst [vmem:[#allocation10_spill] sm:$0xff] %v7648_v31  ;;  %v1356_v26 = vrot.slane %v6569_v39, 5  ;;  %v3806_v45 = vshrl.u32 %v5551_v58, 16  ;;  %v8521_v43 = vcombine.low %v7348_v47, %v7376_v3  ;;  %v7658_v44 = vcombine.low %v3722_v22, %v3732_v1  ;;  %v5554_v3 = vld [vmem:[%s6655_s28 + $0x78] sm:$0xf] }
  0xe2   : > { %8520 = vst [vmem:[#allocation11_spill] sm:$0xff] %v7652_v49  ;;  %v7660_v11 = vrot.slane %v3788_v54, 4  ;;  %v7662_v14 = vrot.slane %v3798_v24, 4  ;;  %v7664_v15 = vrot.slane %v3801_v0, 5  ;;  %v7668_v38 = vcombine.low %v3746_v63, %v3756_v19  ;;  %v6514_v34 = vld [vmem:[%s6655_s28 + $0xcc] sm:$0xff]  }
  0xe3   : > { %v7672_v47 = vcombine.low %v3770_v21, %v3780_v12  ;;  %v7683_v22 = vld [vmem:[%s6655_s28 + $0xbc] sm:$0x1]  ;;  %v3809_v25 = vshll.u32 %v5551_v58, 16  ;;  %v3815_v41 = vshll.u32 %v7652_v49, 16  ;;  %v7688_v57 = vld [vmem:[%s6655_s28 + $0x88] sm:$0xf]  ;;  %v7692_v1 = vsel %vm6896_vm6, %v5210_v53, %v1356_v26 }
  0xe4   : > { %6133 = vmatmul.mubr.msk.bf16.gmra.mrb[24].mxu0 %vm693_vm3, %v6512_v30  ;;  %8523 = vst [vmem:[#allocation13_spill] sm:$0xff] %v7688_v57  ;;  %v7694_v54 = vrot.slane %v1356_v26, 4  ;;  %v7696_v24 = vrot.slane %v3806_v45, 4  ;;  %v3819_v0 = vshrl.u32 %v7652_v49, 16  ;;  %v5560_v50 = vld [vmem:[%s6655_s28 + $0x90] sm:$0xf]  ;;  %v8526_v58 = vcombine.low %v7383_v51, %v7417_v33 }
  0xe5   : > { %5981 = vmatmul.mubr.msk.bf16.gmra.mrb[8].mxu1 %vm693_vm3, %v8518_v59  ;;  %6136 = vmatprep.mubr.msk.bf16.mxu0 %vm693_vm3, %v6513_v36  ;;  %v3830_v19 = vshrl.u32 %v5554_v3, 16  ;;  %v3833_v21 = vshll.u32 %v5554_v3, 16  ;;  %v7709_v12 = vld [vmem:[%s6655_s28 + $0x94] sm:$0xf]  ;;  %v3839_v53 = vshll.u32 %v7676_v17, 16  ;;  %v3843_v39 = vshrl.u32 %v7676_v17, 16 }
  0xe6   : > { %5984 = vmatprep.mubr.msk.bf16.mxu1 %vm693_vm3, %v8521_v43  ;;  %8524 = vst [vmem:[#allocation14_spill] sm:$0xff] %v7709_v12  ;;  %v7712_v59 = vld [vmem:[%s6655_s28 + $0x74] sm:$0x1]  ;;  %v3854_v26 = vshrl.u32 %v5557_v27, 16  ;;  %v3857_v45 = vshll.u32 %v5557_v27, 16  ;;  %v3863_v43 = vshll.u32 %v7688_v57, 16 }
  0xe7   : > { %8525 = vst [vmem:[#allocation15_spill] sm:$0xff] %v7712_v59  ;;  %v3867_v36 = vshrl.u32 %v7688_v57, 16  ;;  %v3878_v30 = vshrl.u32 %v5560_v50, 16  ;;  %v3881_v3 = vshll.u32 %v5560_v50, 16  ;;  %v3811_v63 = vrot.slane %v3809_v25, 5 }
  0xe8   : > { %v7725_v27 = vrot.slane %v3815_v41, 5  ;;  %v3887_v16 = vshll.u32 %v7709_v12, 16  ;;  %v3891_v13 = vshrl.u32 %v7709_v12, 16  ;;  %v8527_v50 = vcombine.low %v7412_v48, %v7425_v23  ;;  %v5563_v41 = vld [vmem:[%s6655_s28 + $0x9c] sm:$0xf] }
  0xe9   : > { %v3821_v51 = vrot.slane %v3819_v0, 4  ;;  %v3825_v33 = vshll.u32 %v7712_v59, 16  ;;  %v3835_v25 = vrot.slane %v3833_v21, 5  ;;  %v3845_v57 = vrot.slane %v3843_v39, 4  ;;  %v7741_v17 = vld [vmem:[%s6655_s28 + $0x8c] sm:$0x1] }
  0xea   : > { %v3856_v49 = vrot.slane %v3854_v26, 4  ;;  %v3859_v12 = vrot.slane %v3857_v45, 5  ;;  %v7743_v31 = vrot.slane %v3863_v43, 5  ;;  %v3869_v48 = vrot.slane %v3867_v36, 4  ;;  %v7749_v0 = vld [vmem:[%s6655_s28 + $0x98] sm:$0x1] }
  0xeb   : > { %v3880_v23 = vrot.slane %v3878_v30, 4  ;;  %v3883_v55 = vrot.slane %v3881_v3, 5  ;;  %v7751_v59 = vrot.slane %v3887_v16, 5  ;;  %v3902_v21 = vshrl.u32 %v5563_v41, 16 }
  0xec   : > { %6137 = vmatmul.mubr.msk.bf16.gmra.mrb[28].mxu0 %vm693_vm3, %v6514_v34  ;;  %v7728_v34 = vld [vmem:[%s6655_s28 + $0x80] sm:$0x1]  ;;  %v3812_v39 = vor.u32 %v3811_v63, %v7696_v24  ;;  %v3822_v7 = vor.u32 %v3821_v51, %v7725_v27  ;;  %v3860_v30 = vor.u32 %v3859_v12, %v3856_v49  ;;  %v3870_v16 = vor.u32 %v3869_v48, %v7743_v31 }
  0xed   : > { %5985 = vmatmul.mubr.msk.bf16.gmra.mrb[12].mxu1 %vm693_vm3, %v8526_v58  ;;  %6142 = vmatprep.mubr.msk.bf16.mxu0 %vm693_vm3, %v7467_v52  ;;  %v3832_v52 = vrot.slane %v3830_v19, 4  ;;  %v7738_v58 = vrot.slane %v3839_v53, 5  ;;  %v3893_v19 = vrot.slane %v3891_v13, 4  ;;  %v3905_v53 = vshll.u32 %v5563_v41, 16 }
  0xee   : > { %5988 = vmatprep.mubr.msk.bf16.mxu1 %vm693_vm3, %v8527_v50  ;;  %v7746_v50 = vld [vmem:[%s6655_s28 + $0xa0] sm:$0xf]  ;;  %v3849_v45 = vshll.u32 %v7728_v34, 16  ;;  %v3873_v13 = vshll.u32 %v7741_v17, 16  ;;  %v3884_v24 = vor.u32 %v3883_v55, %v3880_v23  ;;  %v3897_v63 = vshll.u32 %v7749_v0, 16 }
  0xef   : > { %v3836_v26 = vor.u32 %v3835_v25, %v3832_v52  ;;  %v3846_v36 = vor.u32 %v3845_v57, %v7738_v58  ;;  %v3911_v43 = vshll.u32 %v7746_v50, 16  ;;  %v3915_v3 = vshrl.u32 %v7746_v50, 16 }
  0xf0   : > { %v8528_v51 = vcombine.low %v7429_v29, %v7433_v9  ;;  %v3827_v49 = vrot.slane %v3825_v33, 5  ;;  %v3894_v57 = vor.u32 %v3893_v19, %v7751_v59  ;;  %v3904_v12 = vrot.slane %v3902_v21, 4 }
  0xf1   : > { %v8529_v52 = vcombine.low %v7479_v10, %v7483_v6  ;;  %v3813_v55 = vrot.slane %v3812_v39, 4  ;;  %v3823_v29 = vrot.slane %v3822_v7, 4  ;;  %v3837_v9 = vrot.slane %v3836_v26, 4 }
  0xf2   : > { %v3851_v25 = vrot.slane %v3849_v45, 5  ;;  %v3847_v33 = vrot.slane %v3846_v36, 4  ;;  %v3861_v41 = vrot.slane %v3860_v30, 4  ;;  %v7777_v48 = vrot.slane %v3911_v43, 5 }
  0xf3   : > { %v3917_v23 = vrot.slane %v3915_v3, 4  ;;  %v3871_v19 = vrot.slane %v3870_v16, 4  ;;  %v3875_v21 = vrot.slane %v3873_v13, 5  ;;  %v3885_v10 = vrot.slane %v3884_v24, 4 }
  0xf4   : > { %6143 = vmatmul.mubr.msk.bf16.vlgmr.msra.gmra.mrb[0].mxu0 %vm693_vm3, %v7524_v56  ;;  %v3907_v56 = vrot.slane %v3905_v53, 5  ;;  %v3899_v6 = vrot.slane %v3897_v63, 5  ;;  %v7780_v53 = vld [vmem:[%s6655_s28 + $0xa4] sm:$0x1]  ;;  %v8530_v26 = vrot.slane %v7683_v22, 5  ;;  %v3818_v36 = vsel %vm6674_vm2, %v3813_v55, %v7725_v27 }
  0xf5   : > { %5989 = vmatmul.mubr.msk.bf16.gmra.mrb[16].mxu1 %vm693_vm3, %v8528_v51  ;;  %6175 = vmatpush3.bf16.msra.mxu0 %v7251_v46  ;;  %v5566_v46 = vld [vmem:[%s6655_s28 + $0xa8] sm:$0xf]  ;;  %v3895_v51 = vrot.slane %v3894_v57, 4  ;;  %v3828_v30 = vsel %vm6674_vm2, %v3823_v29, %v3827_v49  ;;  %v3842_v43 = vsel %vm6674_vm2, %v3837_v9, %v7738_v58  ;;  %v3852_v22 = vsel %vm6674_vm2, %v3847_v33, %v3851_v25 }
  0xf6   : > { %5992 = vmatprep.mubr.msk.bf16.mxu1 %vm693_vm3, %v8529_v52  ;;  %6146 = vmatprep.mubr.msk.bf16.mxu0 %vm693_vm3, %v7528_v4  ;;  %v3908_v52 = vor.u32 %v3907_v56, %v3904_v12  ;;  %v7783_v4 = vld [vmem:[%s6655_s28 + $0xac] sm:$0xf]  ;;  %v3926_v7 = vshrl.u32 %v5566_v46, 16  ;;  %v3929_v39 = vshll.u32 %v5566_v46, 16  ;;  %v7790_v45 = vsel %vm6896_vm6, %v7694_v54, %v8530_v26 }
  0xf7   : > { %v3866_v54 = vsel %vm6674_vm2, %v3861_v41, %v7743_v31  ;;  %v3918_v3 = vor.u32 %v3917_v23, %v7777_v48  ;;  %v3921_v16 = vshll.u32 %v7780_v53, 16  ;;  %v3876_v27 = vsel %vm6674_vm2, %v3871_v19, %v3875_v21  ;;  %v5617_v31 = vld [vmem:[%s6655_s28 + $0x48] sm:$0xe]  ;;  %v5620_v26 = vld [vmem:[%s6655_s28 + $0x6c] sm:$0xe] }
  0xf8   : > { %v3890_v58 = vsel %vm6674_vm2, %v3885_v10, %v7751_v59  ;;  %v3935_v13 = vshll.u32 %v7783_v4, 16  ;;  %v3939_v24 = vshrl.u32 %v7783_v4, 16  ;;  %v8531_v63 = vcombine.low %v7494_v32, %v7504_v5  ;;  %v7826_v59 = vld [vmem:[%s6655_s28 + $0xb0] sm:$0x1] }
  0xf9   : > { %v3909_v49 = vrot.slane %v3908_v52, 4  ;;  %v3928_v57 = vrot.slane %v3926_v7, 4  ;;  %v3931_v12 = vrot.slane %v3929_v39, 5  ;;  %v8532_v56 = vcombine.low %v7604_v61, %v7616_v40  ;;  %v5569_v40 = vld [vmem:[%s6655_s28 + $0xb4] sm:$0xf] }
  0xfa   : > { %v8533_v32 = vsel %vm6674_vm2, %v7662_v14, %v7664_v15  ;;  %v8534_v5 = vsel %vm6674_vm2, %v7660_v11, %v7588_v60  ;;  %v5228_v55 = vcombine.low %v7692_v1, %v7790_v45  ;;  %v7844_v29 = vcombine.low %v3818_v36, %v3828_v30  ;;  %v5618_v15 = vld [vmem:[%s6655_s28 + $0x54] sm:$0xe] }
  0xfb   : > { %v7846_v61 = vcombine.low %v3842_v43, %v3852_v22  ;;  %v7849_v9 = vcombine.low %v3866_v54, %v3876_v27  ;;  %v3919_v25 = vrot.slane %v3918_v3, 4  ;;  %v3923_v46 = vrot.slane %v3921_v16, 5  ;;  %v8536_v16 = vld [vmem:[#allocation8_spill] sm:$0xff] }
  0xfc   : > { %6147 = vmatmul.mubr.msk.bf16.gmra.mrb[4].mxu0 %vm693_vm3, %v7658_v44  ;;  %v3900_v44 = vsel %vm6674_vm2, %v3895_v51, %v3899_v6  ;;  %v5633_v14 = vrot.slane %v5617_v31, 9  ;;  %v7854_v60 = vrot.slane %v3935_v13, 5  ;;  %v3941_v11 = vrot.slane %v3939_v24, 4  ;;  %v5619_v6 = vld [vmem:[%s6655_s28 + $0x60] sm:$0xe]  ;;  %v8537_v13 = vld [vmem:[#allocation9_spill] sm:$0xff] }
  0xfd   : > { %5993 = vmatmul.mubr.msk.bf16.gmra.mrb[20].mxu1 %vm693_vm3, %v8531_v63  ;;  %6150 = vmatprep.mubr.msk.bf16.mxu0 %vm693_vm3, %v7668_v38  ;;  %v5586_v38 = vcombine.low %v8534_v5, %v8533_v32  ;;  %v7852_v33 = vcombine.low %v3890_v58, %v3900_v44  ;;  %v3945_v41 = vshll.u32 %v7826_v59, 16  ;;  %v3914_v23 = vsel %vm6674_vm2, %v3909_v49, %v7777_v48  ;;  %v8538_v24 = vld [vmem:[#allocation10_spill] sm:$0xff]  ;;  %v8540_v63 = vld [vmem:[#allocation11_spill] sm:$0xff] }
  0xfe   : > { %5996 = vmatprep.mubr.msk.bf16.mxu1 %vm693_vm3, %v8532_v56  ;;  %v3932_v19 = vor.u32 %v3931_v12, %v3928_v57  ;;  %v4413_v21 = vrot.slane %v7487_v20, 5  ;;  %v4416_v10 = vrot.slane %v7541_v35, 5  ;;  %v3950_v51 = vshrl.u32 %v5569_v40, 16  ;;  %v7876_v35 = vld [vmem:[%s6655_s28 + $0xb8] sm:$0xf]  ;;  %v8541_v49 = vld [vmem:[#allocation15_spill] sm:$0xff] }
  0xff   : > { %v5634_v52 = vrot.slane %v5618_v15, 9  ;;  %v4420_v7 = vrot.slane %v7498_v18, 5  ;;  %v4423_v39 = vrot.slane %v7565_v37, 5  ;;  %v3924_v36 = vsel %vm6674_vm2, %v3919_v25, %v3923_v46  ;;  %v5572_v12 = vld [vmem:[%s6655_s28 + $0xc0] sm:$0xf] }
 0x100   : > { %v3953_v30 = vshll.u32 %v5569_v40, 16  ;;  %v7870_v48 = vsel %vm6896_vm6, %v5633_v14, %v4413_v21  ;;  %v4415_v43 = vrot.slane %v4413_v21, 4  ;;  %v3942_v20 = vor.u32 %v3941_v11, %v7854_v60  ;;  %v5621_v14 = vld [vmem:[%s6655_s28 + $0x78] sm:$0xe] }
 0x101   : > { %v7880_v37 = vsel %vm6896_vm6, %v5634_v52, %v4420_v7  ;;  %v4422_v18 = vrot.slane %v4420_v7, 4  ;;  %v5635_v22 = vrot.slane %v5619_v6, 9  ;;  %v8535_v54 = vcombine.low %v7623_v42, %v7627_v62  ;;  %v6516_v6 = vld [vmem:[%s6655_s28 + $0xc] sm:$0xff]  }
 0x102   : > { %v4427_v3 = vrot.slane %v7547_v8, 5  ;;  %v4430_v27 = vrot.slane %v8536_v16, 5  ;;  %v5636_v58 = vrot.slane %v5620_v26, 9  ;;  %v8539_v31 = vcombine.low %v8537_v13, %v8538_v24  ;;  %v8543_v13 = vld [vmem:[#allocation3_spill] sm:$0xff]  ;;  %v8544_v24 = vld [vmem:[#allocation4_spill] sm:$0xff] }
 0x103   : > { %v7901_v62 = vsel %vm6896_vm6, %v4422_v18, %v4423_v39  ;;  %v4434_v44 = vrot.slane %v8540_v63, 5  ;;  %v4437_v8 = vrot.slane %v8541_v49, 5  ;;  %v3959_v57 = vshll.u32 %v7876_v35, 16  ;;  %v7938_v39 = vld [vmem:[%s6655_s28 + $0xc4] sm:$0xf]  ;;  %v8545_v49 = vld [vmem:[#allocation13_spill] sm:$0xff] }
 0x104   : > { %6151 = vmatmul.mubr.msk.bf16.gmra.mrb[8].mxu0 %vm693_vm3, %v7672_v47  ;;  %v7889_v47 = vsel %vm6896_vm6, %v4415_v43, %v4416_v10  ;;  %v5652_v56 = vcombine.low %v7880_v37, %v7901_v62  ;;  %v7911_v32 = vsel %vm6896_vm6, %v5635_v22, %v4427_v3  ;;  %v4429_v5 = vrot.slane %v4427_v3, 4  ;;  %v5340_v10 = vld [vmem:[%s6655_s28 + $0x78] sm:$0xf]  ;;  %v8542_v22 = vld [vmem:[#allocation12_spill] sm:$0xff]  ;;  %v6581_v62 = vld [vmem:[%s6655_s28 + $0xa0] sm:$0xf] }
 0x105   : > { %5997 = vmatmul.mubr.msk.bf16.gmra.mrb[24].mxu1 %vm693_vm3, %v8535_v54  ;;  %6154 = vmatprep.mubr.msk.bf16.mxu0 %vm693_vm3, %v5586_v38  ;;  %v5651_v42 = vcombine.low %v7870_v48, %v7889_v47  ;;  %v7913_v38 = vrot.slane %v3945_v41, 5  ;;  %v3963_v40 = vshrl.u32 %v7876_v35, 16  ;;  %v7918_v25 = vsel %vm6896_vm6, %v5636_v58, %v4434_v44 }
 0x106   : > { %6000 = vmatprep.mubr.msk.bf16.mxu1 %vm693_vm3, %v8539_v31  ;;  %v4436_v46 = vrot.slane %v4434_v44, 4  ;;  %v7921_v15 = vcombine.low %v3914_v23, %v3924_v36  ;;  %v7923_v11 = vrot.slane %v3932_v19, 4  ;;  %v7925_v21 = vrot.slane %v3950_v51, 4 }
 0x107   : > { %v7929_v41 = vsel %vm6896_vm6, %v4429_v5, %v4430_v27  ;;  %v7933_v52 = vrot.slane %v3942_v20, 4  ;;  %v7935_v7 = vrot.slane %v3953_v30, 5  ;;  %v7946_v51 = vrot.slane %v3959_v57, 5  ;;  %v5622_v20 = vld [vmem:[%s6655_s28 + $0x84] sm:$0xe] }
 0x108   : > { %v5653_v23 = vcombine.low %v7911_v32, %v7929_v41  ;;  %v7944_v19 = vsel %vm6896_vm6, %v4436_v46, %v4437_v8  ;;  %v3974_v26 = vshrl.u32 %v5572_v12, 16  ;;  %v5637_v43 = vrot.slane %v5621_v14, 9  ;;  %v7954_v30 = vld [vmem:[%s6655_s28 + $0xbc] sm:$0x1]  ;;  %v5575_v5 = vld [vmem:[%s6655_s28 + $0xcc] sm:$0xf] }
 0x109   : > { %v5654_v36 = vcombine.low %v7918_v25, %v7944_v19  ;;  %v3977_v18 = vshll.u32 %v5572_v12, 16  ;;  %v4441_v54 = vrot.slane %v8542_v22, 5  ;;  %v4444_v3 = vrot.slane %v7728_v34, 5  ;;  %v6517_v14 = vld [vmem:[%s6655_s28 + $0x18] sm:$0xff]   ;;  %v5623_v22 = vld [vmem:[%s6655_s28 + $0x90] sm:$0xe] }
 0x10a   : > { %v2287_v16 = vshrl.u32 %v5340_v10, 16  ;;  %v3983_v27 = vshll.u32 %v7938_v39, 16  ;;  %v2290_v58 = vshll.u32 %v5340_v10, 16  ;;  %v2309_v34 = vsel %vm6674_vm2, %v8544_v24, %v8543_v13  ;;  %v8546_v24 = vld [vmem:[#allocation14_spill] sm:$0xff]  ;;  %v6585_v19 = vld [vmem:[%s6655_s28 + $0xac] sm:$0xf] }
 0x10b   : > { %v7973_v1 = vsel %vm6896_vm6, %v5637_v43, %v4441_v54  ;;  %v4443_v45 = vrot.slane %v4441_v54, 4  ;;  %v3965_v31 = vrot.slane %v3963_v40, 4  ;;  %v3969_v63 = vshll.u32 %v7954_v30, 16 }
 0x10c   : > { %6155 = vmatmul.mubr.msk.bf16.gmra.mrb[12].mxu0 %vm693_vm3, %v7844_v29  ;;  %v3987_v29 = vshrl.u32 %v7938_v39, 16  ;;  %v2292_v44 = vrot.slane %v2290_v58, 5  ;;  %v4448_v8 = vrot.slane %v8545_v49, 5  ;;  %v3938_v57 = vsel %vm6674_vm2, %v7923_v11, %v7854_v60  ;;  %v6518_v60 = vld [vmem:[%s6655_s28 + $0x24] sm:$0xff]  }
 0x10d   : > { %6001 = vmatmul.mubr.msk.bf16.gmra.mrb[28].mxu1 %vm693_vm3, %v5228_v55  ;;  %6158 = vmatprep.mubr.msk.bf16.mxu0 %vm693_vm3, %v7846_v61  ;;  %v2289_v55 = vrot.slane %v2287_v16, 4  ;;  %v5638_v61 = vrot.slane %v5622_v20, 9  ;;  %v3956_v12 = vor.u32 %v7935_v7, %v7925_v21  ;;  %v7986_v46 = vsel %vm6896_vm6, %v4443_v45, %v4444_v3  ;;  %v7997_v7 = vld [vmem:[%s6655_s28 + $0xd0] sm:$0xf] }
 0x10e   : > { %6006 = vmatprep.mubr.msk.bf16.mxu1 %vm693_vm3, %v6516_v6  ;;  %v4451_v40 = vrot.slane %v7741_v17, 5  ;;  %v3976_v10 = vrot.slane %v3974_v26, 4  ;;  %v3979_v6 = vrot.slane %v3977_v18, 5  ;;  %v5655_v43 = vcombine.low %v7973_v1, %v7986_v46  ;;  %v8009_v18 = vld [vmem:[%s6655_s28 + $0xc8] sm:$0x1] }
 0x10f   : > { %v2293_v20 = vor.u32 %v2292_v44, %v2289_v55  ;;  %v7994_v11 = vrot.slane %v3983_v27, 5  ;;  %v3989_v21 = vrot.slane %v3987_v29, 4  ;;  %v8001_v54 = vsel %vm6896_vm6, %v5638_v61, %v4448_v8  ;;  %v8547_v55 = vld [vmem:[#allocation2_spill] sm:$0xff] }
 0x110   : > { %v4450_v3 = vrot.slane %v4448_v8, 4  ;;  %v3948_v17 = vsel %vm6674_vm2, %v7933_v52, %v7913_v38  ;;  %v3966_v26 = vor.u32 %v3965_v31, %v7946_v51  ;;  %v3998_v16 = vshrl.u32 %v5575_v5, 16  ;;  %v8548_v31 = vld [vmem:[#allocation7_spill] sm:$0xff] }
 0x111   : > { %v2294_v27 = vrot.slane %v2293_v20, 4  ;;  %v4001_v29 = vshll.u32 %v5575_v5, 16  ;;  %v5639_v13 = vrot.slane %v5623_v22, 9  ;;  %v4455_v45 = vrot.slane %v8546_v24, 5 }
 0x112   : > { %v8015_v58 = vsel %vm6896_vm6, %v4450_v3, %v4451_v40  ;;  %v4007_v38 = vshll.u32 %v7997_v7, 16  ;;  %v4011_v52 = vshrl.u32 %v7997_v7, 16  ;;  %v3980_v44 = vor.u32 %v3979_v6, %v3976_v10  ;;  %v5624_v10 = vld [vmem:[%s6655_s28 + $0x9c] sm:$0xe]  ;;  %v6519_v6 = vld [vmem:[%s6655_s28 + $0x30] sm:$0xff]  }
 0x113   : > { %v5656_v61 = vcombine.low %v8001_v54, %v8015_v58  ;;  %v3993_v49 = vshll.u32 %v8009_v18, 16  ;;  %v3971_v5 = vrot.slane %v3969_v63, 5  ;;  %v8036_v40 = vsel %vm6896_vm6, %v5639_v13, %v4455_v45  ;;  %v6520_v13 = vld [vmem:[%s6655_s28 + $0x3c] sm:$0xff]  }
 0x114   : > { %6159 = vmatmul.mubr.msk.bf16.gmra.mrb[16].mxu0 %vm693_vm3, %v7849_v9  ;;  %v2299_v9 = vsel %vm6674_vm2, %v2294_v27, %v8547_v55  ;;  %v4458_v20 = vrot.slane %v7749_v0, 5  ;;  %v5592_v22 = vcombine.low %v3938_v57, %v3948_v17  ;;  %v3957_v3 = vrot.slane %v3956_v12, 4 }
 0x115   : > { %6007 = vmatmul.mubr.msk.bf16.vlgmr.msra.gmra.mrb[0].mxu1 %vm693_vm3, %v6517_v14  ;;  %6162 = vmatprep.mubr.msk.bf16.mxu0 %vm693_vm3, %v7852_v33  ;;  %v3990_v33 = vor.u32 %v3989_v21, %v7994_v11  ;;  %v8032_v8 = vcombine.low %v2299_v9, %v2309_v34  ;;  %v4457_v14 = vrot.slane %v4455_v45, 4  ;;  %v3967_v27 = vrot.slane %v3966_v26, 4  ;;  %v8042_v21 = vld [vmem:[%s6655_s28 + $0xd4] sm:$0x1]  ;;  %v5613_v9 = vld [vmem:[%s6655_s28 + $0x18] sm:$0xe] }
 0x116   : > { %6209 = vmatpush3.bf16.msra.mxu1 %v8548_v31  ;;  %6010 = vmatprep.mubr.msk.bf16.mxu1 %vm693_vm3, %v6518_v60  ;;  %v4000_v60 = vrot.slane %v3998_v16, 4  ;;  %v4003_v24 = vrot.slane %v4001_v29, 5  ;;  %v8044_v34 = vrot.slane %v4007_v38, 5  ;;  %v4013_v55 = vrot.slane %v4011_v52, 4 }
 0x117   : > { %v8048_v63 = vsel %vm6896_vm6, %v4457_v14, %v4458_v20  ;;  %v3981_v45 = vrot.slane %v3980_v44, 4  ;;  %v3991_v0 = vrot.slane %v3990_v33, 4  ;;  %v3995_v57 = vrot.slane %v3993_v49, 5  ;;  %v6571_v33 = vld [vmem:[%s6655_s28 + $0x1c] sm:$0xf] }
 0x118   : > { %v5657_v12 = vcombine.low %v8036_v40, %v8048_v63  ;;  %v5640_v17 = vrot.slane %v5624_v10, 9  ;;  %v4462_v26 = vrot.slane %v7746_v50, 5  ;;  %v3962_v16 = vsel %vm6674_vm2, %v3957_v3, %v7946_v51  ;;  %v5625_v14 = vld [vmem:[%s6655_s28 + $0xa8] sm:$0xe] }
 0x119   : > { %v3972_v29 = vsel %vm6674_vm2, %v3967_v27, %v3971_v5  ;;  %v4017_v38 = vshll.u32 %v8042_v21, 16  ;;  %v4465_v52 = vrot.slane %v7780_v53, 5  ;;  %v4004_v50 = vor.u32 %v4003_v24, %v4000_v60  ;;  %v6521_v60 = vld [vmem:[%s6655_s28 + $0x48] sm:$0xff]   ;;  %v6572_v24 = vld [vmem:[%s6655_s28 + $0x20] sm:$0x1] }
 0x11a   : > { %v8069_v51 = vsel %vm6896_vm6, %v5640_v17, %v4462_v26  ;;  %v4464_v31 = vrot.slane %v4462_v26, 4  ;;  %v3986_v53 = vsel %vm6674_vm2, %v3981_v45, %v7994_v11  ;;  %v3996_v44 = vsel %vm6674_vm2, %v3991_v0, %v3995_v57  ;;  %v5626_v26 = vld [vmem:[%s6655_s28 + $0xb4] sm:$0xe] }
 0x11b   : > { %v4385_v49 = vrot.slane %v6571_v33, 5  ;;  %v5593_v20 = vcombine.low %v3962_v16, %v3972_v29  ;;  %v5629_v3 = vrot.slane %v5613_v9, 9  ;;  %v5594_v11 = vcombine.low %v3986_v53, %v3996_v44  ;;  %v5615_v33 = vld [vmem:[%s6655_s28 + $0x30] sm:$0xe] }
 0x11c   : > { %6163 = vmatmul.mubr.msk.bf16.gmra.mrb[20].mxu0 %vm693_vm3, %v7921_v15  ;;  %v4014_v15 = vor.u32 %v4013_v55, %v8044_v34  ;;  %v8080_v5 = vsel %vm6896_vm6, %v4464_v31, %v4465_v52  ;;  %v4005_v10 = vrot.slane %v4004_v50, 4  ;;  %v4388_v55 = vrot.slane %v6572_v24, 5  ;;  %v5614_v52 = vld [vmem:[%s6655_s28 + $0x24] sm:$0xe]  ;;  %v6573_v50 = vld [vmem:[%s6655_s28 + $0x28] sm:$0xf] }
 0x11d   : > { %6011 = vmatmul.mubr.msk.bf16.gmra.mrb[4].mxu1 %vm693_vm3, %v6519_v6  ;;  %6166 = vmatprep.mubr.msk.bf16.mxu0 %vm693_vm3, %v5592_v22  ;;  %v4019_v22 = vrot.slane %v4017_v38, 5  ;;  %v5658_v27 = vcombine.low %v8069_v51, %v8080_v5  ;;  %v4387_v45 = vrot.slane %v4385_v49, 4  ;;  %v5641_v0 = vrot.slane %v5625_v14, 9  ;;  %v6574_v31 = vld [vmem:[%s6655_s28 + $0x34] sm:$0xf] }
 0x11e   : > { %6014 = vmatprep.mubr.msk.bf16.mxu1 %vm693_vm3, %v6520_v13  ;;  %v4015_v6 = vrot.slane %v4014_v15, 4  ;;  %v6522_v13 = vld [vmem:[%s6655_s28 + $0x54] sm:$0xff]   ;;  %v4469_v57 = vrot.slane %v7783_v4, 5  ;;  %v4472_v17 = vrot.slane %v7826_v59, 5  ;;  %v4010_v4 = vsel %vm6674_vm2, %v4005_v10, %v8044_v34  ;;  %v6523_v10 = vld [vmem:[%s6655_s28 + $0x60] sm:$0xff]  }
 0x11f   : > { %v4386_v38 = vsel %vm6896_vm6, %v5629_v3, %v4385_v49  ;;  %v4392_v15 = vrot.slane %v6573_v50, 5  ;;  %v4389_v9 = vsel %vm6896_vm6, %v4387_v45, %v4388_v55  ;;  %v4399_v53 = vrot.slane %v6574_v31, 5  ;;  %v6575_v3 = vld [vmem:[%s6655_s28 + $0x2c] sm:$0x1]  ;;  %v6590_v51 = vld [vmem:[%s6655_s28 + $0xc8] sm:$0x1] }
 0x120   : > { %v8094_v16 = vsel %vm6896_vm6, %v5641_v0, %v4469_v57  ;;  %v4471_v29 = vrot.slane %v4469_v57, 4  ;;  %v4020_v59 = vsel %vm6674_vm2, %v4015_v6, %v4019_v22  ;;  %v5642_v44 = vrot.slane %v5626_v26, 9  ;;  %v6524_v45 = vld [vmem:[%s6655_s28 + $0x6c] sm:$0xff]   ;;  %v5627_v26 = vld [vmem:[%s6655_s28 + $0xc0] sm:$0xe] }
 0x121   : > { %v4476_v14 = vrot.slane %v7876_v35, 5  ;;  %v5630_v22 = vrot.slane %v5614_v52, 9  ;;  %v5647_v6 = vcombine.low %v4386_v38, %v4389_v9  ;;  %v4394_v24 = vrot.slane %v4392_v15, 4  ;;  %v6576_v35 = vld [vmem:[%s6655_s28 + $0x38] sm:$0x1] }
 0x122   : > { %v8113_v34 = vsel %vm6896_vm6, %v4471_v29, %v4472_v17  ;;  %v5631_v0 = vrot.slane %v5615_v33, 9  ;;  %v4401_v57 = vrot.slane %v4399_v53, 4  ;;  %v4402_v17 = vrot.slane %v6576_v35, 5  ;;  %v8549_v38 = vld [vmem:[#allocation5_spill] sm:$0xff] }
 0x123   : > { %v5659_v49 = vcombine.low %v8094_v16, %v8113_v34  ;;  %v8124_v55 = vsel %vm6896_vm6, %v5642_v44, %v4476_v14  ;;  %v4406_v52 = vrot.slane %v8549_v38, 5  ;;  %v5643_v50 = vrot.slane %v5627_v26, 9  ;;  %v5616_v44 = vld [vmem:[%s6655_s28 + $0x3c] sm:$0xe]  ;;  %v6577_v38 = vld [vmem:[%s6655_s28 + $0x70] sm:$0xf] }
 0x124   : > { %6167 = vmatmul.mubr.msk.bf16.gmra.mrb[24].mxu0 %vm693_vm3, %v5593_v20  ;;  %v5595_v20 = vcombine.low %v4010_v4, %v4020_v59  ;;  %v4393_v4 = vsel %vm6896_vm6, %v5630_v22, %v4392_v15  ;;  %v4400_v9 = vsel %vm6896_vm6, %v5631_v0, %v4399_v53  ;;  %v4403_v31 = vsel %vm6896_vm6, %v4401_v57, %v4402_v17  ;;  %v5337_v22 = vld [vmem:[%s6655_s28 + $0x6c] sm:$0xf] }
 0x125   : > { %6015 = vmatmul.mubr.msk.bf16.gmra.mrb[8].mxu1 %vm693_vm3, %v6521_v60  ;;  %6170 = vmatprep.mubr.msk.bf16.mxu0 %vm693_vm3, %v5594_v11  ;;  %v4395_v60 = vrot.slane %v6575_v3, 5  ;;  %v4479_v11 = vrot.slane %v7954_v30, 5  ;;  %v4483_v33 = vrot.slane %v7938_v39, 5  ;;  %v4486_v15 = vrot.slane %v8009_v18, 5 }
 0x126   : > { %6018 = vmatprep.mubr.msk.bf16.mxu1 %vm693_vm3, %v6522_v13  ;;  %v4478_v13 = vrot.slane %v4476_v14, 4  ;;  %v5628_v14 = vld [vmem:[%s6655_s28 + $0xcc] sm:$0xe]  ;;  %v4408_v53 = vrot.slane %v4406_v52, 4  ;;  %v2263_v0 = vshrl.u32 %v5337_v22, 16  ;;  %v2266_v57 = vshll.u32 %v5337_v22, 16 }
 0x127   : > { %v4396_v59 = vsel %vm6896_vm6, %v4394_v24, %v4395_v60  ;;  %v8155_v3 = vsel %vm6896_vm6, %v5643_v50, %v4483_v33  ;;  %v4485_v60 = vrot.slane %v4483_v33, 4  ;;  %v8550_v24 = vld [vmem:[#allocation6_spill] sm:$0xff]  ;;  %v5644_v18 = vrot.slane %v5628_v14, 9 }
 0x128   : > { %v8131_v29 = vsel %vm6896_vm6, %v4478_v13, %v4479_v11  ;;  %v6525_v11 = vld [vmem:[%s6655_s28 + $0x78] sm:$0xff]   ;;  %v4409_v13 = vrot.slane %v8550_v24, 5  ;;  %v4490_v17 = vrot.slane %v7997_v7, 5  ;;  %v4493_v26 = vrot.slane %v8042_v21, 5 }
 0x129   : > { %v5660_v30 = vcombine.low %v8124_v55, %v8131_v29  ;;  %v8162_v39 = vsel %vm6896_vm6, %v4485_v60, %v4486_v15  ;;  %v2272_v50 = vshll.u32 %v6577_v38, 16  ;;  %v6527_v15 = vld [vmem:[%s6655_s28 + $0x90] sm:$0xff]   ;;  %v6528_v60 = vld [vmem:[%s6655_s28 + $0x9c] sm:$0xff]   ;;  %v2450_v5 = vshll.u32 %v6590_v51, 16 }
 0x12a   : > { %v5661_v35 = vcombine.low %v8155_v3, %v8162_v39  ;;  %v8179_v7 = vsel %vm6896_vm6, %v5644_v18, %v4490_v17  ;;  %v4492_v21 = vrot.slane %v4490_v17, 4  ;;  %v5346_v17 = vld [vmem:[%s6655_s28 + $0x90] sm:$0xf] }
 0x12b   : > { %v2274_v14 = vrot.slane %v2272_v50, 5 }
 0x12c   : > { %6171 = vmatmul.mubr.msk.bf16.gmra.mrb[28].mxu0 %vm693_vm3, %v5595_v20  ;;  %v5648_v20 = vcombine.low %v4393_v4, %v4396_v59  ;;  %v4410_v59 = vsel %vm6896_vm6, %v4408_v53, %v4409_v13 }
 0x12d   : > { %6019 = vmatmul.mubr.msk.bf16.gmra.mrb[12].mxu1 %vm693_vm3, %v6523_v10  ;;  %6176 = vmatprep.mubr.msk.bf16.mxu0 %vm693_vm3, %v5647_v6  ;;  %v5649_v10 = vcombine.low %v4400_v9, %v4403_v31  ;;  %v5632_v6 = vrot.slane %v5616_v44, 9  ;;  %v2276_v9 = vshrl.u32 %v6577_v38, 16  ;;  %v2265_v31 = vrot.slane %v2263_v0, 4  ;;  %v6530_v38 = vld [vmem:[%s6655_s28 + $0xb4] sm:$0xff]  }
 0x12e   : > { %6022 = vmatprep.mubr.msk.bf16.mxu1 %vm693_vm3, %v6524_v45  ;;  %v6526_v45 = vld [vmem:[%s6655_s28 + $0x84] sm:$0xff]   ;;  %v2268_v44 = vrot.slane %v2266_v57, 5 }
 0x12f   : > { %v4407_v4 = vsel %vm6896_vm6, %v5632_v6, %v4406_v52  ;;  %v8183_v52 = vsel %vm6896_vm6, %v4492_v21, %v4493_v26  ;;  %v6578_v6 = vld [vmem:[%s6655_s28 + $0x74] sm:$0x1]  ;;  %v6529_v26 = vld [vmem:[%s6655_s28 + $0xa8] sm:$0xff]   ;;  %v2335_v21 = vshrl.u32 %v5346_v17, 16 }
 0x130   : > { %v5650_v33 = vcombine.low %v4407_v4, %v4410_v59  ;;  %v5662_v22 = vcombine.low %v8179_v7, %v8183_v52  ;;  %v2282_v53 = vshll.u32 %v6578_v6, 16  ;;  %v5349_v59 = vld [vmem:[%s6655_s28 + $0x9c] sm:$0xf]  ;;  %v6582_v6 = vld [vmem:[%s6655_s28 + $0x8c] sm:$0x1] }
 0x132   : > { %v2284_v48 = vrot.slane %v2282_v53, 5  ;;  %v2330_v53 = vshll.u32 %v6582_v6, 16 }
 0x134   : > { %6177 = vmatmul.mubr.msk.bf16.vlgmr.msra.gmra.mrb[0].mxu0 %vm693_vm3, %v5648_v20  ;;  %v2278_v20 = vrot.slane %v2276_v9, 4 }
 0x135   : > { %6023 = vmatmul.mubr.msk.bf16.gmra.mrb[16].mxu1 %vm693_vm3, %v6525_v11  ;;  %6180 = vmatprep.mubr.msk.bf16.mxu0 %vm693_vm3, %v5649_v10  ;;  %v5343_v11 = vld [vmem:[%s6655_s28 + $0x84] sm:$0xf]  ;;  %v2269_v10 = vor.u32 %v2268_v44, %v2265_v31  ;;  %v2338_v31 = vshll.u32 %v5346_v17, 16 }
 0x136   : > { %6026 = vmatprep.mubr.msk.bf16.mxu1 %vm693_vm3, %v6526_v45  ;;  %v2279_v2 = vor.u32 %v2278_v20, %v2274_v14  ;;  %v2311_v24 = vshrl.u32 %v5343_v11, 16  ;;  %v2314_v13 = vshll.u32 %v5343_v11, 16  ;;  %v6579_v45 = vld [vmem:[%s6655_s28 + $0x88] sm:$0xf]  ;;  %v2362_v11 = vshll.u32 %v5349_v59, 16 }
 0x137   : > { %v2320_v18 = vshll.u32 %v6579_v45, 16  ;;  %v2324_v0 = vshrl.u32 %v6579_v45, 16  ;;  %v2270_v57 = vrot.slane %v2269_v10, 4  ;;  %v2368_v10 = vshll.u32 %v6581_v62, 16 }
 0x138   : > { %v2280_v4 = vrot.slane %v2279_v2, 4  ;;  %v2313_v47 = vrot.slane %v2311_v24, 4  ;;  %v2337_v24 = vrot.slane %v2335_v21, 4  ;;  %v2340_v32 = vrot.slane %v2338_v31, 5  ;;  %v6584_v31 = vld [vmem:[%s6655_s28 + $0xa4] sm:$0x1] }
 0x139   : > { %v8203_v50 = vrot.slane %v2320_v18, 5  ;;  %v2326_v9 = vrot.slane %v2324_v0, 4  ;;  %v2275_v44 = vsel %vm6674_vm2, %v2270_v57, %v2274_v14  ;;  %v2364_v45 = vrot.slane %v2362_v11, 5  ;;  %v6531_v18 = vld [vmem:[%s6655_s28 + $0xc0] sm:$0xff]  }
 0x13a   : > { %v2285_v14 = vsel %vm6674_vm2, %v2280_v4, %v2284_v48  ;;  %v8226_v17 = vrot.slane %v2368_v10, 5  ;;  %v5352_v4 = vld [vmem:[%s6655_s28 + $0xa8] sm:$0xf] }
 0x13b   : > { %v2327_v2 = vor.u32 %v2326_v9, %v8203_v50  ;;  %v5371_v0 = vcombine.low %v2275_v44, %v2285_v14  ;;  %v2378_v44 = vshll.u32 %v6584_v31, 16  ;;  %v2386_v25 = vshll.u32 %v5352_v4, 16 }
 0x13c   : > { %6181 = vmatmul.mubr.msk.bf16.gmra.mrb[4].mxu0 %vm693_vm3, %v5650_v33  ;;  %v6580_v33 = vld [vmem:[%s6655_s28 + $0x94] sm:$0xf] }
 0x13d   : > { %6027 = vmatmul.mubr.msk.bf16.gmra.mrb[20].mxu1 %vm693_vm3, %v6527_v15  ;;  %6184 = vmatprep.mubr.msk.bf16.mxu0 %vm693_vm3, %v5651_v42  ;;  %v2316_v42 = vrot.slane %v2314_v13, 5  ;;  %v2344_v15 = vshll.u32 %v6580_v33, 16  ;;  %v2348_v20 = vshrl.u32 %v6580_v33, 16  ;;  %v2328_v48 = vrot.slane %v2327_v2, 4 }
 0x13e   : > { %6030 = vmatprep.mubr.msk.bf16.mxu1 %vm693_vm3, %v6528_v60  ;;  %v2359_v60 = vshrl.u32 %v5349_v59, 16  ;;  %v6583_v59 = vld [vmem:[%s6655_s28 + $0x98] sm:$0x1]  ;;  %v2383_v33 = vshrl.u32 %v5352_v4, 16  ;;  %v5358_v4 = vld [vmem:[%s6655_s28 + $0xc0] sm:$0xf] }
 0x13f   : > { %v2317_v37 = vor.u32 %v2316_v42, %v2313_v47  ;;  %v8223_v41 = vrot.slane %v2344_v15, 5  ;;  %v2332_v47 = vrot.slane %v2330_v53, 5  ;;  %v2341_v42 = vor.u32 %v2340_v32, %v2337_v24  ;;  %v5355_v15 = vld [vmem:[%s6655_s28 + $0xb4] sm:$0xf] }
 0x140   : > { %v2361_v13 = vrot.slane %v2359_v60, 4  ;;  %v2396_v60 = vshrl.u32 %v6585_v19, 16  ;;  %v2407_v1 = vshrl.u32 %v5355_v15, 16  ;;  %v2410_v46 = vshll.u32 %v5355_v15, 16 }
 0x141   : > { %v2318_v57 = vrot.slane %v2317_v37, 4  ;;  %v2333_v14 = vsel %vm6674_vm2, %v2328_v48, %v2332_v47  ;;  %v2342_v37 = vrot.slane %v2341_v42, 4  ;;  %v2380_v53 = vrot.slane %v2378_v44, 5 }
 0x142   : > { %v2365_v21 = vor.u32 %v2364_v45, %v2361_v13  ;;  %v2385_v24 = vrot.slane %v2383_v33, 4  ;;  %v2398_v45 = vrot.slane %v2396_v60, 4  ;;  %v6589_v33 = vld [vmem:[%s6655_s28 + $0xbc] sm:$0x1] }
 0x143   : > { %v2323_v11 = vsel %vm6674_vm2, %v2318_v57, %v8203_v50  ;;  %v2347_v48 = vsel %vm6674_vm2, %v2342_v37, %v8223_v41  ;;  %v2426_v40 = vshll.u32 %v6589_v33, 16 }
 0x144   : > { %6185 = vmatmul.mubr.msk.bf16.gmra.mrb[8].mxu0 %vm693_vm3, %v5652_v56  ;;  %v2372_v56 = vshrl.u32 %v6581_v62, 16  ;;  %v2366_v6 = vrot.slane %v2365_v21, 4  ;;  %v5373_v50 = vcombine.low %v2323_v11, %v2333_v14 }
 0x145   : > { %6031 = vmatmul.mubr.msk.bf16.gmra.mrb[24].mxu1 %vm693_vm3, %v6529_v26  ;;  %6188 = vmatprep.mubr.msk.bf16.mxu0 %vm693_vm3, %v5653_v23  ;;  %v2350_v23 = vrot.slane %v2348_v20, 4 }
 0x146   : > { %6034 = vmatprep.mubr.msk.bf16.mxu1 %vm693_vm3, %v6530_v38  ;;  %v2374_v26 = vrot.slane %v2372_v56, 4  ;;  %v2354_v38 = vshll.u32 %v6583_v59, 16  ;;  %v2371_v42 = vsel %vm6674_vm2, %v2366_v6, %v8226_v17  ;;  %v2452_v6 = vrot.slane %v2450_v5, 5 }
 0x147   : > { %v2351_v9 = vor.u32 %v2350_v23, %v8223_v41  ;;  %v2388_v23 = vrot.slane %v2386_v25, 5  ;;  %v6587_v41 = vld [vmem:[%s6655_s28 + $0xb0] sm:$0x1] }
 0x148   : > { %v2375_v20 = vor.u32 %v2374_v26, %v8226_v17  ;;  %v2356_v62 = vrot.slane %v2354_v38, 5  ;;  %v2402_v59 = vshll.u32 %v6587_v41, 16  ;;  %v2431_v38 = vshrl.u32 %v5358_v4, 16 }
 0x149   : > { %v2352_v2 = vrot.slane %v2351_v9, 4  ;;  %v2389_v58 = vor.u32 %v2388_v23, %v2385_v24  ;;  %v2434_v17 = vshll.u32 %v5358_v4, 16  ;;  %v6588_v9 = vld [vmem:[%s6655_s28 + $0xc4] sm:$0xf] }
 0x14a   : > { %v2376_v32 = vrot.slane %v2375_v20, 4  ;;  %v2440_v21 = vshll.u32 %v6588_v9, 16  ;;  %v2444_v31 = vshrl.u32 %v6588_v9, 16  ;;  %v2404_v25 = vrot.slane %v2402_v59, 5 }
 0x14b   : > { %v2357_v47 = vsel %vm6674_vm2, %v2352_v2, %v2356_v62  ;;  %v2390_v15 = vrot.slane %v2389_v58, 4  ;;  %v2428_v62 = vrot.slane %v2426_v40, 5 }
 0x14c   : > { %6189 = vmatmul.mubr.msk.bf16.gmra.mrb[12].mxu0 %vm693_vm3, %v5654_v36  ;;  %v2392_v36 = vshll.u32 %v6585_v19, 16  ;;  %v2381_v54 = vsel %vm6674_vm2, %v2376_v32, %v2380_v53  ;;  %v5374_v63 = vcombine.low %v2347_v48, %v2357_v47  ;;  %v2433_v19 = vrot.slane %v2431_v38, 4  ;;  %v8336_v47 = vld [vmem:[%s8485_s3] ss:$0 sm:$0xff] }
 0x14d   : > { %6035 = vmatmul.mubr.msk.bf16.gmra.mrb[28].mxu1 %vm693_vm3, %v6531_v18  ;;  %6192 = vmatprep.mubr.msk.bf16.mxu0 %vm693_vm3, %v5655_v43  ;;  %v6586_v43 = vld [vmem:[%s6655_s28 + $0xb8] sm:$0xf]  ;;  %v2409_v18 = vrot.slane %v2407_v1, 4  ;;  %v2442_v60 = vrot.slane %v2440_v21, 5  ;;  %v2446_v11 = vrot.slane %v2444_v31, 4 }
 0x14e   : > { %6056 = vmatprep.mubr.msk.bf16.mxu1 %vm693_vm3, %v5371_v0  ;;  %v2416_v10 = vshll.u32 %v6586_v43, 16  ;;  %v2420_v56 = vshrl.u32 %v6586_v43, 16  ;;  %v2394_v13 = vrot.slane %v2392_v36, 5  ;;  %v2412_v0 = vrot.slane %v2410_v46, 5 }
 0x14f   : > { %v2436_v36 = vrot.slane %v2434_v17, 5 }
 0x150   : > { %v2418_v57 = vrot.slane %v2416_v10, 5  ;;  %v2422_v26 = vrot.slane %v2420_v56, 4  ;;  %v2395_v1 = vsel %vm6674_vm2, %v2390_v15, %v2394_v13  ;;  %v2447_v10 = vor.u32 %v2446_v11, %v2442_v60 }
 0x151   : > { %v2437_v43 = vor.u32 %v2436_v36, %v2433_v19 }
 0x152   : > { %v2423_v44 = vor.u32 %v2422_v26, %v2418_v57  ;;  %v2448_v2 = vrot.slane %v2447_v10, 4  ;;  %v8331_v26 = vld [vmem:[%s8484_s2] ss:$0 sm:$0xff] }
 0x153   : > { %v2438_v56 = vrot.slane %v2437_v43, 4 }
 0x154   : > { %6193 = vmatmul.mubr.msk.bf16.gmra.mrb[16].mxu0 %vm693_vm3, %v5656_v61  ;;  %v2399_v61 = vor.u32 %v2398_v45, %v2394_v13  ;;  %v2424_v37 = vrot.slane %v2423_v44, 4  ;;  %v2453_v24 = vsel %vm6674_vm2, %v2448_v2, %v2452_v6 }
 0x155   : > { %6057 = vmatmul.mubr.msk.bf16.vlgmr.msra.gmra.mrb[16].mxu1 %vm693_vm3, %v8032_v8  ;;  %6196 = vmatprep.mubr.msk.bf16.mxu0 %vm693_vm3, %v5657_v12  ;;  %v2413_v8 = vor.u32 %v2412_v0, %v2409_v18  ;;  %v5375_v12 = vcombine.low %v2371_v42, %v2381_v54  ;;  %v2443_v53 = vsel %vm6674_vm2, %v2438_v56, %v2442_v60 }
 0x156   : > { %6060 = vmatprep.mubr.msk.bf16.mxu1 %vm693_vm3, %v5373_v50  ;;  %v2400_v20 = vrot.slane %v2399_v61, 4  ;;  %v2429_v16 = vsel %vm6674_vm2, %v2424_v37, %v2428_v62  ;;  %v5378_v32 = vcombine.low %v2443_v53, %v2453_v24 }
 0x157   : > { %v2414_v14 = vrot.slane %v2413_v8, 4 }
 0x158   : > { %v2405_v46 = vsel %vm6674_vm2, %v2400_v20, %v2404_v25 }
 0x159   : > { %v5376_v34 = vcombine.low %v2395_v1, %v2405_v46 }
 0x15c   : > { %6197 = vmatmul.mubr.msk.bf16.gmra.mrb[20].mxu0 %vm693_vm3, %v5658_v27  ;;  %v2419_v27 = vsel %vm6674_vm2, %v2414_v14, %v2418_v57 }
 0x15d   : > { %6061 = vmatmul.mubr.msk.bf16.gmra.mrb[20].mxu1 %vm693_vm3, %v5374_v63  ;;  %6200 = vmatprep.mubr.msk.bf16.mxu0 %vm693_vm3, %v5659_v49  ;;  %v5377_v49 = vcombine.low %v2419_v27, %v2429_v16 }
 0x15e   : > { %6064 = vmatprep.mubr.msk.bf16.mxu1 %vm693_vm3, %v5375_v12 }
 0x164   : > { %6201 = vmatmul.mubr.msk.bf16.gmra.mrb[24].mxu0 %vm693_vm3, %v5660_v30 }
 0x165   : > { %6065 = vmatmul.mubr.msk.bf16.gmra.mrb[24].mxu1 %vm693_vm3, %v5376_v34  ;;  %6204 = vmatprep.mubr.msk.bf16.mxu0 %vm693_vm3, %v5661_v35 }
 0x166   : > { %6068 = vmatprep.mubr.msk.bf16.mxu1 %vm693_vm3, %v5377_v49 }
 0x16c   : > { %6205 = vmatmul.mubr.msk.bf16.gmra.mrb[28].mxu0 %vm693_vm3, %v5662_v22 }
 0x16d   : > { %6069 = vmatmul.mubr.msk.bf16.gmra.mrb[28].mxu1 %vm693_vm3, %v5378_v32 }
 0x1e8   : > { %v6008_v55 = vpop.f32.mrb[0].mxu1 }
 0x1e9   : > { %v1863_v29 = vpop.f32.mrb[1].mxu1 }
 0x1ea   : > { %v6009_v30 = vpop.f32.mrb[2].mxu1 }
 0x1eb   : > { %v1866_v3 = vpop.f32.mrb[3].mxu1 }
 0x1f0   : > { %v6012_v39 = vpop.f32.mrb[4].mxu1 }
 0x1f1   : > { %v1879_v35 = vpop.f32.mrb[5].mxu1 }
 0x1f2   : > { %v6013_v23 = vpop.f32.mrb[6].mxu1 }
 0x1f3   : > { %v1882_v13 = vpop.f32.mrb[7].mxu1 }
 0x1f8   : > { %v6016_v45 = vpop.f32.mrb[8].mxu1 }
 0x1f9   : > { %v8314_v50 = vpop.f32.mrb[9].mxu1 }
 0x1fa   : > { %v8316_v28 = vpop.f32.mrb[10].mxu1 }
 0x1fb   : > { %v8318_v18 = vpop.f32.mrb[11].mxu1 }
 0x200   : > { %v8320_v7 = vpop.f32.mrb[12].mxu1 }
 0x201   : > { %v8322_v52 = vpop.f32.mrb[13].mxu1 }
 0x202   : > { %v8324_v22 = vpop.f32.mrb[14].mxu1 }
 0x203   : > { %v8326_v0 = vpop.f32.mrb[15].mxu1 }
 0x207   : > { %v6178_v57 = vpop.f32.mrb[0].mxu0 }
 0x208   : > { %v6210_v4 = vadd.f32 %v6178_v57, %v6008_v55  ;;  %v4634_v48 = vpop.f32.mrb[1].mxu0 }
 0x209   : > { %v6211_v42 = vadd.f32 %v4634_v48, %v1863_v29  ;;  %v6179_v54 = vpop.f32.mrb[2].mxu0 }
 0x20a   : > { %v4802_v58 = vmul.f32 %v6210_v4, %v8331_v26  ;;  %v6212_v61 = vadd.f32 %v6179_v54, %v6009_v30  ;;  %v4637_v41 = vpop.f32.mrb[3].mxu0 }
 0x20b   : > { %v4800_v59 = vmul.f32 %v6211_v42, %v8331_v26  ;;  %v6213_v38 = vadd.f32 %v4637_v41, %v1866_v3 }
 0x20c   : > { %v4841_v17 = vadd.f32 %v8336_v47, %v4802_v58  ;;  %v4803_v9 = vmul.f32 %v6212_v61, %v8331_v26 }
 0x20d   : > { %v4839_v21 = vadd.f32 %v8336_v47, %v4800_v59  ;;  %v4801_v31 = vmul.f32 %v6213_v38, %v8331_v26 }
 0x20e   : > { %v4873_v8 = vmax.f32 %v4841_v17, 0.0  ;;  %v4842_v44 = vadd.f32 %v8336_v47, %v4803_v9 }
 0x20f   : > { %v4871_v33 = vmax.f32 %v4839_v21, 0.0  ;;  %v4840_v40 = vadd.f32 %v8336_v47, %v4801_v31  ;;  %v6182_v63 = vpop.f32.mrb[4].mxu0 }
 0x210   : > { %v5719_v12 = vpack.c.bf16 %v4873_v8, %v4873_v8  ;;  %v4874_v15 = vmax.f32 %v4842_v44, 0.0  ;;  %v6214_v20 = vadd.f32 %v6182_v63, %v6012_v39  ;;  %v4650_v25 = vpop.f32.mrb[5].mxu0 }
 0x211   : > { %v5717_v19 = vpack.c.bf16 %v4871_v33, %v4871_v33  ;;  %v4872_v36 = vmax.f32 %v4840_v40, 0.0  ;;  %v6215_v60 = vadd.f32 %v4650_v25, %v1879_v35  ;;  %v6183_v11 = vpop.f32.mrb[6].mxu0 }
 0x212   : > { %5034 = vst.msk [vmem:[%s8349_s26 + $0x8] sm:$0xf] %vm5031_vm7, %v5719_v12  ;;  %v5720_v14 = vpack.c.bf16 %v4874_v15, %v4874_v15  ;;  %v4806_v37 = vmul.f32 %v6214_v20, %v8331_v26  ;;  %v6216_v62 = vadd.f32 %v6183_v11, %v6013_v23  ;;  %v4653_v1 = vpop.f32.mrb[7].mxu0 }
 0x213   : > { %5032 = vst.msk [vmem:[%s8349_s26] sm:$0xf] %vm5031_vm7, %v5717_v19  ;;  %v5718_v46 = vpack.c.bf16 %v4872_v36, %v4872_v36  ;;  %v4804_v43 = vmul.f32 %v6215_v60, %v8331_v26  ;;  %v6217_v10 = vadd.f32 %v4653_v1, %v1882_v13 }
 0x214   : > { %5035 = vst.msk [vmem:[%s8349_s26 + $0xc] sm:$0xf] %vm5031_vm7, %v5720_v14  ;;  %v4845_v51 = vadd.f32 %v8336_v47, %v4806_v37  ;;  %v4807_v5 = vmul.f32 %v6216_v62, %v8331_v26 }
 0x215   : > { %5033 = vst.msk [vmem:[%s8349_s26 + $0x4] sm:$0xf] %vm5031_vm7, %v5718_v46  ;;  %v4843_v27 = vadd.f32 %v8336_v47, %v4804_v43  ;;  %v4805_v16 = vmul.f32 %v6217_v10, %v8331_v26 }
 0x216   : > { %v4877_v34 = vmax.f32 %v4845_v51, 0.0  ;;  %v4846_v49 = vadd.f32 %v8336_v47, %v4807_v5 }
 0x217   : > { %v4875_v56 = vmax.f32 %v4843_v27, 0.0  ;;  %v4844_v2 = vadd.f32 %v8336_v47, %v4805_v16  ;;  %v6186_v6 = vpop.f32.mrb[8].mxu0 }
 0x218   : > { %v5723_v53 = vpack.c.bf16 %v4877_v34, %v4877_v34  ;;  %v4878_v24 = vmax.f32 %v4846_v49, 0.0  ;;  %v6218_v32 = vadd.f32 %v6186_v6, %v6016_v45  ;;  %v4666_v55 = vpop.f32.mrb[9].mxu0 }
 0x219   : > { %v5721_v29 = vpack.c.bf16 %v4875_v56, %v4875_v56  ;;  %v4876_v30 = vmax.f32 %v4844_v2, 0.0  ;;  %v6219_v3 = vadd.f32 %v4666_v55, %v8314_v50  ;;  %v6187_v39 = vpop.f32.mrb[10].mxu0 }
 0x21a   : > { %5038 = vst.msk [vmem:[%s8349_s26 + $0x18] sm:$0xf] %vm5031_vm7, %v5723_v53  ;;  %v5724_v35 = vpack.c.bf16 %v4878_v24, %v4878_v24  ;;  %v4810_v23 = vmul.f32 %v6218_v32, %v8331_v26  ;;  %v6220_v13 = vadd.f32 %v6187_v39, %v8316_v28  ;;  %v4669_v57 = vpop.f32.mrb[11].mxu0 }
 0x21b   : > { %5036 = vst.msk [vmem:[%s8349_s26 + $0x10] sm:$0xf] %vm5031_vm7, %v5721_v29  ;;  %v5722_v4 = vpack.c.bf16 %v4876_v30, %v4876_v30  ;;  %v4808_v45 = vmul.f32 %v6219_v3, %v8331_v26  ;;  %v6221_v48 = vadd.f32 %v4669_v57, %v8318_v18 }
 0x21c   : > { %5039 = vst.msk [vmem:[%s8349_s26 + $0x1c] sm:$0xf] %vm5031_vm7, %v5724_v35  ;;  %v4849_v50 = vadd.f32 %v8336_v47, %v4810_v23  ;;  %v4811_v42 = vmul.f32 %v6220_v13, %v8331_v26 }
 0x21d   : > { %5037 = vst.msk [vmem:[%s8349_s26 + $0x14] sm:$0xf] %vm5031_vm7, %v5722_v4  ;;  %v4847_v54 = vadd.f32 %v8336_v47, %v4808_v45  ;;  %v4809_v28 = vmul.f32 %v6221_v48, %v8331_v26 }
 0x21e   : > { %v4881_v58 = vmax.f32 %v4849_v50, 0.0  ;;  %v4850_v61 = vadd.f32 %v8336_v47, %v4811_v42 }
 0x21f   : > { %v4879_v41 = vmax.f32 %v4847_v54, 0.0  ;;  %v4848_v18 = vadd.f32 %v8336_v47, %v4809_v28  ;;  %v6190_v59 = vpop.f32.mrb[12].mxu0 }
 0x220   : > { %v5727_v38 = vpack.c.bf16 %v4881_v58, %v4881_v58  ;;  %v4882_v17 = vmax.f32 %v4850_v61, 0.0  ;;  %v6222_v9 = vadd.f32 %v6190_v59, %v8320_v7  ;;  %v4682_v21 = vpop.f32.mrb[13].mxu0 }
 0x221   : > { %v5725_v31 = vpack.c.bf16 %v4879_v41, %v4879_v41  ;;  %v4880_v8 = vmax.f32 %v4848_v18, 0.0  ;;  %v6223_v44 = vadd.f32 %v4682_v21, %v8322_v52  ;;  %v6191_v33 = vpop.f32.mrb[14].mxu0 }
 0x222   : > { %5042 = vst.msk [vmem:[%s8349_s26 + $0x28] sm:$0xf] %vm5031_vm7, %v5727_v38  ;;  %v5728_v40 = vpack.c.bf16 %v4882_v17, %v4882_v17  ;;  %v4814_v63 = vmul.f32 %v6222_v9, %v8331_v26  ;;  %v6224_v12 = vadd.f32 %v6191_v33, %v8324_v22  ;;  %v4685_v15 = vpop.f32.mrb[15].mxu0 }
 0x223   : > { %5040 = vst.msk [vmem:[%s8349_s26 + $0x20] sm:$0xf] %vm5031_vm7, %v5725_v31  ;;  %v5726_v20 = vpack.c.bf16 %v4880_v8, %v4880_v8  ;;  %v4812_v7 = vmul.f32 %v6223_v44, %v8331_v26  ;;  %v6225_v25 = vadd.f32 %v4685_v15, %v8326_v0 }
 0x224   : > { %5043 = vst.msk [vmem:[%s8349_s26 + $0x2c] sm:$0xf] %vm5031_vm7, %v5728_v40  ;;  %v4853_v52 = vadd.f32 %v8336_v47, %v4814_v63  ;;  %v4815_v19 = vmul.f32 %v6224_v12, %v8331_v26 }
 0x225   : > { %5041 = vst.msk [vmem:[%s8349_s26 + $0x24] sm:$0xf] %vm5031_vm7, %v5726_v20  ;;  %v4851_v36 = vadd.f32 %v8336_v47, %v4812_v7  ;;  %v4813_v22 = vmul.f32 %v6225_v25, %v8331_v26 }
 0x226   : > { %v4885_v60 = vmax.f32 %v4853_v52, 0.0  ;;  %v4854_v11 = vadd.f32 %v8336_v47, %v4815_v19 }
 0x227   : > { %v4883_v14 = vmax.f32 %v4851_v36, 0.0  ;;  %v4852_v37 = vadd.f32 %v8336_v47, %v4813_v22  ;;  %v6194_v0 = vpop.f32.mrb[16].mxu0 }
 0x228   : > { %v5731_v62 = vpack.c.bf16 %v4885_v60, %v4885_v60  ;;  %v4886_v1 = vmax.f32 %v4854_v11, 0.0  ;;  %v6058_v46 = vpop.f32.mrb[16].mxu1  ;;  %v4698_v43 = vpop.f32.mrb[17].mxu0 }
 0x229   : > { %v5729_v10 = vpack.c.bf16 %v4883_v14, %v4883_v14  ;;  %v4884_v51 = vmax.f32 %v4852_v37, 0.0  ;;  %v6226_v5 = vadd.f32 %v6194_v0, %v6058_v46  ;;  %v2657_v27 = vpop.f32.mrb[17].mxu1  ;;  %v6195_v16 = vpop.f32.mrb[18].mxu0 }
 0x22a   : > { %5046 = vst.msk [vmem:[%s8349_s26 + $0x38] sm:$0xf] %vm5031_vm7, %v5731_v62  ;;  %v5732_v34 = vpack.c.bf16 %v4886_v1, %v4886_v1  ;;  %v6227_v49 = vadd.f32 %v4698_v43, %v2657_v27  ;;  %v6059_v56 = vpop.f32.mrb[18].mxu1  ;;  %v4701_v2 = vpop.f32.mrb[19].mxu0 }
 0x22b   : > { %5044 = vst.msk [vmem:[%s8349_s26 + $0x30] sm:$0xf] %vm5031_vm7, %v5729_v10  ;;  %v5730_v6 = vpack.c.bf16 %v4884_v51, %v4884_v51  ;;  %v4818_v53 = vmul.f32 %v6226_v5, %v8331_v26  ;;  %v6228_v24 = vadd.f32 %v6195_v16, %v6059_v56  ;;  %v2660_v32 = vpop.f32.mrb[19].mxu1 }
 0x22c   : > { %5047 = vst.msk [vmem:[%s8349_s26 + $0x3c] sm:$0xf] %vm5031_vm7, %v5732_v34  ;;  %v4816_v55 = vmul.f32 %v6227_v49, %v8331_v26  ;;  %v6229_v29 = vadd.f32 %v4701_v2, %v2660_v32 }
 0x22d   : > { %5045 = vst.msk [vmem:[%s8349_s26 + $0x34] sm:$0xf] %vm5031_vm7, %v5730_v6  ;;  %v4857_v30 = vadd.f32 %v8336_v47, %v4818_v53  ;;  %v4819_v3 = vmul.f32 %v6228_v24, %v8331_v26 }
 0x22e   : > { %v4855_v39 = vadd.f32 %v8336_v47, %v4816_v55  ;;  %v4817_v35 = vmul.f32 %v6229_v29, %v8331_v26 }
 0x22f   : > { %v4889_v23 = vmax.f32 %v4857_v30, 0.0  ;;  %v4858_v13 = vadd.f32 %v8336_v47, %v4819_v3  ;;  %v6198_v57 = vpop.f32.mrb[20].mxu0 }
 0x230   : > { %v4887_v4 = vmax.f32 %v4855_v39, 0.0  ;;  %v4856_v45 = vadd.f32 %v8336_v47, %v4817_v35  ;;  %v6062_v48 = vpop.f32.mrb[20].mxu1  ;;  %v4714_v50 = vpop.f32.mrb[21].mxu0 }
 0x231   : > { %v5735_v42 = vpack.c.bf16 %v4889_v23, %v4889_v23  ;;  %v4890_v54 = vmax.f32 %v4858_v13, 0.0  ;;  %v6230_v28 = vadd.f32 %v6198_v57, %v6062_v48  ;;  %v2673_v58 = vpop.f32.mrb[21].mxu1  ;;  %v6199_v61 = vpop.f32.mrb[22].mxu0 }
 0x232   : > { %v5733_v41 = vpack.c.bf16 %v4887_v4, %v4887_v4  ;;  %v4888_v18 = vmax.f32 %v4856_v45, 0.0  ;;  %v6231_v59 = vadd.f32 %v4714_v50, %v2673_v58  ;;  %v6063_v38 = vpop.f32.mrb[22].mxu1  ;;  %v4717_v17 = vpop.f32.mrb[23].mxu0 }
 0x233   : > { %5050 = vst.msk [vmem:[%s8349_s26 + $0x48] sm:$0xf] %vm5031_vm7, %v5735_v42  ;;  %v5736_v9 = vpack.c.bf16 %v4890_v54, %v4890_v54  ;;  %v4822_v21 = vmul.f32 %v6230_v28, %v8331_v26  ;;  %v6232_v31 = vadd.f32 %v6199_v61, %v6063_v38  ;;  %v2676_v8 = vpop.f32.mrb[23].mxu1 }
 0x234   : > { %5048 = vst.msk [vmem:[%s8349_s26 + $0x40] sm:$0xf] %vm5031_vm7, %v5733_v41  ;;  %v5734_v44 = vpack.c.bf16 %v4888_v18, %v4888_v18  ;;  %v4820_v33 = vmul.f32 %v6231_v59, %v8331_v26  ;;  %v6233_v40 = vadd.f32 %v4717_v17, %v2676_v8 }
 0x235   : > { %5051 = vst.msk [vmem:[%s8349_s26 + $0x4c] sm:$0xf] %vm5031_vm7, %v5736_v9  ;;  %v4861_v63 = vadd.f32 %v8336_v47, %v4822_v21  ;;  %v4823_v12 = vmul.f32 %v6232_v31, %v8331_v26 }
 0x236   : > { %5049 = vst.msk [vmem:[%s8349_s26 + $0x44] sm:$0xf] %vm5031_vm7, %v5734_v44  ;;  %v4859_v15 = vadd.f32 %v8336_v47, %v4820_v33  ;;  %v4821_v20 = vmul.f32 %v6233_v40, %v8331_v26 }
 0x237   : > { %v4893_v7 = vmax.f32 %v4861_v63, 0.0  ;;  %v4862_v25 = vadd.f32 %v8336_v47, %v4823_v12  ;;  %v6202_v52 = vpop.f32.mrb[24].mxu0 }
 0x238   : > { %v4891_v19 = vmax.f32 %v4859_v15, 0.0  ;;  %v4860_v36 = vadd.f32 %v8336_v47, %v4821_v20  ;;  %v6066_v22 = vpop.f32.mrb[24].mxu1  ;;  %v4730_v60 = vpop.f32.mrb[25].mxu0 }
 0x239   : > { %v5739_v11 = vpack.c.bf16 %v4893_v7, %v4893_v7  ;;  %v4894_v14 = vmax.f32 %v4862_v25, 0.0  ;;  %v6234_v37 = vadd.f32 %v6202_v52, %v6066_v22  ;;  %v2689_v0 = vpop.f32.mrb[25].mxu1  ;;  %v6203_v62 = vpop.f32.mrb[26].mxu0 }
 0x23a   : > { %v5737_v1 = vpack.c.bf16 %v4891_v19, %v4891_v19  ;;  %v4892_v46 = vmax.f32 %v4860_v36, 0.0  ;;  %v6235_v43 = vadd.f32 %v4730_v60, %v2689_v0  ;;  %v6067_v10 = vpop.f32.mrb[26].mxu1  ;;  %v4733_v51 = vpop.f32.mrb[27].mxu0 }
 0x23b   : > { %5054 = vst.msk [vmem:[%s8349_s26 + $0x58] sm:$0xf] %vm5031_vm7, %v5739_v11  ;;  %v5740_v5 = vpack.c.bf16 %v4894_v14, %v4894_v14  ;;  %v4826_v27 = vmul.f32 %v6234_v37, %v8331_v26  ;;  %v6236_v16 = vadd.f32 %v6203_v62, %v6067_v10  ;;  %v2692_v34 = vpop.f32.mrb[27].mxu1 }
 0x23c   : > { %5052 = vst.msk [vmem:[%s8349_s26 + $0x50] sm:$0xf] %vm5031_vm7, %v5737_v1  ;;  %v5738_v49 = vpack.c.bf16 %v4892_v46, %v4892_v46  ;;  %v4824_v56 = vmul.f32 %v6235_v43, %v8331_v26  ;;  %v6237_v2 = vadd.f32 %v4733_v51, %v2692_v34 }
 0x23d   : > { %5055 = vst.msk [vmem:[%s8349_s26 + $0x5c] sm:$0xf] %vm5031_vm7, %v5740_v5  ;;  %v4865_v6 = vadd.f32 %v8336_v47, %v4826_v27  ;;  %v4827_v53 = vmul.f32 %v6236_v16, %v8331_v26 }
 0x23e   : > { %5053 = vst.msk [vmem:[%s8349_s26 + $0x54] sm:$0xf] %vm5031_vm7, %v5738_v49  ;;  %v4863_v24 = vadd.f32 %v8336_v47, %v4824_v56  ;;  %v4825_v32 = vmul.f32 %v6237_v2, %v8331_v26 }
 0x23f   : > { %v4897_v55 = vmax.f32 %v4865_v6, 0.0  ;;  %v4866_v29 = vadd.f32 %v8336_v47, %v4827_v53  ;;  %v6206_v30 = vpop.f32.mrb[28].mxu0 }
 0x240   : > { %v4895_v3 = vmax.f32 %v4863_v24, 0.0  ;;  %v4864_v39 = vadd.f32 %v8336_v47, %v4825_v32  ;;  %v6070_v35 = vpop.f32.mrb[28].mxu1  ;;  %v4746_v23 = vpop.f32.mrb[29].mxu0 }
 0x241   : > { %v5743_v13 = vpack.c.bf16 %v4897_v55, %v4897_v55  ;;  %v4898_v57 = vmax.f32 %v4866_v29, 0.0  ;;  %v6238_v4 = vadd.f32 %v6206_v30, %v6070_v35  ;;  %v2705_v45 = vpop.f32.mrb[29].mxu1  ;;  %v6207_v48 = vpop.f32.mrb[30].mxu0 }
 0x242   : > { %v5741_v50 = vpack.c.bf16 %v4895_v3, %v4895_v3  ;;  %v4896_v42 = vmax.f32 %v4864_v39, 0.0  ;;  %v6239_v54 = vadd.f32 %v4746_v23, %v2705_v45  ;;  %v6071_v28 = vpop.f32.mrb[30].mxu1  ;;  %v4749_v58 = vpop.f32.mrb[31].mxu0 }
 0x243   : > { %5058 = vst.msk [vmem:[%s8349_s26 + $0x68] sm:$0xf] %vm5031_vm7, %v5743_v13  ;;  %v5744_v61 = vpack.c.bf16 %v4898_v57, %v4898_v57  ;;  %v4830_v41 = vmul.f32 %v6238_v4, %v8331_v26  ;;  %v6240_v18 = vadd.f32 %v6207_v48, %v6071_v28  ;;  %v2708_v59 = vpop.f32.mrb[31].mxu1 }
 0x244   : > { %5056 = vst.msk [vmem:[%s8349_s26 + $0x60] sm:$0xf] %vm5031_vm7, %v5741_v50  ;;  %v5742_v38 = vpack.c.bf16 %v4896_v42, %v4896_v42  ;;  %v4828_v17 = vmul.f32 %v6239_v54, %v8331_v26  ;;  %v6241_v9 = vadd.f32 %v4749_v58, %v2708_v59 }
 0x245   : > { %5059 = vst.msk [vmem:[%s8349_s26 + $0x6c] sm:$0xf] %vm5031_vm7, %v5744_v61  ;;  %v4869_v21 = vadd.f32 %v8336_v47, %v4830_v41  ;;  %v4831_v31 = vmul.f32 %v6240_v18, %v8331_v26 }
 0x246   : > { %5057 = vst.msk [vmem:[%s8349_s26 + $0x64] sm:$0xf] %vm5031_vm7, %v5742_v38  ;;  %v4867_v8 = vadd.f32 %v8336_v47, %v4828_v17  ;;  %v4829_v44 = vmul.f32 %v6241_v9, %v8331_v26 }
 0x247   : > { %v4901_v33 = vmax.f32 %v4869_v21, 0.0  ;;  %v4870_v40 = vadd.f32 %v8336_v47, %v4831_v31 }
 0x248   : > { %v4899_v63 = vmax.f32 %v4867_v8, 0.0  ;;  %v4868_v12 = vadd.f32 %v8336_v47, %v4829_v44 }
 0x249   : > { %v5747_v15 = vpack.c.bf16 %v4901_v33, %v4901_v33  ;;  %v4902_v20 = vmax.f32 %v4870_v40, 0.0 }
 0x24a   : > { %v5745_v7 = vpack.c.bf16 %v4899_v63, %v4899_v63  ;;  %v4900_v25 = vmax.f32 %v4868_v12, 0.0 }
 0x24b   : > { %5062 = vst.msk [vmem:[%s8349_s26 + $0x78] sm:$0xf] %vm5031_vm7, %v5747_v15  ;;  %v5748_v52 = vpack.c.bf16 %v4902_v20, %v4902_v20 }
 0x24c   : > { %5060 = vst.msk [vmem:[%s8349_s26 + $0x70] sm:$0xf] %vm5031_vm7, %v5745_v7  ;;  %v5746_v19 = vpack.c.bf16 %v4900_v25, %v4900_v25 }
 0x24d   : > { %5063 = vst.msk [vmem:[%s8349_s26 + $0x7c] sm:$0xf] %vm5031_vm7, %v5748_v52 }
 0x24e   : > { %5061 = vst.msk [vmem:[%s8349_s26 + $0x74] sm:$0xf] %vm5031_vm7, %v5746_v19 }
 0x24f PF: > { %s14_s15 = sadd.s32 1, %s6597_s15  }
 0x250   : > { %p11_p4 = scmp.ge.s32.totalorder %s14_s15, 4  }
 0x252   :  { %13 = sbr.rel (!%p11_p4) target bundleno = 1 (0x1), region = 76 }

</bundles_post_ra>
